<compile_context>
chip_gen: v7x
topology: tpu7x:2x2x1
jax: 0.10.0
libtpu: 0.0.40
codegen_flags: <defaults>
</compile_context>

<pallas_src>
import numpy as np
import jax
import jax.numpy as jnp
from jax.experimental import pallas as pl
from jax.experimental.pallas import tpu as pltpu


# ---------------------------------------------------------------------------
# Gauss / Karatsuba 3-matmul complex products on the MXU (bf16 in, f32 acc).
# ---------------------------------------------------------------------------

def _dot(a, b):
    return jnp.dot(a, b, preferred_element_type=jnp.float32)


def _data3(ar, ai):
    """bf16 casts of (re, im, re+im) for one Gauss complex product."""
    bf = jnp.bfloat16
    return ar.astype(bf), ai.astype(bf), (ar + ai).astype(bf)


def _gauss_right_b(a_r, a_i, a_s, mr, mi, ms, conj):
    """(a_r + i a_i) @ (mr -+ i mi), data triple already in bf16."""
    p1 = _dot(a_r, mr)
    p2 = _dot(a_i, mi)
    p3 = _dot(a_s, ms)
    if conj:                       # ms = mr - mi
        return p1 + p2, p3 - p1 + p2
    return p1 - p2, p3 - p1 - p2   # ms = mr + mi


def _gauss_left_b(mr, mi, ms, a_r, a_i, a_s, conj):
    """(mr -+ i mi) @ (a_r + i a_i), data triple already in bf16."""
    p1 = _dot(mr, a_r)
    p2 = _dot(mi, a_i)
    p3 = _dot(ms, a_s)
    if conj:
        return p1 + p2, p3 - p1 + p2
    return p1 - p2, p3 - p1 - p2


def _gauss_right(ar, ai, mr, mi, ms, conj):
    return _gauss_right_b(*_data3(ar, ai), mr, mi, ms, conj)


def _gauss_left(mr, mi, ms, ar, ai, conj):
    return _gauss_left_b(mr, mi, ms, *_data3(ar, ai), conj)


# ---------------------------------------------------------------------------
# Kernels
# ---------------------------------------------------------------------------

def _make_single_kernel(bt, npad):
    """Single-pass kernel: bt planes per grid step, everything resident."""

    def kernel(x_re_ref, x_im_ref, m1r_ref, m1i_ref, m1s_ref, m2s_ref,
               ccr_ref, cci_ref, o_re_ref, o_im_ref):
        m1r, m1i = m1r_ref[...], m1i_ref[...]
        m1s, m2s = m1s_ref[...], m2s_ref[...]
        ccr, cci = ccr_ref[...], cci_ref[...]

        # (1) right-multiply T = X @ M1 for all bt planes at once: planes are
        #     stacked along rows so each Gauss product is one lane/row-dense
        #     (bt*Np, Np) @ (Np, Np) MXU matmul.
        t_r, t_i = _gauss_right(x_re_ref[...], x_im_ref[...],
                                m1r, m1i, m1s, conj=False)
        # early bf16 cast: the f32 T planes die here (VMEM liveness).
        t_rb, t_ib, t_sb = _data3(t_r, t_i)

        for b in range(bt):                      # static unroll over planes
            lo, hi = b * npad, (b + 1) * npad
            # (2) left-multiply Y = M1 @ T_b   (M1 symmetric)
            br, bi = _gauss_left_b(m1r, m1i, m1s,
                                   t_rb[lo:hi], t_ib[lo:hi], t_sb[lo:hi],
                                   conj=False)
            # (3) Fresnel chirp (checkerboard, exp(ikz), 1/N^2 folded in)
            cr = br * ccr - bi * cci
            ci = br * cci + bi * ccr
            # (4) inverse pair with conj(M1): D = conj(M1) @ (C @ conj(M1))
            ur, ui = _gauss_right(cr, ci, m1r, m1i, m2s, conj=True)
            dr, di = _gauss_left(m1r, m1i, m2s, ur, ui, conj=True)
            # (5) write back
            rows = pl.ds(lo, npad)
            o_re_ref[rows, :] = dr
            o_im_ref[rows, :] = di

    return kernel


def _make_stage1_kernel(npad, tn):
    """Column-tiled stage 1: C[:, jt] = CC[:, jt] * (M1 @ (X @ M1[:, jt]))."""

    def kernel(x_re_ref, x_im_ref, m1r_ref, m1i_ref, m1s_ref,
               ccr_ref, cci_ref, c_re_ref, c_im_ref):
        jc = pl.multiple_of(pl.program_id(1) * tn, tn)
        m1r_t = m1r_ref[:, pl.ds(jc, tn)]
        m1i_t = m1i_ref[:, pl.ds(jc, tn)]
        m1s_t = m1s_ref[:, pl.ds(jc, tn)]
        # U = X @ M1[:, tile]
        ur, ui = _gauss_right(x_re_ref[...], x_im_ref[...],
                              m1r_t, m1i_t, m1s_t, conj=False)
        # V = M1 @ U
        vr, vi = _gauss_left(m1r_ref[...], m1i_ref[...], m1s_ref[...],
                             ur, ui, conj=False)
        ccr, cci = ccr_ref[...], cci_ref[...]
        c_re_ref[...] = (vr * ccr - vi * cci).astype(jnp.bfloat16)
        c_im_ref[...] = (vr * cci + vi * ccr).astype(jnp.bfloat16)

    return kernel


def _make_stage2_kernel(npad, tn):
    """Column-tiled stage 2: OUT[:, jt] = conj(M1) @ (C @ conj(M1)[:, jt])."""

    def kernel(c_re_ref, c_im_ref, m1r_ref, m1i_ref, m2s_ref,
               o_re_ref, o_im_ref):
        jc = pl.multiple_of(pl.program_id(1) * tn, tn)
        m1r_t = m1r_ref[:, pl.ds(jc, tn)]
        m1i_t = m1i_ref[:, pl.ds(jc, tn)]
        m2s_t = m2s_ref[:, pl.ds(jc, tn)]
        # W = C @ conj(M1)[:, tile]   (C already bf16 in HBM)
        wr, wi = _gauss_right(c_re_ref[...], c_im_ref[...],
                              m1r_t, m1i_t, m2s_t, conj=True)
        # OUT = conj(M1) @ W
        dr, di = _gauss_left(m1r_ref[...], m1i_ref[...], m2s_ref[...],
                             wr, wi, conj=True)
        o_re_ref[...] = dr
        o_im_ref[...] = di

    return kernel


# ---------------------------------------------------------------------------
# Host-side wrapper
# ---------------------------------------------------------------------------

def _vmem_limit_bytes():
    cap = 128 * 1024 * 1024
    try:
        cap = int(pltpu.get_tpu_info().vmem_capacity_bytes)
    except Exception:
        pass
    return int(min(96 * 1024 * 1024, 0.80 * cap))


def _pad2(a, npad):
    n = a.shape[0]
    if n == npad:
        return np.ascontiguousarray(a)
    out = np.zeros((npad, npad), dtype=a.dtype)
    out[:n, :n] = a
    return out


def fresnel_propagate(fin_re, fin_im, gridsize, wavelength, z, *,
                      force_tiled=False):
    """Fresnel_ASM_GPUandINV on a batch of (B, N, N) f32 real/imag planes."""
    fin_re = jnp.asarray(fin_re, jnp.float32)
    fin_im = jnp.asarray(fin_im, jnp.float32)
    if z == 0:
        return fin_re, fin_im

    B, N, _ = fin_re.shape
    lam = float(wavelength)
    size = float(gridsize)
    _2pi = 2.0 * np.pi
    z_abs = abs(float(z))
    kz = _2pi / lam * z_abs
    phase = np.cos(kz) + 1j * np.sin(kz)              # exp(i k z)

    # Fresnel chirp CC (identical recipe to the PyTorch reference).
    z1 = z_abs * lam / 2.0
    No2 = int(N / 2)
    SW = np.arange(-No2, N - No2) / size
    SW *= SW
    SSW = SW.reshape((-1, 1)) + SW
    Bus = z1 * SSW
    Ir = Bus.astype(int)
    Abus = _2pi * (Ir - Bus)
    CC = np.cos(Abus) + 1j * np.sin(Abus)

    # dense symmetric 1-D DFT matrix (torch.fft "backward" norm).
    jj = np.arange(N)
    F = np.exp(-2j * np.pi * np.outer(jj, jj) / N)

    if float(z) >= 0.0:
        M1, CCb = F, CC                     # fft2 ... ifft2
    else:
        M1, CCb = np.conj(F), np.conj(CC)   # ifft2 ... fft2

    # Fold exp(ikz) and the 1/N^2 of the inverse transform into the chirp so
    # that both DFT pairs use the unit-magnitude M1 / conj(M1) matrices.
    CCu = CCb * phase / float(N * N)

    # Fold the +-1 checkerboard into the chirp (exact for even N):
    #   ii*ifft2(CC*fft2(ii*x)) == ifft2(fftshift(CC)*fft2(x))
    fold_ii = (N % 2 == 0)
    if fold_ii:
        CCu = np.fft.fftshift(CCu)
        iiij = None
    else:
        iiN = np.ones((N,), dtype=np.float32)
        iiN[1::2] = -1.0
        iiij = jnp.asarray(np.outer(iiN, iiN), dtype=jnp.float32)

    # Zero-pad to a lane-aligned size (multiple of 128).  Correctness is
    # preserved because the DFT matrices and the chirp are zero-padded too.
    # TODO(synk): pad to multiples of 256 on v6e/v7x to fill whole MXU passes.
    npad = max(128, ((N + 127) // 128) * 128)

    def b16(a):
        return jnp.asarray(_pad2(np.ascontiguousarray(a, dtype=np.float32), npad),
                           dtype=jnp.bfloat16)

    def f32(a):
        return jnp.asarray(_pad2(np.ascontiguousarray(a, dtype=np.float32), npad),
                           dtype=jnp.float32)

    m1r = b16(M1.real)
    m1i = b16(M1.imag)
    m1s = b16(M1.real + M1.imag)      # Gauss sum for M1
    m2s = b16(M1.real - M1.imag)      # Gauss sum for conj(M1)  ("M2" plane)
    ccr = f32(CCu.real)
    cci = f32(CCu.imag)

    x_re, x_im = fin_re, fin_im
    if not fold_ii:
        x_re = x_re * iiij
        x_im = x_im * iiij
    if npad != N:
        pad = ((0, 0), (0, npad - N), (0, npad - N))
        x_re = jnp.pad(x_re, pad)
        x_im = jnp.pad(x_im, pad)

    vmem_limit = _vmem_limit_bytes()
    cparams1 = pltpu.CompilerParams(dimension_semantics=("parallel",),
                                    vmem_limit_bytes=vmem_limit)
    cparams2 = pltpu.CompilerParams(dimension_semantics=("parallel", "parallel"),
                                    vmem_limit_bytes=vmem_limit)

    # planes per grid step for the single-pass path (fold small batches so the
    # matmul row dim reaches ~512).
    bt = max(1, min(B, 512 // npad))

    plane_f32 = npad * npad * 4
    plane_b16 = npad * npad * 2
    est_single = (4 * 2 * bt * plane_f32            # field in/out, double-buffered
                  + 4 * plane_b16 + 2 * plane_f32   # constants, single-buffered
                  + 12 * bt * plane_f32)            # live f32/bf16 temporaries
    use_tiled = (force_tiled or est_single > vmem_limit) and npad >= 256

    if not use_tiled:
        # -------- single-pass, batch-folded path --------
        bp = ((B + bt - 1) // bt) * bt
        if bp != B:
            x_re = jnp.pad(x_re, ((0, bp - B), (0, 0), (0, 0)))
            x_im = jnp.pad(x_im, ((0, bp - B), (0, 0), (0, 0)))
        x_re2 = x_re.reshape(bp * npad, npad)
        x_im2 = x_im.reshape(bp * npad, npad)

        field_spec = pl.BlockSpec((bt * npad, npad), lambda g: (g, 0))
        const_spec = pl.BlockSpec((npad, npad), lambda g: (0, 0),
                                  pipeline_mode=pl.Buffered(1))

        out_re2, out_im2 = pl.pallas_call(
            _make_single_kernel(bt, npad),
            out_shape=(jax.ShapeDtypeStruct((bp * npad, npad), jnp.float32),
                       jax.ShapeDtypeStruct((bp * npad, npad), jnp.float32)),
            grid=(bp // bt,),
            in_specs=[field_spec, field_spec] + [const_spec] * 6,
            out_specs=(field_spec, field_spec),
            compiler_params=cparams1,
        )(x_re2, x_im2, m1r, m1i, m1s, m2s, ccr, cci)

        out_re = out_re2.reshape(bp, npad, npad)[:B, :N, :N]
        out_im = out_im2.reshape(bp, npad, npad)[:B, :N, :N]
    else:
        # -------- two-stage, column-tiled path (large N / v7x) --------
        # TODO(synk): for N >= ~2048 on v7x additionally tile the resident
        #             X / C planes (or store them in bf16) to stay under 64 MiB.
        tn = 256 if (npad % 256 == 0 and npad > 256) else 128
        ncol = npad // tn
        x_re2 = x_re.reshape(B * npad, npad)
        x_im2 = x_im.reshape(B * npad, npad)

        plane_spec = pl.BlockSpec((npad, npad), lambda b, j: (b, 0))
        const_spec = pl.BlockSpec((npad, npad), lambda b, j: (0, 0),
                                  pipeline_mode=pl.Buffered(1))
        cc_spec = pl.BlockSpec((npad, tn), lambda b, j: (0, j))
        col_spec = pl.BlockSpec((npad, tn), lambda b, j: (b, j))

        c_re, c_im = pl.pallas_call(
            _make_stage1_kernel(npad, tn),
            out_shape=(jax.ShapeDtypeStruct((B * npad, npad), jnp.bfloat16),
                       jax.ShapeDtypeStruct((B * npad, npad), jnp.bfloat16)),
            grid=(B, ncol),
            in_specs=[plane_spec, plane_spec,
                      const_spec, const_spec, const_spec,
                      cc_spec, cc_spec],
            out_specs=(col_spec, col_spec),
            compiler_params=cparams2,
        )(x_re2, x_im2, m1r, m1i, m1s, ccr, cci)

        out_re2, out_im2 = pl.pallas_call(
            _make_stage2_kernel(npad, tn),
            out_shape=(jax.ShapeDtypeStruct((B * npad, npad), jnp.float32),
                       jax.ShapeDtypeStruct((B * npad, npad), jnp.float32)),
            grid=(B, ncol),
            in_specs=[plane_spec, plane_spec,
                      const_spec, const_spec, const_spec],
            out_specs=(col_spec, col_spec),
            compiler_params=cparams2,
        )(c_re, c_im, m1r, m1i, m2s)

        out_re = out_re2.reshape(B, npad, npad)[:B, :N, :N]
        out_im = out_im2.reshape(B, npad, npad)[:B, :N, :N]

    if not fold_ii:
        out_re = out_re * iiij
        out_im = out_im * iiij
    return out_re, out_im


# ---------------------------------------------------------------------------
# Pure-JAX reference (mirrors the PyTorch code, complex64)
# ---------------------------------------------------------------------------

def _reference(fin_c, gridsize, wavelength, z):
    if z == 0:
        return fin_c
    N = fin_c.shape[-1]
    lam = wavelength
    _2pi = 2.0 * np.pi
    z_abs = abs(z)
    kz = _2pi / lam * z_abs
    iiN = np.ones((N,), dtype=float)
    iiN[1::2] = -1
    iiij = jnp.asarray(np.outer(iiN, iiN), dtype=jnp.complex64)
    z1 = z_abs * lam / 2.0
    No2 = int(N / 2)
    SW = np.arange(-No2, N - No2) / gridsize
    SW *= SW
    SSW = SW.reshape((-1, 1)) + SW
    Bus = z1 * SSW
    Ir = Bus.astype(int)
    Abus = _2pi * (Ir - Bus)
    CC = jnp.asarray(np.cos(Abus) + 1j * np.sin(Abus), dtype=jnp.complex64)
    x = fin_c * iiij
    if z >= 0.0:
        x = jnp.fft.fft2(x)
        x = x * CC
        x = jnp.fft.ifft2(x)
    else:
        x = jnp.fft.ifft2(x)
        x = x * jnp.conj(CC)
        x = jnp.fft.fft2(x)
    x = x * jnp.asarray(np.cos(kz) + 1j * np.sin(kz), dtype=jnp.complex64)
    x = x * iiij
    return x


if __name__ == "__main__":
    wavelength = 1.0e-10       # ~12.4 keV X-ray [m]
    gridsize = 1.0e-5          # physical grid size [m]

    def _check(case, key, B, N, z, force_tiled=False, tol=3e-2):
        kr, ki = jax.random.split(key)
        fin_re = jax.random.normal(kr, (B, N, N), dtype=jnp.float32)
        fin_im = jax.random.normal(ki, (B, N, N), dtype=jnp.float32)
        out_re, out_im = fresnel_propagate(fin_re, fin_im, gridsize,
                                           wavelength, z,
                                           force_tiled=force_tiled)
        out_re = jax.block_until_ready(out_re)
        out_im = jax.block_until_ready(out_im)
        ref = _reference((fin_re + 1j * fin_im).astype(jnp.complex64),
                         gridsize, wavelength, z)
        got = out_re + 1j * out_im
        err = float(jnp.max(jnp.abs(got - ref)) / jnp.max(jnp.abs(ref)))
        assert err < tol, f"case {case}: relative error too large: {err}"

    key = jax.random.PRNGKey(0)
    k1, k2, k3, k4 = jax.random.split(key, 4)
    # primary small demo (batch=2, 16x16), single-pass batch-folded path
    _check("fwd-small", k1, B=2, N=16, z=1.0e-2)
    # negative z (inverse propagation) + batch padding (B=5 -> 4 planes/step)
    _check("bwd-small", k2, B=5, N=16, z=-1.0e-2)
    # odd N: checkerboard applied in the wrapper instead of the fftshift fold
    _check("odd-N", k3, B=2, N=15, z=1.0e-2)
    # column-tiled two-stage path (selected automatically for large N / v7x)
    _check("tiled", k4, B=1, N=256, z=1.0e-2, force_tiled=True)

    print("KERNEL_OK")
</pallas_src>

<mosaic_0001>
module attributes {stable_mosaic.version = 11 : i64} {
  func.func @kernel(%arg0: i32, %arg1: memref<256x128xf32, #tpu.memory_space<vmem>>, %arg2: memref<256x128xf32, #tpu.memory_space<vmem>>, %arg3: memref<128x128xbf16, #tpu.memory_space<vmem>>, %arg4: memref<128x128xbf16, #tpu.memory_space<vmem>>, %arg5: memref<128x128xbf16, #tpu.memory_space<vmem>>, %arg6: memref<128x128xbf16, #tpu.memory_space<vmem>>, %arg7: memref<128x128xf32, #tpu.memory_space<vmem>>, %arg8: memref<128x128xf32, #tpu.memory_space<vmem>>, %arg9: memref<256x128xf32, #tpu.memory_space<vmem>>, %arg10: memref<256x128xf32, #tpu.memory_space<vmem>>) attributes {dimension_semantics = [#tpu.dimension_semantics<parallel>], iteration_bounds = array<i64: 1>, scalar_prefetch = 0 : i64, scratch_operands = 0 : i64, tpu.core_type = #tpu.core_type<tc>, window_params = [{transform_indices = @transform_0, window_bounds = array<i64: 256, 128>}, {transform_indices = @transform_1, window_bounds = array<i64: 256, 128>}, {pipeline_mode = #tpu.pipeline_mode<synchronous>, transform_indices = @transform_2, window_bounds = array<i64: 128, 128>}, {pipeline_mode = #tpu.pipeline_mode<synchronous>, transform_indices = @transform_3, window_bounds = array<i64: 128, 128>}, {pipeline_mode = #tpu.pipeline_mode<synchronous>, transform_indices = @transform_4, window_bounds = array<i64: 128, 128>}, {pipeline_mode = #tpu.pipeline_mode<synchronous>, transform_indices = @transform_5, window_bounds = array<i64: 128, 128>}, {pipeline_mode = #tpu.pipeline_mode<synchronous>, transform_indices = @transform_6, window_bounds = array<i64: 128, 128>}, {pipeline_mode = #tpu.pipeline_mode<synchronous>, transform_indices = @transform_7, window_bounds = array<i64: 128, 128>}, {transform_indices = @transform_8, window_bounds = array<i64: 256, 128>}, {transform_indices = @transform_9, window_bounds = array<i64: 256, 128>}]} {
    %c0 = arith.constant 0 : index
    %c0_0 = arith.constant 0 : index
    %0 = vector.load %arg3[%c0, %c0_0] : memref<128x128xbf16, #tpu.memory_space<vmem>>, vector<128x128xbf16>
    %c0_1 = arith.constant 0 : index
    %c0_2 = arith.constant 0 : index
    %1 = vector.load %arg4[%c0_1, %c0_2] : memref<128x128xbf16, #tpu.memory_space<vmem>>, vector<128x128xbf16>
    %c0_3 = arith.constant 0 : index
    %c0_4 = arith.constant 0 : index
    %2 = vector.load %arg5[%c0_3, %c0_4] : memref<128x128xbf16, #tpu.memory_space<vmem>>, vector<128x128xbf16>
    %c0_5 = arith.constant 0 : index
    %c0_6 = arith.constant 0 : index
    %3 = vector.load %arg6[%c0_5, %c0_6] : memref<128x128xbf16, #tpu.memory_space<vmem>>, vector<128x128xbf16>
    %c0_7 = arith.constant 0 : index
    %c0_8 = arith.constant 0 : index
    %4 = vector.load %arg7[%c0_7, %c0_8] : memref<128x128xf32, #tpu.memory_space<vmem>>, vector<128x128xf32>
    %c0_9 = arith.constant 0 : index
    %c0_10 = arith.constant 0 : index
    %5 = vector.load %arg8[%c0_9, %c0_10] : memref<128x128xf32, #tpu.memory_space<vmem>>, vector<128x128xf32>
    %c0_11 = arith.constant 0 : index
    %c0_12 = arith.constant 0 : index
    %6 = vector.load %arg1[%c0_11, %c0_12] : memref<256x128xf32, #tpu.memory_space<vmem>>, vector<256x128xf32>
    %c0_13 = arith.constant 0 : index
    %c0_14 = arith.constant 0 : index
    %7 = vector.load %arg2[%c0_13, %c0_14] : memref<256x128xf32, #tpu.memory_space<vmem>>, vector<256x128xf32>
    %8 = arith.truncf %6 : vector<256x128xf32> to vector<256x128xbf16>
    %9 = arith.truncf %7 : vector<256x128xf32> to vector<256x128xbf16>
    %10 = arith.addf %6, %7 : vector<256x128xf32>
    %11 = arith.truncf %10 : vector<256x128xf32> to vector<256x128xbf16>
    %cst = arith.constant dense<0.000000e+00> : vector<256x128xf32>
    %12 = tpu.matmul %8, %0, %cst {dimension_numbers = #tpu.dot_dimension_numbers<[1], [0], [0], [1], [0, 0, 1, 1], [], []>} : vector<256x128xbf16>, vector<128x128xbf16>, vector<256x128xf32> -> vector<256x128xf32>
    %cst_15 = arith.constant dense<0.000000e+00> : vector<256x128xf32>
    %13 = tpu.matmul %9, %1, %cst_15 {dimension_numbers = #tpu.dot_dimension_numbers<[1], [0], [0], [1], [0, 0, 1, 1], [], []>} : vector<256x128xbf16>, vector<128x128xbf16>, vector<256x128xf32> -> vector<256x128xf32>
    %cst_16 = arith.constant dense<0.000000e+00> : vector<256x128xf32>
    %14 = tpu.matmul %11, %2, %cst_16 {dimension_numbers = #tpu.dot_dimension_numbers<[1], [0], [0], [1], [0, 0, 1, 1], [], []>} : vector<256x128xbf16>, vector<128x128xbf16>, vector<256x128xf32> -> vector<256x128xf32>
    %15 = arith.subf %12, %13 : vector<256x128xf32>
    %16 = arith.subf %14, %12 : vector<256x128xf32>
    %17 = arith.subf %16, %13 : vector<256x128xf32>
    %18 = arith.truncf %15 : vector<256x128xf32> to vector<256x128xbf16>
    %19 = arith.truncf %17 : vector<256x128xf32> to vector<256x128xbf16>
    %20 = arith.addf %15, %17 : vector<256x128xf32>
    %21 = arith.truncf %20 : vector<256x128xf32> to vector<256x128xbf16>
    %22 = vector.extract_strided_slice %18 {offsets = [0, 0], sizes = [128, 128], strides = [1, 1]} : vector<256x128xbf16> to vector<128x128xbf16>
    %23 = vector.extract_strided_slice %19 {offsets = [0, 0], sizes = [128, 128], strides = [1, 1]} : vector<256x128xbf16> to vector<128x128xbf16>
    %24 = vector.extract_strided_slice %21 {offsets = [0, 0], sizes = [128, 128], strides = [1, 1]} : vector<256x128xbf16> to vector<128x128xbf16>
    %cst_17 = arith.constant dense<0.000000e+00> : vector<128x128xf32>
    %25 = tpu.matmul %0, %22, %cst_17 {dimension_numbers = #tpu.dot_dimension_numbers<[1], [0], [0], [1], [0, 0, 1, 1], [], []>} : vector<128x128xbf16>, vector<128x128xbf16>, vector<128x128xf32> -> vector<128x128xf32>
    %cst_18 = arith.constant dense<0.000000e+00> : vector<128x128xf32>
    %26 = tpu.matmul %1, %23, %cst_18 {dimension_numbers = #tpu.dot_dimension_numbers<[1], [0], [0], [1], [0, 0, 1, 1], [], []>} : vector<128x128xbf16>, vector<128x128xbf16>, vector<128x128xf32> -> vector<128x128xf32>
    %cst_19 = arith.constant dense<0.000000e+00> : vector<128x128xf32>
    %27 = tpu.matmul %2, %24, %cst_19 {dimension_numbers = #tpu.dot_dimension_numbers<[1], [0], [0], [1], [0, 0, 1, 1], [], []>} : vector<128x128xbf16>, vector<128x128xbf16>, vector<128x128xf32> -> vector<128x128xf32>
    %28 = arith.subf %25, %26 : vector<128x128xf32>
    %29 = arith.subf %27, %25 : vector<128x128xf32>
    %30 = arith.subf %29, %26 : vector<128x128xf32>
    %31 = arith.mulf %28, %4 : vector<128x128xf32>
    %32 = arith.mulf %30, %5 : vector<128x128xf32>
    %33 = arith.subf %31, %32 : vector<128x128xf32>
    %34 = arith.mulf %28, %5 : vector<128x128xf32>
    %35 = arith.mulf %30, %4 : vector<128x128xf32>
    %36 = arith.addf %34, %35 : vector<128x128xf32>
    %37 = arith.truncf %33 : vector<128x128xf32> to vector<128x128xbf16>
    %38 = arith.truncf %36 : vector<128x128xf32> to vector<128x128xbf16>
    %39 = arith.addf %33, %36 : vector<128x128xf32>
    %40 = arith.truncf %39 : vector<128x128xf32> to vector<128x128xbf16>
    %cst_20 = arith.constant dense<0.000000e+00> : vector<128x128xf32>
    %41 = tpu.matmul %37, %0, %cst_20 {dimension_numbers = #tpu.dot_dimension_numbers<[1], [0], [0], [1], [0, 0, 1, 1], [], []>} : vector<128x128xbf16>, vector<128x128xbf16>, vector<128x128xf32> -> vector<128x128xf32>
    %cst_21 = arith.constant dense<0.000000e+00> : vector<128x128xf32>
    %42 = tpu.matmul %38, %1, %cst_21 {dimension_numbers = #tpu.dot_dimension_numbers<[1], [0], [0], [1], [0, 0, 1, 1], [], []>} : vector<128x128xbf16>, vector<128x128xbf16>, vector<128x128xf32> -> vector<128x128xf32>
    %cst_22 = arith.constant dense<0.000000e+00> : vector<128x128xf32>
    %43 = tpu.matmul %40, %3, %cst_22 {dimension_numbers = #tpu.dot_dimension_numbers<[1], [0], [0], [1], [0, 0, 1, 1], [], []>} : vector<128x128xbf16>, vector<128x128xbf16>, vector<128x128xf32> -> vector<128x128xf32>
    %44 = arith.addf %41, %42 : vector<128x128xf32>
    %45 = arith.subf %43, %41 : vector<128x128xf32>
    %46 = arith.addf %45, %42 : vector<128x128xf32>
    %47 = arith.truncf %44 : vector<128x128xf32> to vector<128x128xbf16>
    %48 = arith.truncf %46 : vector<128x128xf32> to vector<128x128xbf16>
    %49 = arith.addf %44, %46 : vector<128x128xf32>
    %50 = arith.truncf %49 : vector<128x128xf32> to vector<128x128xbf16>
    %cst_23 = arith.constant dense<0.000000e+00> : vector<128x128xf32>
    %51 = tpu.matmul %0, %47, %cst_23 {dimension_numbers = #tpu.dot_dimension_numbers<[1], [0], [0], [1], [0, 0, 1, 1], [], []>} : vector<128x128xbf16>, vector<128x128xbf16>, vector<128x128xf32> -> vector<128x128xf32>
    %cst_24 = arith.constant dense<0.000000e+00> : vector<128x128xf32>
    %52 = tpu.matmul %1, %48, %cst_24 {dimension_numbers = #tpu.dot_dimension_numbers<[1], [0], [0], [1], [0, 0, 1, 1], [], []>} : vector<128x128xbf16>, vector<128x128xbf16>, vector<128x128xf32> -> vector<128x128xf32>
    %cst_25 = arith.constant dense<0.000000e+00> : vector<128x128xf32>
    %53 = tpu.matmul %3, %50, %cst_25 {dimension_numbers = #tpu.dot_dimension_numbers<[1], [0], [0], [1], [0, 0, 1, 1], [], []>} : vector<128x128xbf16>, vector<128x128xbf16>, vector<128x128xf32> -> vector<128x128xf32>
    %54 = arith.addf %51, %52 : vector<128x128xf32>
    %55 = arith.subf %53, %51 : vector<128x128xf32>
    %56 = arith.addf %55, %52 : vector<128x128xf32>
    %c0_26 = arith.constant 0 : index
    %c0_27 = arith.constant 0 : index
    %57 = vector.load %arg9[%c0_26, %c0_27] : memref<256x128xf32, #tpu.memory_space<vmem>>, vector<128x128xf32>
    tpu.vector_store %arg9[%c0_26, %c0_27], %54 {strides = array<i32>} : memref<256x128xf32, #tpu.memory_space<vmem>>, vector<128x128xf32>,
    %c0_28 = arith.constant 0 : index
    %c0_29 = arith.constant 0 : index
    %58 = vector.load %arg10[%c0_28, %c0_29] : memref<256x128xf32, #tpu.memory_space<vmem>>, vector<128x128xf32>
    tpu.vector_store %arg10[%c0_28, %c0_29], %56 {strides = array<i32>} : memref<256x128xf32, #tpu.memory_space<vmem>>, vector<128x128xf32>,
    %59 = vector.extract_strided_slice %18 {offsets = [128, 0], sizes = [128, 128], strides = [1, 1]} : vector<256x128xbf16> to vector<128x128xbf16>
    %60 = vector.extract_strided_slice %19 {offsets = [128, 0], sizes = [128, 128], strides = [1, 1]} : vector<256x128xbf16> to vector<128x128xbf16>
    %61 = vector.extract_strided_slice %21 {offsets = [128, 0], sizes = [128, 128], strides = [1, 1]} : vector<256x128xbf16> to vector<128x128xbf16>
    %cst_30 = arith.constant dense<0.000000e+00> : vector<128x128xf32>
    %62 = tpu.matmul %0, %59, %cst_30 {dimension_numbers = #tpu.dot_dimension_numbers<[1], [0], [0], [1], [0, 0, 1, 1], [], []>} : vector<128x128xbf16>, vector<128x128xbf16>, vector<128x128xf32> -> vector<128x128xf32>
    %cst_31 = arith.constant dense<0.000000e+00> : vector<128x128xf32>
    %63 = tpu.matmul %1, %60, %cst_31 {dimension_numbers = #tpu.dot_dimension_numbers<[1], [0], [0], [1], [0, 0, 1, 1], [], []>} : vector<128x128xbf16>, vector<128x128xbf16>, vector<128x128xf32> -> vector<128x128xf32>
    %cst_32 = arith.constant dense<0.000000e+00> : vector<128x128xf32>
    %64 = tpu.matmul %2, %61, %cst_32 {dimension_numbers = #tpu.dot_dimension_numbers<[1], [0], [0], [1], [0, 0, 1, 1], [], []>} : vector<128x128xbf16>, vector<128x128xbf16>, vector<128x128xf32> -> vector<128x128xf32>
    %65 = arith.subf %62, %63 : vector<128x128xf32>
    %66 = arith.subf %64, %62 : vector<128x128xf32>
    %67 = arith.subf %66, %63 : vector<128x128xf32>
    %68 = arith.mulf %65, %4 : vector<128x128xf32>
    %69 = arith.mulf %67, %5 : vector<128x128xf32>
    %70 = arith.subf %68, %69 : vector<128x128xf32>
    %71 = arith.mulf %65, %5 : vector<128x128xf32>
    %72 = arith.mulf %67, %4 : vector<128x128xf32>
    %73 = arith.addf %71, %72 : vector<128x128xf32>
    %74 = arith.truncf %70 : vector<128x128xf32> to vector<128x128xbf16>
    %75 = arith.truncf %73 : vector<128x128xf32> to vector<128x128xbf16>
    %76 = arith.addf %70, %73 : vector<128x128xf32>
    %77 = arith.truncf %76 : vector<128x128xf32> to vector<128x128xbf16>
    %cst_33 = arith.constant dense<0.000000e+00> : vector<128x128xf32>
    %78 = tpu.matmul %74, %0, %cst_33 {dimension_numbers = #tpu.dot_dimension_numbers<[1], [0], [0], [1], [0, 0, 1, 1], [], []>} : vector<128x128xbf16>, vector<128x128xbf16>, vector<128x128xf32> -> vector<128x128xf32>
    %cst_34 = arith.constant dense<0.000000e+00> : vector<128x128xf32>
    %79 = tpu.matmul %75, %1, %cst_34 {dimension_numbers = #tpu.dot_dimension_numbers<[1], [0], [0], [1], [0, 0, 1, 1], [], []>} : vector<128x128xbf16>, vector<128x128xbf16>, vector<128x128xf32> -> vector<128x128xf32>
    %cst_35 = arith.constant dense<0.000000e+00> : vector<128x128xf32>
    %80 = tpu.matmul %77, %3, %cst_35 {dimension_numbers = #tpu.dot_dimension_numbers<[1], [0], [0], [1], [0, 0, 1, 1], [], []>} : vector<128x128xbf16>, vector<128x128xbf16>, vector<128x128xf32> -> vector<128x128xf32>
    %81 = arith.addf %78, %79 : vector<128x128xf32>
    %82 = arith.subf %80, %78 : vector<128x128xf32>
    %83 = arith.addf %82, %79 : vector<128x128xf32>
    %84 = arith.truncf %81 : vector<128x128xf32> to vector<128x128xbf16>
    %85 = arith.truncf %83 : vector<128x128xf32> to vector<128x128xbf16>
    %86 = arith.addf %81, %83 : vector<128x128xf32>
    %87 = arith.truncf %86 : vector<128x128xf32> to vector<128x128xbf16>
    %cst_36 = arith.constant dense<0.000000e+00> : vector<128x128xf32>
    %88 = tpu.matmul %0, %84, %cst_36 {dimension_numbers = #tpu.dot_dimension_numbers<[1], [0], [0], [1], [0, 0, 1, 1], [], []>} : vector<128x128xbf16>, vector<128x128xbf16>, vector<128x128xf32> -> vector<128x128xf32>
    %cst_37 = arith.constant dense<0.000000e+00> : vector<128x128xf32>
    %89 = tpu.matmul %1, %85, %cst_37 {dimension_numbers = #tpu.dot_dimension_numbers<[1], [0], [0], [1], [0, 0, 1, 1], [], []>} : vector<128x128xbf16>, vector<128x128xbf16>, vector<128x128xf32> -> vector<128x128xf32>
    %cst_38 = arith.constant dense<0.000000e+00> : vector<128x128xf32>
    %90 = tpu.matmul %3, %87, %cst_38 {dimension_numbers = #tpu.dot_dimension_numbers<[1], [0], [0], [1], [0, 0, 1, 1], [], []>} : vector<128x128xbf16>, vector<128x128xbf16>, vector<128x128xf32> -> vector<128x128xf32>
    %91 = arith.addf %88, %89 : vector<128x128xf32>
    %92 = arith.subf %90, %88 : vector<128x128xf32>
    %93 = arith.addf %92, %89 : vector<128x128xf32>
    %c128 = arith.constant 128 : index
    %c0_39 = arith.constant 0 : index
    %94 = vector.load %arg9[%c128, %c0_39] : memref<256x128xf32, #tpu.memory_space<vmem>>, vector<128x128xf32>
    tpu.vector_store %arg9[%c128, %c0_39], %91 {strides = array<i32>} : memref<256x128xf32, #tpu.memory_space<vmem>>, vector<128x128xf32>,
    %c128_40 = arith.constant 128 : index
    %c0_41 = arith.constant 0 : index
    %95 = vector.load %arg10[%c128_40, %c0_41] : memref<256x128xf32, #tpu.memory_space<vmem>>, vector<128x128xf32>
    tpu.vector_store %arg10[%c128_40, %c0_41], %93 {strides = array<i32>} : memref<256x128xf32, #tpu.memory_space<vmem>>, vector<128x128xf32>,
    return
  }
  func.func @transform_0(%arg0: i32) -> (i32, i32) {
    %c0_i32 = arith.constant 0 : i32
    %c0_i32_0 = arith.constant 0 : i32
    return %arg0, %c0_i32 : i32, i32
  }
  func.func @transform_1(%arg0: i32) -> (i32, i32) {
    %c0_i32 = arith.constant 0 : i32
    %c0_i32_0 = arith.constant 0 : i32
    return %arg0, %c0_i32 : i32, i32
  }
  func.func @transform_2(%arg0: i32) -> (i32, i32) {
    %c0_i32 = arith.constant 0 : i32
    %c0_i32_0 = arith.constant 0 : i32
    %c0_i32_1 = arith.constant 0 : i32
    return %c0_i32, %c0_i32_0 : i32, i32
  }
  func.func @transform_3(%arg0: i32) -> (i32, i32) {
    %c0_i32 = arith.constant 0 : i32
    %c0_i32_0 = arith.constant 0 : i32
    %c0_i32_1 = arith.constant 0 : i32
    return %c0_i32, %c0_i32_0 : i32, i32
  }
  func.func @transform_4(%arg0: i32) -> (i32, i32) {
    %c0_i32 = arith.constant 0 : i32
    %c0_i32_0 = arith.constant 0 : i32
    %c0_i32_1 = arith.constant 0 : i32
    return %c0_i32, %c0_i32_0 : i32, i32
  }
  func.func @transform_5(%arg0: i32) -> (i32, i32) {
    %c0_i32 = arith.constant 0 : i32
    %c0_i32_0 = arith.constant 0 : i32
    %c0_i32_1 = arith.constant 0 : i32
    return %c0_i32, %c0_i32_0 : i32, i32
  }
  func.func @transform_6(%arg0: i32) -> (i32, i32) {
    %c0_i32 = arith.constant 0 : i32
    %c0_i32_0 = arith.constant 0 : i32
    %c0_i32_1 = arith.constant 0 : i32
    return %c0_i32, %c0_i32_0 : i32, i32
  }
  func.func @transform_7(%arg0: i32) -> (i32, i32) {
    %c0_i32 = arith.constant 0 : i32
    %c0_i32_0 = arith.constant 0 : i32
    %c0_i32_1 = arith.constant 0 : i32
    return %c0_i32, %c0_i32_0 : i32, i32
  }
  func.func @transform_8(%arg0: i32) -> (i32, i32) {
    %c0_i32 = arith.constant 0 : i32
    %c0_i32_0 = arith.constant 0 : i32
    return %arg0, %c0_i32 : i32, i32
  }
  func.func @transform_9(%arg0: i32) -> (i32, i32) {
    %c0_i32 = arith.constant 0 : i32
    %c0_i32_0 = arith.constant 0 : i32
    return %arg0, %c0_i32 : i32, i32
  }
}

</mosaic_0001>

<bundles_post_ra>
// kernel: tpu_custom_call.1
= control target key start
LH: loop header
LB: loop body
LE: loop exit
PB: predicated region body
PF: predicated region fallthrough
CT: control target
= control target key end

     0   :  { %15 = vsyncpa [#allocation3], 0  ;;  %s7482_s0 = inlined_call_operand.hbm [shape: f32[256,128], index: 0, kind: input, shape index: {}]   ;;  %s7483_s1 = inlined_call_operand.hbm [shape: f32[256,128], index: 1, kind: input, shape index: {}]   ;;  %s7484_s2 = inlined_call_operand.hbm [shape: bf16[128,128], index: 2, kind: input, shape index: {}]   ;;  %s7485_s3 = inlined_call_operand.hbm [shape: bf16[128,128], index: 3, kind: input, shape index: {}]   ;;  %s7486_s4 = inlined_call_operand.hbm [shape: bf16[128,128], index: 4, kind: input, shape index: {}]   ;;  %s7487_s5 = inlined_call_operand.hbm [shape: bf16[128,128], index: 5, kind: input, shape index: {}]   ;;  %s7488_s6 = inlined_call_operand.hbm [shape: f32[128,128], index: 6, kind: input, shape index: {}]   ;;  %s7489_s7 = inlined_call_operand.hbm [shape: f32[128,128], index: 7, kind: input, shape index: {}]   ;;  %s7490_s8 = inlined_call_operand.hbm [shape: f32[256,128], index: 8, kind: output, shape index: {0}]   ;;  %s7491_s9 = inlined_call_operand.hbm [shape: f32[256,128], index: 9, kind: output, shape index: {1}]  }
   0x1   :  { %16 = vsyncpa [#allocation6], 0 }
   0x2   :  { %17 = vsyncpa [#allocation9], 0 }
   0x3   :  { %18 = vsyncpa [#allocation12], 0 }
   0x4   :  { %19 = vsyncpa [#allocation15], 0 }
   0x5   :  { %20 = vsyncpa [#allocation4], 0 }
   0x6   :  { %21 = vsyncpa [#allocation18], 0  ;;  %s5208_s30 = smov [#allocation5]   ;;  %s4974_s13 = scalar_lea.hbm %s7483_s1, 4096 }
   0x7   :  { %s39_s10 = sshll.u32 %s5208_s30, 4  ;;  %p4975_p0 = scmp.ne.s32.totalorder %s7483_s1, %s4974_s13  ;;  %s40_s10 = int_to_ptr.vmem [resolvable:$true] %s39_s10 }
   0x8   :  { %p4978_p1 = scmp.lt.u32.totalorder %s4974_s13, %s7483_s1 }
   0xa   :  { %p4980_p2 = pnand %p4978_p1, %p4975_p0 }
   0xc   :  { %4983 = shalt.err (!%p4980_p2)
}
   0xd   :  { %s4984_s18 = scalar_lea.vmem %s40_s10, 4096  ;;  %p4989_p4 = scmp.lt.s32.totalorder %s40_s10, %s40_s10 }
   0xe   :  { %p4985_p3 = scmp.ne.s32.totalorder %s40_s10, %s4984_s18  ;;  %p4990_p5 = scmp.lt.s32.totalorder %s4984_s18, %s4984_s18 }
  0x10   :  { %p4991_p6 = por %p4990_p5, %p4989_p4 }
  0x12   :  { %p4992_p7 = pnand %p4991_p6, %p4985_p3 }
  0x14   :  { %4995 = shalt.err (!%p4992_p7)
}
  0x15   :  { %s5209_s19 = smov 128   ;;  %s5210_s20 = smov 8  }
  0x16   :  { %45 = dma.hbm_to_vmem [thread:$0]  %s7483_s1, 4096, %s40_s10, [#allocation6], %s5209_s19, %s5209_s19, %s5210_s20  }
  0x17   :  { %s5211_s23 = smov [#allocation8]   ;;  %s5212_s25 = smov [#allocation11]  }
  0x18   :  { %s63_s24 = sshll.u32 %s5211_s23, 4  ;;  %s87_s26 = sshll.u32 %s5212_s25, 4  ;;  %s64_s24 = int_to_ptr.vmem [resolvable:$true] %s63_s24  ;;  %s88_s26 = int_to_ptr.vmem [resolvable:$true] %s87_s26 }
  0x19   :  { %s4996_s29 = scalar_lea.hbm %s7485_s3, 1024 }
  0x1a   :  { %p4997_p8 = scmp.ne.s32.totalorder %s7485_s3, %s4996_s29  ;;  %p5000_p9 = scmp.lt.u32.totalorder %s4996_s29, %s7485_s3 }
  0x1c   :  { %p5002_p10 = pnand %p5000_p9, %p4997_p8 }
  0x1e   :  { %5005 = shalt.err (!%p5002_p10)
}
  0x1f   :  { %s5006_s1 = scalar_lea.vmem %s64_s24, 1024  ;;  %p5011_p12 = scmp.lt.s32.totalorder %s64_s24, %s64_s24 }
  0x20   :  { %p5007_p11 = scmp.ne.s32.totalorder %s64_s24, %s5006_s1  ;;  %p5012_p13 = scmp.lt.s32.totalorder %s5006_s1, %s5006_s1 }
  0x22   :  { %p5013_p0 = por %p5012_p13, %p5011_p12 }
  0x24   :  { %p5014_p1 = pnand %p5013_p0, %p5007_p11 }
  0x26   :  { %5017 = shalt.err (!%p5014_p1)
}
  0x27   :  { %s5213_s10 = smov 64   ;;  %s5214_s14 = smov 4  }
  0x28   :  { %69 = dma.hbm_to_vmem [thread:$0]  %s7485_s3, 1024, %s64_s24, [#allocation9], %s5213_s10, %s5213_s10, %s5214_s14  }
  0x29   :  { %s5018_s21 = scalar_lea.hbm %s7487_s5, 1024 }
  0x2a   :  { %p5019_p2 = scmp.ne.s32.totalorder %s7487_s5, %s5018_s21  ;;  %p5022_p3 = scmp.lt.u32.totalorder %s5018_s21, %s7487_s5 }
  0x2c   :  { %p5024_p4 = pnand %p5022_p3, %p5019_p2 }
  0x2e   :  { %5027 = shalt.err (!%p5024_p4)
}
  0x2f   :  { %s5028_s28 = scalar_lea.vmem %s88_s26, 1024  ;;  %p5033_p6 = scmp.lt.s32.totalorder %s88_s26, %s88_s26 }
  0x30   :  { %p5029_p5 = scmp.ne.s32.totalorder %s88_s26, %s5028_s28  ;;  %p5034_p7 = scmp.lt.s32.totalorder %s5028_s28, %s5028_s28 }
  0x32   :  { %p5035_p8 = por %p5034_p7, %p5033_p6 }
  0x34   :  { %p5036_p9 = pnand %p5035_p8, %p5029_p5 }
  0x36   :  { %5039 = shalt.err (!%p5036_p9)
}
  0x37   :  { %93 = dma.hbm_to_vmem [thread:$0]  %s7487_s5, 1024, %s88_s26, [#allocation12], %s5213_s10, %s5213_s10, %s5214_s14  }
  0x38   :  { %s5215_s29 = smov [#allocation2]   ;;  %s5216_s11 = smov [#allocation7]  }
  0x39   :  { %s27_s30 = sshll.u32 %s5215_s29, 4  ;;  %s51_s12 = sshll.u32 %s5216_s11, 4  ;;  %s28_s30 = int_to_ptr.vmem [resolvable:$true] %s27_s30  ;;  %s52_s12 = int_to_ptr.vmem [resolvable:$true] %s51_s12 }
  0x3a   :  { %s5040_s15 = scalar_lea.hbm %s7482_s0, 4096 }
  0x3b   :  { %p5041_p10 = scmp.ne.s32.totalorder %s7482_s0, %s5040_s15  ;;  %p5044_p11 = scmp.lt.u32.totalorder %s5040_s15, %s7482_s0 }
  0x3d   :  { %p5046_p12 = pnand %p5044_p11, %p5041_p10 }
  0x3f   :  { %5049 = shalt.err (!%p5046_p12)
}
  0x40   :  { %s5050_s5 = scalar_lea.vmem %s28_s30, 4096  ;;  %p5055_p0 = scmp.lt.s32.totalorder %s28_s30, %s28_s30 }
  0x41   :  { %p5051_p13 = scmp.ne.s32.totalorder %s28_s30, %s5050_s5  ;;  %p5056_p1 = scmp.lt.s32.totalorder %s5050_s5, %s5050_s5 }
  0x43   :  { %p5057_p2 = por %p5056_p1, %p5055_p0 }
  0x45   :  { %p5058_p3 = pnand %p5057_p2, %p5051_p13 }
  0x47   :  { %5061 = shalt.err (!%p5058_p3)
}
  0x48   :  { %33 = dma.hbm_to_vmem [thread:$0]  %s7482_s0, 4096, %s28_s30, [#allocation3], %s5209_s19, %s5209_s19, %s5210_s20  }
  0x49   :  { %s5062_s27 = scalar_lea.hbm %s7484_s2, 1024 }
  0x4a   :  { %p5063_p4 = scmp.ne.s32.totalorder %s7484_s2, %s5062_s27  ;;  %p5066_p5 = scmp.lt.u32.totalorder %s5062_s27, %s7484_s2 }
  0x4c   :  { %p5068_p6 = pnand %p5066_p5, %p5063_p4 }
  0x4e   :  { %5071 = shalt.err (!%p5068_p6)
}
  0x4f   :  { %s5072_s11 = scalar_lea.vmem %s52_s12, 1024  ;;  %p5077_p8 = scmp.lt.s32.totalorder %s52_s12, %s52_s12 }
  0x50   :  { %p5073_p7 = scmp.ne.s32.totalorder %s52_s12, %s5072_s11  ;;  %p5078_p9 = scmp.lt.s32.totalorder %s5072_s11, %s5072_s11 }
  0x52   :  { %p5079_p10 = por %p5078_p9, %p5077_p8 }
  0x54   :  { %p5080_p11 = pnand %p5079_p10, %p5073_p7 }
  0x56   :  { %5083 = shalt.err (!%p5080_p11)
}
  0x57   :  { %57 = dma.hbm_to_vmem [thread:$0]  %s7484_s2, 1024, %s52_s12, [#allocation6], %s5213_s10, %s5213_s10, %s5214_s14  }
  0x58   :  { %s5217_s13 = smov [#allocation10]   ;;  %s5218_s15 = smov [#allocation13]  }
  0x59   :  { %s75_s1 = sshll.u32 %s5217_s13, 4  ;;  %s99_s16 = sshll.u32 %s5218_s15, 4  ;;  %s76_s1 = int_to_ptr.vmem [resolvable:$true] %s75_s1  ;;  %s100_s16 = int_to_ptr.vmem [resolvable:$true] %s99_s16 }
  0x5a   :  { %s5084_s21 = scalar_lea.hbm %s7486_s4, 1024 }
  0x5b   :  { %p5085_p12 = scmp.ne.s32.totalorder %s7486_s4, %s5084_s21  ;;  %p5088_p13 = scmp.lt.u32.totalorder %s5084_s21, %s7486_s4 }
  0x5d   :  { %p5090_p0 = pnand %p5088_p13, %p5085_p12 }
  0x5f   :  { %5093 = shalt.err (!%p5090_p0)
}
  0x60   :  { %s5094_s2 = scalar_lea.vmem %s76_s1, 1024  ;;  %p5099_p2 = scmp.lt.s32.totalorder %s76_s1, %s76_s1 }
  0x61   :  { %p5095_p1 = scmp.ne.s32.totalorder %s76_s1, %s5094_s2  ;;  %p5100_p3 = scmp.lt.s32.totalorder %s5094_s2, %s5094_s2 }
  0x63   :  { %p5101_p4 = por %p5100_p3, %p5099_p2 }
  0x65   :  { %p5102_p5 = pnand %p5101_p4, %p5095_p1 }
  0x67   :  { %5105 = shalt.err (!%p5102_p5)
}
  0x68   :  { %81 = dma.hbm_to_vmem [thread:$0]  %s7486_s4, 1024, %s76_s1, [#allocation9], %s5213_s10, %s5213_s10, %s5214_s14  }
  0x69   :  { %s5106_s3 = scalar_lea.hbm %s7488_s6, 2048 }
  0x6a   :  { %p5107_p6 = scmp.ne.s32.totalorder %s7488_s6, %s5106_s3  ;;  %p5110_p7 = scmp.lt.u32.totalorder %s5106_s3, %s7488_s6 }
  0x6c   :  { %p5112_p8 = pnand %p5110_p7, %p5107_p6 }
  0x6e   :  { %5115 = shalt.err (!%p5112_p8)
}
  0x6f   :  { %s5116_s30 = scalar_lea.vmem %s100_s16, 2048  ;;  %p5121_p10 = scmp.lt.s32.totalorder %s100_s16, %s100_s16 }
  0x70   :  { %p5117_p9 = scmp.ne.s32.totalorder %s100_s16, %s5116_s30  ;;  %p5122_p11 = scmp.lt.s32.totalorder %s5116_s30, %s5116_s30 }
  0x72   :  { %p5123_p12 = por %p5122_p11, %p5121_p10 }
  0x74   :  { %p5124_p13 = pnand %p5123_p12, %p5117_p9 }
  0x76   :  { %5127 = shalt.err (!%p5124_p13)
}
  0x77   :  { %105 = dma.hbm_to_vmem [thread:$0]  %s7488_s6, 2048, %s100_s16, [#allocation12], %s5209_s19, %s5209_s19, %s5210_s20  }
  0x78   :  { %s5219_s14 = smov [#allocation14]   ;;  %s5128_s17 = scalar_lea.hbm %s7489_s7, 2048 }
  0x79   :  { %s111_s13 = sshll.u32 %s5219_s14, 4  ;;  %p5129_p0 = scmp.ne.s32.totalorder %s7489_s7, %s5128_s17  ;;  %s112_s13 = int_to_ptr.vmem [resolvable:$true] %s111_s13 }
  0x7a   :  { %p5132_p1 = scmp.lt.u32.totalorder %s5128_s17, %s7489_s7 }
  0x7c   :  { %p5134_p2 = pnand %p5132_p1, %p5129_p0 }
  0x7e   :  { %5137 = shalt.err (!%p5134_p2)
}
  0x7f   :  { %s5138_s22 = scalar_lea.vmem %s112_s13, 2048  ;;  %p5143_p4 = scmp.lt.s32.totalorder %s112_s13, %s112_s13 }
  0x80   :  { %p5139_p3 = scmp.ne.s32.totalorder %s112_s13, %s5138_s22  ;;  %p5144_p5 = scmp.lt.s32.totalorder %s5138_s22, %s5138_s22 }
  0x82   :  { %p5145_p6 = por %p5144_p5, %p5143_p4 }
  0x84   :  { %p5146_p7 = pnand %p5145_p6, %p5139_p3 }
  0x86   :  { %5149 = shalt.err (!%p5146_p7)
}
  0x87   :  { %117 = dma.hbm_to_vmem [thread:$0]  %s7489_s7, 2048, %s112_s13, [#allocation15], %s5209_s19, %s5209_s19, %s5210_s20  }
  0x88   :  { %5194 = dma.done.wait [#allocation3], 4096  }
  0x89   :  { %5195 = vsyncadd [#allocation3], 4294963200 }
  0x8a   :  { %5196 = dma.done.wait [#allocation6], 5120  }
  0x8b   :  { %5197 = vsyncadd [#allocation6], 4294962176 }
  0x8c   :  { %5198 = dma.done.wait [#allocation9], 2048  }
  0x8d   :  { %5199 = vsyncadd [#allocation9], 4294965248 }
  0x8e   :  { %5200 = dma.done.wait [#allocation12], 3072  }
  0x8f   :  { %5201 = vsyncadd [#allocation12], 4294964224 }
  0x90   :  { %5202 = dma.done.wait [#allocation15], 2048  }
  0x91   :  { %5203 = vsyncadd [#allocation15], 4294965248  ;;  %v5392_v0 = vld [vmem:[#allocation7] sm:$0xff]   ;;  %v5397_v2 = vld [vmem:[#allocation7 + $0x8] sm:$0xff]   ;;  %s5220_s7 = smov [#allocation16]   ;;  %s5221_s2 = smov [#allocation17]  }
  0x92   :  { %v5394_v1 = vld [vmem:[#allocation8] sm:$0xff]   ;;  %4113 = vmatprep.subr.bf16.mxu0 %v5392_v0  ;;  %7632 = vst [vmem:[#allocation27_spill] sm:$0xff] %v5397_v2  ;;  %v4850_v3 = vld [vmem:[#allocation8 + $0x8] sm:$0xff]   ;;  %v5403_v4 = vld [vmem:[#allocation7 + $0x10] sm:$0xff]   ;;  %s3689_s23 = sshll.u32 %s5220_s7, 4  ;;  %s3701_s12 = sshll.u32 %s5221_s2, 4  ;;  %s3690_s23 = int_to_ptr.vmem [resolvable:$true] %s3689_s23  ;;  %s3702_s12 = int_to_ptr.vmem [resolvable:$true] %s3701_s12 }
  0x93   :  { %7631 = vst [vmem:[#allocation26_spill] sm:$0xff] %v5394_v1  ;;  %4161 = vmatprep.subr.bf16.mxu1 %v5394_v1  ;;  %4114 = vmatpush3.bf16.msra.mxu0 %v5392_v0  ;;  %7633 = vst [vmem:[#allocation28_spill] sm:$0xff] %v5403_v4  ;;  %v4852_v5 = vld [vmem:[#allocation8 + $0x10] sm:$0xff]   ;;  %v5407_v6 = vld [vmem:[#allocation7 + $0x18] sm:$0xff]   ;;  %s5150_s25 = scalar_lea.vmem %s3690_s23, 4096  ;;  %p5155_p9 = scmp.lt.s32.totalorder %s3690_s23, %s3690_s23 }
  0x94   :  { %4162 = vmatpush3.bf16.msra.mxu1 %v5394_v1  ;;  %4115 = vmatprep.subr.bf16.mxu0 %v5397_v2  ;;  %7634 = vst [vmem:[#allocation29_spill] sm:$0xff] %v5407_v6  ;;  %v4854_v7 = vld [vmem:[#allocation8 + $0x18] sm:$0xff]   ;;  %v5411_v8 = vld [vmem:[#allocation7 + $0x20] sm:$0xff]   ;;  %v5414_v10 = vld [vmem:[#allocation7 + $0x28] sm:$0xff]   ;;  %p5151_p8 = scmp.ne.s32.totalorder %s3690_s23, %s5150_s25  ;;  %p5156_p10 = scmp.lt.s32.totalorder %s5150_s25, %s5150_s25 }
  0x95   :  { %4163 = vmatprep.subr.bf16.mxu1 %v4850_v3  ;;  %7635 = vst [vmem:[#allocation30_spill] sm:$0xff] %v5411_v8  ;;  %v4856_v9 = vld [vmem:[#allocation8 + $0x20] sm:$0xff]   ;;  %7636 = vst [vmem:[#allocation31_spill] sm:$0xff] %v5414_v10  ;;  %v240_v12 = vld [vmem:[#allocation2 + $0x8] sm:$0xff] }
  0x96   :  { %v239_v11 = vld [vmem:[#allocation2] sm:$0xff]  ;;  %v4858_v14 = vld [vmem:[#allocation8 + $0x28] sm:$0xff]   ;;  %v5423_v20 = vld [vmem:[#allocation7 + $0x30] sm:$0xff]   ;;  %p5157_p11 = por %p5156_p10, %p5155_p9 }
  0x97   :  { %4116 = vmatpush3.bf16.msra.mxu0 %v5397_v2  ;;  %v271_v13 = vld [vmem:[#allocation5] sm:$0xff]  ;;  %v303_v15 = vpack.c.bf16 %v240_v12, %v239_v11  ;;  %v272_v16 = vld [vmem:[#allocation5 + $0x8] sm:$0xff]  ;;  %7637 = vst [vmem:[#allocation32_spill] sm:$0xff] %v5423_v20  ;;  %v4860_v22 = vld [vmem:[#allocation8 + $0x30] sm:$0xff]  }
  0x98   :  { %4164 = vmatpush3.bf16.msra.mxu1 %v4850_v3  ;;  %4117 = vmatprep.subr.bf16.mxu0 %v5403_v4  ;;  %v5417_v17 = vadd.f32 %v271_v13, %v239_v11  ;;  %v319_v18 = vpack.c.bf16 %v272_v16, %v271_v13  ;;  %v5419_v19 = vadd.f32 %v272_v16, %v240_v12  ;;  %v5429_v23 = vld [vmem:[#allocation7 + $0x38] sm:$0xff]   ;;  %v5431_v25 = vld [vmem:[#allocation2 + $0x10] sm:$0xff]  ;;  %v5441_v29 = vld [vmem:[#allocation2 + $0x20] sm:$0xff]  ;;  %p5158_p12 = pnand %p5157_p11, %p5151_p8 }
  0x99   :  { %4165 = vmatprep.subr.bf16.mxu1 %v4852_v5  ;;  %4129 = vmatprep.mubr.bf16.mxu0 %v303_v15  ;;  %7638 = vst [vmem:[#allocation33_spill] sm:$0xff] %v5429_v23  ;;  %v4862_v24 = vld [vmem:[#allocation8 + $0x38] sm:$0xff]   ;;  %v5436_v27 = vld [vmem:[#allocation5 + $0x10] sm:$0xff]  ;;  %v5443_v30 = vld [vmem:[#allocation2 + $0x28] sm:$0xff] }
  0x9a   :  { %4177 = vmatprep.mubr.bf16.mxu1 %v319_v18  ;;  %v5434_v26 = vld [vmem:[#allocation2 + $0x18] sm:$0xff]  ;;  %v5445_v31 = vld [vmem:[#allocation5 + $0x20] sm:$0xff]  ;;  %v5447_v32 = vld [vmem:[#allocation5 + $0x28] sm:$0xff]  ;;  %v305_v36 = vpack.c.bf16 %v5443_v30, %v5441_v29 }
  0x9b   :  { %4118 = vmatpush3.bf16.msra.mxu0 %v5403_v4  ;;  %v5438_v28 = vld [vmem:[#allocation5 + $0x18] sm:$0xff]  ;;  %v304_v33 = vpack.c.bf16 %v5434_v26, %v5431_v25  ;;  %v5451_v34 = vld [vmem:[#allocation10] sm:$0xff]   ;;  %v321_v37 = vpack.c.bf16 %v5447_v32, %v5445_v31  ;;  %v5461_v38 = vld [vmem:[#allocation2 + $0x30] sm:$0xff] }
  0x9c   :  { %4166 = vmatpush3.bf16.msra.mxu1 %v4852_v5  ;;  %4119 = vmatprep.subr.bf16.mxu0 %v5407_v6  ;;  %7639 = vst [vmem:[#allocation34_spill] sm:$0xff] %v5451_v34  ;;  %v320_v35 = vpack.c.bf16 %v5438_v28, %v5436_v27  ;;  %v5463_v39 = vld [vmem:[#allocation10 + $0x8] sm:$0xff]   ;;  %v5465_v40 = vld [vmem:[#allocation2 + $0x38] sm:$0xff]  ;;  %v5467_v41 = vld [vmem:[#allocation5 + $0x30] sm:$0xff] }
  0x9d   :  { %4167 = vmatprep.subr.bf16.mxu1 %v4854_v7  ;;  %7640 = vst [vmem:[#allocation35_spill] sm:$0xff] %v5463_v39  ;;  %v5469_v42 = vld [vmem:[#allocation5 + $0x38] sm:$0xff]  ;;  %v5471_v43 = vld [vmem:[#allocation2 + $0x40] sm:$0xff]  ;;  %v5473_v44 = vld [vmem:[#allocation2 + $0x48] sm:$0xff]  ;;  %v306_v48 = vpack.c.bf16 %v5465_v40, %v5461_v38 }
  0x9e   :  { %v5476_v45 = vld [vmem:[#allocation5 + $0x40] sm:$0xff]  ;;  %v5478_v46 = vld [vmem:[#allocation5 + $0x48] sm:$0xff]  ;;  %v5481_v47 = vld [vmem:[#allocation10 + $0x10] sm:$0xff]   ;;  %v322_v49 = vpack.c.bf16 %v5469_v42, %v5467_v41  ;;  %v307_v50 = vpack.c.bf16 %v5473_v44, %v5471_v43 }
  0x9f   :  { %4120 = vmatpush3.bf16.msra.mxu0 %v5407_v6  ;;  %7641 = vst [vmem:[#allocation36_spill] sm:$0xff] %v5481_v47  ;;  %v323_v51 = vpack.c.bf16 %v5478_v46, %v5476_v45  ;;  %v5492_v52 = vld [vmem:[#allocation2 + $0x50] sm:$0xff]  ;;  %v5494_v53 = vld [vmem:[#allocation2 + $0x58] sm:$0xff]  ;;  %v5503_v57 = vld [vmem:[#allocation2 + $0x60] sm:$0xff] }
  0xa0   :  { %4168 = vmatpush3.bf16.msra.mxu1 %v4854_v7  ;;  %4121 = vmatprep.subr.bf16.mxu0 %v5411_v8  ;;  %v5497_v54 = vld [vmem:[#allocation10 + $0x18] sm:$0xff]   ;;  %v5499_v55 = vld [vmem:[#allocation5 + $0x50] sm:$0xff]  ;;  %v5505_v58 = vld [vmem:[#allocation2 + $0x68] sm:$0xff]  ;;  %v308_v62 = vpack.c.bf16 %v5494_v53, %v5492_v52 }
  0xa1   :  { %4169 = vmatprep.subr.bf16.mxu1 %v4856_v9  ;;  %7642 = vst [vmem:[#allocation37_spill] sm:$0xff] %v5497_v54  ;;  %v5501_v56 = vld [vmem:[#allocation5 + $0x58] sm:$0xff]  ;;  %v5507_v59 = vld [vmem:[#allocation5 + $0x60] sm:$0xff]  ;;  %v5509_v60 = vld [vmem:[#allocation5 + $0x68] sm:$0xff]  ;;  %v309_v3 = vpack.c.bf16 %v5505_v58, %v5503_v57 }
  0xa2   :  { %v5513_v61 = vld [vmem:[#allocation10 + $0x20] sm:$0xff]   ;;  %v324_v63 = vpack.c.bf16 %v5501_v56, %v5499_v55  ;;  %v5521_v5 = vld [vmem:[#allocation10 + $0x28] sm:$0xff]   ;;  %v325_v7 = vpack.c.bf16 %v5509_v60, %v5507_v59  ;;  %v5529_v11 = vld [vmem:[#allocation2 + $0x78] sm:$0xff] }
  0xa3   :  { %4122 = vmatpush3.bf16.msra.mxu0 %v5411_v8  ;;  %7643 = vst [vmem:[#allocation38_spill] sm:$0xff] %v5513_v61  ;;  %7644 = vst [vmem:[#allocation39_spill] sm:$0xff] %v5521_v5  ;;  %v5531_v12 = vld [vmem:[#allocation5 + $0x70] sm:$0xff]  ;;  %v5533_v13 = vld [vmem:[#allocation5 + $0x78] sm:$0xff] }
  0xa4   :  { %4170 = vmatpush3.bf16.msra.mxu1 %v4856_v9  ;;  %4123 = vmatprep.subr.bf16.mxu0 %v5414_v10  ;;  %v5527_v9 = vld [vmem:[#allocation2 + $0x70] sm:$0xff]  ;;  %v5537_v15 = vld [vmem:[#allocation2 + $0x88] sm:$0xff]  ;;  %v5540_v16 = vld [vmem:[#allocation5 + $0x80] sm:$0xff] }
  0xa5   :  { %4171 = vmatprep.subr.bf16.mxu1 %v4858_v14  ;;  %v5542_v18 = vld [vmem:[#allocation5 + $0x88] sm:$0xff]  ;;  %v5586_v21 = vld [vmem:[#allocation2 + $0xb0] sm:$0xff]  ;;  %v5618_v8 = vld [vmem:[#allocation2 + $0xe0] sm:$0xff] }
  0xa6   :  { %v5600_v1 = vld [vmem:[#allocation5 + $0xc8] sm:$0xff]  ;;  %v5622_v4 = vld [vmem:[#allocation5 + $0xe0] sm:$0xff] }
  0xa7   :  { %4124 = vmatpush3.bf16.msra.mxu0 %v5414_v10  ;;  %7648 = vst [vmem:[#allocation43_spill] sm:$0xff] %v5600_v1  ;;  %v5616_v10 = vld [vmem:[#allocation5 + $0xd8] sm:$0xff]  ;;  %v5620_v6 = vld [vmem:[#allocation2 + $0xe8] sm:$0xff] }
  0xa8   :  { %4172 = vmatpush3.bf16.msra.mxu1 %v4858_v14  ;;  %4125 = vmatprep.subr.bf16.mxu0 %v5423_v20  ;;  %v5535_v14 = vld [vmem:[#allocation2 + $0x80] sm:$0xff]  ;;  %7650 = vst [vmem:[#allocation45_spill] sm:$0xff] %v5616_v10  ;;  %7651 = vst [vmem:[#allocation46_spill] sm:$0xff] %v5620_v6  ;;  %v5624_v2 = vld [vmem:[#allocation5 + $0xe8] sm:$0xff] }
  0xa9   :  { %4173 = vmatprep.subr.bf16.mxu1 %v4860_v22 }
  0xab   :  { %4126 = vmatpush3.bf16.msra.mxu0 %v5423_v20  ;;  %v5614_v20 = vld [vmem:[#allocation5 + $0xd0] sm:$0xff] }
  0xac   :  { %4174 = vmatpush3.bf16.msra.mxu1 %v4860_v22  ;;  %4127 = vmatprep.subr.bf16.mxu0 %v5429_v23  ;;  %v5545_v22 = vld [vmem:[#allocation10 + $0x30] sm:$0xff]  }
  0xad   :  { %4175 = vmatprep.subr.bf16.mxu1 %v4862_v24  ;;  %7645 = vst [vmem:[#allocation40_spill] sm:$0xff] %v5545_v22 }
  0xaf   :  { %4128 = vmatpush3.bf16.msra.mxu0 %v5429_v23  ;;  %v5612_v23 = vld [vmem:[#allocation2 + $0xd8] sm:$0xff] }
  0xb0   :  { %4176 = vmatpush3.bf16.msra.mxu1 %v4862_v24  ;;  %4209 = vmatprep.subr.bf16.mxu0 %v5451_v34  ;;  %v310_v24 = vpack.c.bf16 %v5529_v11, %v5527_v9  ;;  %7649 = vst [vmem:[#allocation44_spill] sm:$0xff] %v5612_v23 }
  0xb2   :  { %4130 = vmatmul.mubr.bf16.vlgmr.msra.gmra.mrb[0].mxu0 %v304_v33  ;;  %v326_v33 = vpack.c.bf16 %v5533_v13, %v5531_v12 }
  0xb3   :  { %4178 = vmatmul.mubr.bf16.vlgmr.msra.gmra.mrb[0].mxu1 %v320_v35  ;;  %4133 = vmatprep.mubr.bf16.mxu0 %v305_v36  ;;  %v311_v35 = vpack.c.bf16 %v5537_v15, %v5535_v14  ;;  %v327_v36 = vpack.c.bf16 %v5542_v18, %v5540_v16 }
  0xb4   :  { %4181 = vmatprep.mubr.bf16.mxu1 %v321_v37  ;;  %4210 = vmatpush3.bf16.msra.mxu0 %v5451_v34  ;;  %v5557_v37 = vld [vmem:[#allocation10 + $0x38] sm:$0xff]   ;;  %v5634_v34 = vld [vmem:[#allocation2 + $0xf0] sm:$0xff] }
  0xb5   :  { %4211 = vmatprep.subr.bf16.mxu0 %v5463_v39  ;;  %7646 = vst [vmem:[#allocation41_spill] sm:$0xff] %v5557_v37 }
  0xb8   :  { %4212 = vmatpush3.bf16.msra.mxu0 %v5463_v39  ;;  %v5598_v39 = vld [vmem:[#allocation5 + $0xc0] sm:$0xff] }
  0xb9   :  { %4213 = vmatprep.subr.bf16.mxu0 %v5481_v47 }
  0xba   :  { %4134 = vmatmul.mubr.bf16.gmra.mrb[4].mxu0 %v306_v48  ;;  %v5559_v48 = vld [vmem:[#allocation2 + $0x90] sm:$0xff] }
  0xbb   :  { %4182 = vmatmul.mubr.bf16.gmra.mrb[4].mxu1 %v322_v49  ;;  %4137 = vmatprep.mubr.bf16.mxu0 %v307_v50  ;;  %v5561_v49 = vld [vmem:[#allocation2 + $0x98] sm:$0xff]  ;;  %v5563_v50 = vld [vmem:[#allocation5 + $0x90] sm:$0xff] }
  0xbc   :  { %4185 = vmatprep.mubr.bf16.mxu1 %v323_v51  ;;  %4214 = vmatpush3.bf16.msra.mxu0 %v5481_v47  ;;  %v5565_v51 = vld [vmem:[#allocation5 + $0x98] sm:$0xff]  ;;  %v5596_v47 = vld [vmem:[#allocation2 + $0xc8] sm:$0xff] }
  0xbd   :  { %4215 = vmatprep.subr.bf16.mxu0 %v5497_v54  ;;  %7647 = vst [vmem:[#allocation42_spill] sm:$0xff] %v5596_v47 }
  0xc0   :  { %4216 = vmatpush3.bf16.msra.mxu0 %v5497_v54  ;;  %v5594_v54 = vld [vmem:[#allocation2 + $0xc0] sm:$0xff] }
  0xc1   :  { %4217 = vmatprep.subr.bf16.mxu0 %v5513_v61 }
  0xc2   :  { %4138 = vmatmul.mubr.bf16.gmra.mrb[8].mxu0 %v308_v62  ;;  %v5567_v62 = vld [vmem:[#allocation2 + $0xa0] sm:$0xff] }
  0xc3   :  { %4186 = vmatmul.mubr.bf16.gmra.mrb[8].mxu1 %v324_v63  ;;  %4141 = vmatprep.mubr.bf16.mxu0 %v309_v3  ;;  %v5569_v63 = vld [vmem:[#allocation2 + $0xa8] sm:$0xff]  ;;  %v5572_v3 = vld [vmem:[#allocation5 + $0xa0] sm:$0xff] }
  0xc4   :  { %4189 = vmatprep.mubr.bf16.mxu1 %v325_v7  ;;  %4218 = vmatpush3.bf16.msra.mxu0 %v5513_v61  ;;  %v5574_v7 = vld [vmem:[#allocation5 + $0xa8] sm:$0xff]  ;;  %v5592_v61 = vld [vmem:[#allocation5 + $0xb8] sm:$0xff] }
  0xc5   :  { %4219 = vmatprep.subr.bf16.mxu0 %v5521_v5 }
  0xc8   :  { %4220 = vmatpush3.bf16.msra.mxu0 %v5521_v5  ;;  %v5590_v5 = vld [vmem:[#allocation5 + $0xb0] sm:$0xff] }
  0xc9   :  { %4221 = vmatprep.subr.bf16.mxu0 %v5545_v22 }
  0xca   :  { %4142 = vmatmul.mubr.bf16.gmra.mrb[12].mxu0 %v310_v24  ;;  %v312_v24 = vpack.c.bf16 %v5561_v49, %v5559_v48 }
  0xcb   :  { %4190 = vmatmul.mubr.bf16.gmra.mrb[12].mxu1 %v326_v33  ;;  %4145 = vmatprep.mubr.bf16.mxu0 %v311_v35  ;;  %v328_v33 = vpack.c.bf16 %v5565_v51, %v5563_v50  ;;  %v313_v35 = vpack.c.bf16 %v5569_v63, %v5567_v62 }
  0xcc   :  { %4193 = vmatprep.mubr.bf16.mxu1 %v327_v36  ;;  %4222 = vmatpush3.bf16.msra.mxu0 %v5545_v22  ;;  %v329_v36 = vpack.c.bf16 %v5574_v7, %v5572_v3  ;;  %v5588_v22 = vld [vmem:[#allocation2 + $0xb8] sm:$0xff] }
  0xcd   :  { %4223 = vmatprep.subr.bf16.mxu0 %v5557_v37 }
  0xd0   :  { %4224 = vmatpush3.bf16.msra.mxu0 %v5557_v37  ;;  %v5610_v37 = vld [vmem:[#allocation2 + $0xd0] sm:$0xff] }
  0xd2   :  { %4146 = vmatmul.mubr.bf16.gmra.mrb[16].mxu0 %v312_v24  ;;  %v314_v24 = vpack.c.bf16 %v5588_v22, %v5586_v21 }
  0xd3   :  { %4194 = vmatmul.mubr.bf16.gmra.mrb[16].mxu1 %v328_v33  ;;  %4149 = vmatprep.mubr.bf16.mxu0 %v313_v35  ;;  %v330_v33 = vpack.c.bf16 %v5592_v61, %v5590_v5  ;;  %v315_v35 = vpack.c.bf16 %v5596_v47, %v5594_v54  ;;  %v5638_v47 = vld [vmem:[#allocation5 + $0xf0] sm:$0xff] }
  0xd4   :  { %4197 = vmatprep.mubr.bf16.mxu1 %v329_v36  ;;  %v331_v36 = vpack.c.bf16 %v5600_v1, %v5598_v39  ;;  %v5636_v1 = vld [vmem:[#allocation2 + $0xf8] sm:$0xff]  ;;  %7653 = vst [vmem:[#allocation48_spill] sm:$0xff] %v5638_v47 }
  0xd5   :  { %7652 = vst [vmem:[#allocation47_spill] sm:$0xff] %v5636_v1 }
  0xda   :  { %4150 = vmatmul.mubr.bf16.gmra.mrb[20].mxu0 %v314_v24  ;;  %v316_v24 = vpack.c.bf16 %v5612_v23, %v5610_v37  ;;  %v5640_v23 = vld [vmem:[#allocation5 + $0xf8] sm:$0xff] }
  0xdb   :  { %4198 = vmatmul.mubr.bf16.gmra.mrb[20].mxu1 %v330_v33  ;;  %4153 = vmatprep.mubr.bf16.mxu0 %v315_v35  ;;  %v332_v33 = vpack.c.bf16 %v5616_v10, %v5614_v20  ;;  %v317_v35 = vpack.c.bf16 %v5620_v6, %v5618_v8  ;;  %7654 = vst [vmem:[#allocation49_spill] sm:$0xff] %v5640_v23 }
  0xdc   :  { %4201 = vmatprep.mubr.bf16.mxu1 %v331_v36  ;;  %v333_v36 = vpack.c.bf16 %v5624_v2, %v5622_v4  ;;  %v318_v10 = vpack.c.bf16 %v5636_v1, %v5634_v34  ;;  %v334_v6 = vpack.c.bf16 %v5640_v23, %v5638_v47  ;;  %v340_v1 = vadd.f32 %v5447_v32, %v5443_v30 }
  0xdd   :  { %v349_v30 = vadd.f32 %v5531_v12, %v5527_v9  ;;  %v351_v32 = vadd.f32 %v5540_v16, %v5535_v14  ;;  %v361_v9 = vadd.f32 %v5614_v20, %v5610_v37  ;;  %v7659_v12 = vld [vmem:[#allocation45_spill] sm:$0xff]  ;;  %v7661_v14 = vld [vmem:[#allocation48_spill] sm:$0xff]  ;;  %v7662_v16 = vld [vmem:[#allocation47_spill] sm:$0xff] }
  0xde   :  { %v7664_v37 = vld [vmem:[#allocation34_spill] sm:$0xff] }
  0xe2   :  { %4154 = vmatmul.mubr.bf16.gmra.mrb[24].mxu0 %v316_v24  ;;  %v337_v24 = vadd.f32 %v5436_v27, %v5431_v25  ;;  %v341_v25 = vadd.f32 %v5467_v41, %v5461_v38  ;;  %v348_v27 = vadd.f32 %v5509_v60, %v5505_v58  ;;  %v352_v38 = vadd.f32 %v5542_v18, %v5537_v15  ;;  %v7663_v18 = vld [vmem:[#allocation49_spill] sm:$0xff] }
  0xe3   :  { %4202 = vmatmul.mubr.bf16.gmra.mrb[24].mxu1 %v332_v33  ;;  %4157 = vmatprep.mubr.bf16.mxu0 %v317_v35  ;;  %v338_v33 = vadd.f32 %v5438_v28, %v5434_v26  ;;  %v7655_v35 = vpack.c.bf16 %v5419_v19, %v5417_v17  ;;  %v344_v17 = vadd.f32 %v5478_v46, %v5473_v44 }
  0xe4   :  { %4205 = vmatprep.mubr.bf16.mxu1 %v333_v36  ;;  %v339_v36 = vadd.f32 %v5445_v31, %v5441_v29  ;;  %v350_v31 = vadd.f32 %v5533_v13, %v5529_v11  ;;  %v375_v41 = vpack.c.bf16 %v352_v38, %v351_v32  ;;  %v355_v44 = vadd.f32 %v5572_v3, %v5567_v62  ;;  %v7658_v11 = vld [vmem:[#allocation44_spill] sm:$0xff] }
  0xe5   :  { %v368_v23 = vpack.c.bf16 %v338_v33, %v337_v24  ;;  %v362_v13 = vadd.f32 %v7659_v12, %v7658_v11  ;;  %v365_v15 = vadd.f32 %v7661_v14, %v5634_v34 }
  0xe6   :  { %v369_v47 = vpack.c.bf16 %v340_v1, %v339_v36  ;;  %v346_v1 = vadd.f32 %v5501_v56, %v5494_v53  ;;  %v358_v53 = vadd.f32 %v5592_v61, %v5588_v22  ;;  %v7656_v56 = vld [vmem:[#allocation42_spill] sm:$0xff]  ;;  %v366_v22 = vadd.f32 %v7663_v18, %v7662_v16 }
  0xe7   :  { %v7660_v61 = vld [vmem:[#allocation46_spill] sm:$0xff] }
  0xe8   :  { %v382_v20 = vpack.c.bf16 %v366_v22, %v365_v15 }
  0xea   :  { %4158 = vmatmul.mubr.bf16.gmra.mrb[28].mxu0 %v318_v10  ;;  %v343_v10 = vadd.f32 %v5476_v45, %v5471_v43  ;;  %v354_v43 = vadd.f32 %v5565_v51, %v5561_v49  ;;  %v356_v45 = vadd.f32 %v5574_v7, %v5569_v63 }
  0xeb   :  { %4206 = vmatmul.mubr.bf16.gmra.mrb[28].mxu1 %v334_v6  ;;  %4225 = vmatprep.mubr.bf16.mxu0 %v7655_v35  ;;  %v342_v6 = vadd.f32 %v5469_v42, %v5465_v40  ;;  %v374_v40 = vpack.c.bf16 %v350_v31, %v349_v30  ;;  %v353_v42 = vadd.f32 %v5563_v50, %v5559_v48 }
  0xec   :  { %4273 = vmatprep.mubr.bf16.mxu1 %v5392_v0  ;;  %v371_v26 = vpack.c.bf16 %v344_v17, %v343_v10  ;;  %v345_v0 = vadd.f32 %v5499_v55, %v5492_v52  ;;  %v357_v52 = vadd.f32 %v5590_v5, %v5586_v21  ;;  %v359_v55 = vadd.f32 %v5598_v39, %v5594_v54 }
  0xed   :  { %v370_v19 = vpack.c.bf16 %v342_v6, %v341_v25  ;;  %v376_v46 = vpack.c.bf16 %v354_v43, %v353_v42  ;;  %v363_v21 = vadd.f32 %v5622_v4, %v5618_v8  ;;  %v364_v5 = vadd.f32 %v5624_v2, %v7660_v61 }
  0xee   :  { %v372_v28 = vpack.c.bf16 %v346_v1, %v345_v0  ;;  %v380_v39 = vpack.c.bf16 %v362_v13, %v361_v9 }
  0xef   :  { %v381_v54 = vpack.c.bf16 %v364_v5, %v363_v21 }
  0xf2   :  { %4226 = vmatmul.mubr.bf16.vlgmr.msra.gmra.mrb[32].mxu0 %v368_v23  ;;  %v347_v23 = vadd.f32 %v5507_v59, %v5503_v57  ;;  %v7657_v57 = vld [vmem:[#allocation43_spill] sm:$0xff]  ;;  %v378_v59 = vpack.c.bf16 %v358_v53, %v357_v52 }
  0xf3   :  { %4229 = vmatprep.mubr.bf16.mxu0 %v369_v47  ;;  %v377_v47 = vpack.c.bf16 %v356_v45, %v355_v44  ;;  %v360_v58 = vadd.f32 %v7657_v57, %v7656_v56 }
  0xf4   :  { %v373_v29 = vpack.c.bf16 %v348_v27, %v347_v23 }
  0xf5   :  { %v379_v60 = vpack.c.bf16 %v360_v58, %v359_v55 }
  0xfa   :  { %4230 = vmatmul.mubr.bf16.gmra.mrb[36].mxu0 %v370_v19 }
  0xfb   :  { %4233 = vmatprep.mubr.bf16.mxu0 %v371_v26 }
 0x102   :  { %4234 = vmatmul.mubr.bf16.gmra.mrb[40].mxu0 %v372_v28 }
 0x103   :  { %4237 = vmatprep.mubr.bf16.mxu0 %v373_v29 }
 0x10a   :  { %4238 = vmatmul.mubr.bf16.gmra.mrb[44].mxu0 %v374_v40 }
 0x10b   :  { %4241 = vmatprep.mubr.bf16.mxu0 %v375_v41 }
 0x112   :  { %4242 = vmatmul.mubr.bf16.gmra.mrb[48].mxu0 %v376_v46 }
 0x113   :  { %4245 = vmatprep.mubr.bf16.mxu0 %v377_v47 }
 0x11a   :  { %4246 = vmatmul.mubr.bf16.gmra.mrb[52].mxu0 %v378_v59 }
 0x11b   :  { %4249 = vmatprep.mubr.bf16.mxu0 %v379_v60 }
 0x122   :  { %4250 = vmatmul.mubr.bf16.gmra.mrb[56].mxu0 %v380_v39 }
 0x123   :  { %4253 = vmatprep.mubr.bf16.mxu0 %v381_v54 }
 0x12a   :  { %4254 = vmatmul.mubr.bf16.gmra.mrb[60].mxu0 %v382_v20 }
 0x12b   :  { %4337 = vmatprep.mubr.bf16.mxu0 %v7664_v37 }
 0x185   :  { %v5711_v48 = vpop.f32.mrb[0].mxu0 }
 0x186   :  { %v5713_v4 = vpop.f32.mrb[0].mxu1  ;;  %v5715_v8 = vpop.f32.mrb[1].mxu0 }
 0x187   :  { %v5719_v2 = vsub.f32 %v5711_v48, %v5713_v4  ;;  %v5721_v49 = vpop.f32.mrb[1].mxu1  ;;  %v5723_v34 = vpop.f32.mrb[2].mxu0 }
 0x188   :  { %v5727_v50 = vsub.f32 %v5715_v8, %v5721_v49  ;;  %v5729_v51 = vpop.f32.mrb[2].mxu1  ;;  %v5731_v62 = vpop.f32.mrb[3].mxu0 }
 0x189   :  { %v5735_v63 = vsub.f32 %v5723_v34, %v5729_v51  ;;  %v5737_v3 = vpop.f32.mrb[3].mxu1 }
 0x18a   :  { %v5741_v7 = vsub.f32 %v5731_v62, %v5737_v3 }
 0x18b   :  { %v1107_v35 = vpack.c.bf16 %v5735_v63, %v5719_v2 }
 0x18c   :  { %v1106_v24 = vpack.c.bf16 %v5741_v7, %v5727_v50 }
 0x18d   :  { %v5745_v33 = vpop.f32.mrb[4].mxu0 }
 0x18e   :  { %v5749_v36 = vpop.f32.mrb[4].mxu1  ;;  %4257 = vmatprep.subr.bf16.mxu1 %v1106_v24  ;;  %v5751_v25 = vpop.f32.mrb[5].mxu0 }
 0x18f   :  { %v5755_v6 = vsub.f32 %v5745_v33, %v5749_v36  ;;  %v5757_v10 = vpop.f32.mrb[5].mxu1  ;;  %4258 = vmatpush3.bf16.msra.mxu1 %v1106_v24  ;;  %v5759_v17 = vpop.f32.mrb[6].mxu0 }
 0x190   :  { %v5763_v19 = vsub.f32 %v5751_v25, %v5757_v10  ;;  %v5765_v26 = vpop.f32.mrb[6].mxu1  ;;  %4259 = vmatprep.subr.bf16.mxu1 %v1107_v35  ;;  %v5767_v0 = vpop.f32.mrb[7].mxu0 }
 0x191   :  { %v5771_v1 = vsub.f32 %v5759_v17, %v5765_v26  ;;  %v5773_v23 = vpop.f32.mrb[7].mxu1 }
 0x192   :  { %v5777_v27 = vsub.f32 %v5767_v0, %v5773_v23 }
 0x193   :  { %4260 = vmatpush3.bf16.msra.mxu1 %v1107_v35  ;;  %v1109_v30 = vpack.c.bf16 %v5771_v1, %v5755_v6 }
 0x194   :  { %v1108_v28 = vpack.c.bf16 %v5777_v27, %v5763_v19 }
 0x195   :  { %v5781_v29 = vpop.f32.mrb[8].mxu0 }
 0x196   :  { %v5785_v31 = vpop.f32.mrb[8].mxu1  ;;  %4261 = vmatprep.subr.bf16.mxu1 %v1108_v28  ;;  %v5787_v32 = vpop.f32.mrb[9].mxu0 }
 0x197   :  { %v5791_v38 = vsub.f32 %v5781_v29, %v5785_v31  ;;  %v5793_v40 = vpop.f32.mrb[9].mxu1  ;;  %4262 = vmatpush3.bf16.msra.mxu1 %v1108_v28  ;;  %v5795_v41 = vpop.f32.mrb[10].mxu0 }
 0x198   :  { %v5799_v42 = vsub.f32 %v5787_v32, %v5793_v40  ;;  %v5801_v43 = vpop.f32.mrb[10].mxu1  ;;  %4263 = vmatprep.subr.bf16.mxu1 %v1109_v30  ;;  %v5803_v44 = vpop.f32.mrb[11].mxu0 }
 0x199   :  { %v5807_v45 = vsub.f32 %v5795_v41, %v5801_v43  ;;  %v5809_v46 = vpop.f32.mrb[11].mxu1 }
 0x19a   :  { %v5813_v47 = vsub.f32 %v5803_v44, %v5809_v46 }
 0x19b   :  { %4264 = vmatpush3.bf16.msra.mxu1 %v1109_v30  ;;  %v1111_v55 = vpack.c.bf16 %v5807_v45, %v5791_v38 }
 0x19c   :  { %v1110_v52 = vpack.c.bf16 %v5813_v47, %v5799_v42 }
 0x19d   :  { %v5817_v53 = vpop.f32.mrb[12].mxu0 }
 0x19e   :  { %v5821_v56 = vpop.f32.mrb[12].mxu1  ;;  %4265 = vmatprep.subr.bf16.mxu1 %v1110_v52  ;;  %v5823_v57 = vpop.f32.mrb[13].mxu0 }
 0x19f   :  { %v5827_v58 = vsub.f32 %v5817_v53, %v5821_v56  ;;  %v5829_v59 = vpop.f32.mrb[13].mxu1  ;;  %4266 = vmatpush3.bf16.msra.mxu1 %v1110_v52  ;;  %v5831_v60 = vpop.f32.mrb[14].mxu0 }
 0x1a0   :  { %v5835_v9 = vsub.f32 %v5823_v57, %v5829_v59  ;;  %v5837_v11 = vpop.f32.mrb[14].mxu1  ;;  %4267 = vmatprep.subr.bf16.mxu1 %v1111_v55  ;;  %v5839_v12 = vpop.f32.mrb[15].mxu0 }
 0x1a1   :  { %v5843_v13 = vsub.f32 %v5831_v60, %v5837_v11  ;;  %v5845_v21 = vpop.f32.mrb[15].mxu1 }
 0x1a2   :  { %v5849_v61 = vsub.f32 %v5839_v12, %v5845_v21 }
 0x1a3   :  { %4268 = vmatpush3.bf16.msra.mxu1 %v1111_v55  ;;  %v1113_v54 = vpack.c.bf16 %v5843_v13, %v5827_v58 }
 0x1a4   :  { %v1112_v5 = vpack.c.bf16 %v5849_v61, %v5835_v9 }
 0x1a5   :  { %v5853_v39 = vpop.f32.mrb[16].mxu0 }
 0x1a6   :  { %v5857_v14 = vpop.f32.mrb[16].mxu1  ;;  %4269 = vmatprep.subr.bf16.mxu1 %v1112_v5  ;;  %v5859_v15 = vpop.f32.mrb[17].mxu0 }
 0x1a7   :  { %7665 = vst [vmem:[#allocation42_spill] sm:$0xff] %v5857_v14  ;;  %7666 = vst [vmem:[#allocation43_spill] sm:$0xff] %v5859_v15  ;;  %v5863_v16 = vsub.f32 %v5853_v39, %v5857_v14  ;;  %v5865_v18 = vpop.f32.mrb[17].mxu1  ;;  %4270 = vmatpush3.bf16.msra.mxu1 %v1112_v5  ;;  %v5867_v22 = vpop.f32.mrb[18].mxu0 }
 0x1a8   :  { %7668 = vst [vmem:[#allocation45_spill] sm:$0xff] %v5865_v18  ;;  %7669 = vst [vmem:[#allocation46_spill] sm:$0xff] %v5867_v22  ;;  %v5871_v20 = vsub.f32 %v5859_v15, %v5865_v18  ;;  %v5873_v37 = vpop.f32.mrb[18].mxu1  ;;  %4271 = vmatprep.subr.bf16.mxu1 %v1113_v54  ;;  %v5875_v24 = vpop.f32.mrb[19].mxu0  ;;  %v7725_v15 = vld [vmem:[#allocation26_spill] sm:$0xff] }
 0x1a9   :  { %7667 = vst [vmem:[#allocation44_spill] sm:$0xff] %v5863_v16  ;;  %7671 = vst [vmem:[#allocation47_spill] sm:$0xff] %v5873_v37  ;;  %v5879_v35 = vsub.f32 %v5867_v22, %v5873_v37  ;;  %v5881_v28 = vpop.f32.mrb[19].mxu1  ;;  %v7681_v22 = vld [vmem:[#allocation27_spill] sm:$0xff] }
 0x1aa   :  { %7670 = vst [vmem:[#allocation48_spill] sm:$0xff] %v5871_v20  ;;  %7672 = vst [vmem:[#allocation49_spill] sm:$0xff] %v5875_v24  ;;  %v5885_v30 = vsub.f32 %v5875_v24, %v5881_v28 }
 0x1ab   :  { %7673 = vst [vmem:[#allocation34_spill] sm:$0xff] %v5879_v35  ;;  %7674 = vst [vmem:[#allocation50_spill] sm:$0xff] %v5881_v28  ;;  %v5889_v52 = vpack.c.bf16 %v5879_v35, %v5863_v16  ;;  %4272 = vmatpush3.bf16.msra.mxu1 %v1113_v54  ;;  %v7685_v54 = vld [vmem:[#allocation28_spill] sm:$0xff] }
 0x1ac   :  { %7675 = vst [vmem:[#allocation51_spill] sm:$0xff] %v5885_v30  ;;  %v5893_v55 = vpack.c.bf16 %v5885_v30, %v5871_v20 }
 0x1ad   :  { %7676 = vst [vmem:[#allocation52_spill] sm:$0xff] %v5889_v52  ;;  %v5895_v5 = vpop.f32.mrb[20].mxu0 }
 0x1ae   :  { %7677 = vst [vmem:[#allocation53_spill] sm:$0xff] %v5893_v55  ;;  %7678 = vst [vmem:[#allocation54_spill] sm:$0xff] %v5895_v5  ;;  %v5897_v18 = vpop.f32.mrb[20].mxu1  ;;  %v5899_v37 = vpop.f32.mrb[21].mxu0  ;;  %4274 = vmatmul.mubr.bf16.vlgmr.msra.gmra.mrb[32].mxu1 %v7681_v22 }
 0x1af   :  { %7679 = vst [vmem:[#allocation55_spill] sm:$0xff] %v5897_v18  ;;  %7680 = vst [vmem:[#allocation56_spill] sm:$0xff] %v5899_v37  ;;  %v5904_v28 = vsub.f32 %v5895_v5, %v5897_v18  ;;  %v5906_v24 = vpop.f32.mrb[21].mxu1  ;;  %v5908_v52 = vpop.f32.mrb[22].mxu0  ;;  %4277 = vmatprep.mubr.bf16.mxu1 %v7685_v54 }
 0x1b0   :  { %7683 = vst [vmem:[#allocation57_spill] sm:$0xff] %v5906_v24  ;;  %7684 = vst [vmem:[#allocation58_spill] sm:$0xff] %v5908_v52  ;;  %v5913_v55 = vsub.f32 %v5899_v37, %v5906_v24  ;;  %v5915_v30 = vpop.f32.mrb[22].mxu1  ;;  %v5917_v35 = vpop.f32.mrb[23].mxu0 }
 0x1b1   :  { %7682 = vst [vmem:[#allocation27_spill] sm:$0xff] %v5904_v28  ;;  %7687 = vst [vmem:[#allocation59_spill] sm:$0xff] %v5915_v30  ;;  %v5921_v22 = vsub.f32 %v5908_v52, %v5915_v30  ;;  %v5923_v18 = vpop.f32.mrb[23].mxu1  ;;  %v7697_v52 = vld [vmem:[#allocation29_spill] sm:$0xff] }
 0x1b2   :  { %7686 = vst [vmem:[#allocation28_spill] sm:$0xff] %v5913_v55  ;;  %7688 = vst [vmem:[#allocation60_spill] sm:$0xff] %v5917_v35  ;;  %v5927_v5 = vsub.f32 %v5917_v35, %v5923_v18 }
 0x1b3   :  { %7689 = vst [vmem:[#allocation61_spill] sm:$0xff] %v5921_v22  ;;  %7690 = vst [vmem:[#allocation62_spill] sm:$0xff] %v5923_v18  ;;  %v5931_v54 = vpack.c.bf16 %v5921_v22, %v5904_v28 }
 0x1b4   :  { %7691 = vst [vmem:[#allocation63_spill] sm:$0xff] %v5927_v5  ;;  %v5935_v24 = vpack.c.bf16 %v5927_v5, %v5913_v55 }
 0x1b5   :  { %7692 = vst [vmem:[#allocation64_spill] sm:$0xff] %v5931_v54  ;;  %v5937_v37 = vpop.f32.mrb[24].mxu0  ;;  %v7701_v54 = vld [vmem:[#allocation30_spill] sm:$0xff] }
 0x1b6   :  { %7693 = vst [vmem:[#allocation65_spill] sm:$0xff] %v5935_v24  ;;  %7694 = vst [vmem:[#allocation66_spill] sm:$0xff] %v5937_v37  ;;  %v5939_v20 = vpop.f32.mrb[24].mxu1  ;;  %v5941_v30 = vpop.f32.mrb[25].mxu0  ;;  %4278 = vmatmul.mubr.bf16.gmra.mrb[36].mxu1 %v7697_v52 }
 0x1b7   :  { %7695 = vst [vmem:[#allocation67_spill] sm:$0xff] %v5939_v20  ;;  %7696 = vst [vmem:[#allocation68_spill] sm:$0xff] %v5941_v30  ;;  %v5946_v18 = vsub.f32 %v5937_v37, %v5939_v20  ;;  %v5948_v35 = vpop.f32.mrb[25].mxu1  ;;  %v5950_v22 = vpop.f32.mrb[26].mxu0  ;;  %4281 = vmatprep.mubr.bf16.mxu1 %v7701_v54 }
 0x1b8   :  { %7699 = vst [vmem:[#allocation69_spill] sm:$0xff] %v5948_v35  ;;  %7700 = vst [vmem:[#allocation70_spill] sm:$0xff] %v5950_v22  ;;  %v5955_v24 = vsub.f32 %v5941_v30, %v5948_v35  ;;  %v5957_v5 = vpop.f32.mrb[26].mxu1  ;;  %v5959_v55 = vpop.f32.mrb[27].mxu0 }
 0x1b9   :  { %7698 = vst [vmem:[#allocation29_spill] sm:$0xff] %v5946_v18  ;;  %7703 = vst [vmem:[#allocation71_spill] sm:$0xff] %v5957_v5  ;;  %v5963_v52 = vsub.f32 %v5950_v22, %v5957_v5  ;;  %v5965_v20 = vpop.f32.mrb[27].mxu1  ;;  %v7713_v22 = vld [vmem:[#allocation31_spill] sm:$0xff] }
 0x1ba   :  { %7702 = vst [vmem:[#allocation30_spill] sm:$0xff] %v5955_v24  ;;  %7704 = vst [vmem:[#allocation72_spill] sm:$0xff] %v5959_v55  ;;  %v5969_v37 = vsub.f32 %v5959_v55, %v5965_v20 }
 0x1bb   :  { %7705 = vst [vmem:[#allocation73_spill] sm:$0xff] %v5963_v52  ;;  %7706 = vst [vmem:[#allocation74_spill] sm:$0xff] %v5965_v20  ;;  %v5973_v54 = vpack.c.bf16 %v5963_v52, %v5946_v18 }
 0x1bc   :  { %7707 = vst [vmem:[#allocation75_spill] sm:$0xff] %v5969_v37  ;;  %v5977_v35 = vpack.c.bf16 %v5969_v37, %v5955_v24 }
 0x1bd   :  { %7708 = vst [vmem:[#allocation76_spill] sm:$0xff] %v5973_v54  ;;  %v5979_v30 = vpop.f32.mrb[28].mxu0  ;;  %v7717_v54 = vld [vmem:[#allocation32_spill] sm:$0xff] }
 0x1be   :  { %7709 = vst [vmem:[#allocation77_spill] sm:$0xff] %v5977_v35  ;;  %7710 = vst [vmem:[#allocation78_spill] sm:$0xff] %v5979_v30  ;;  %v5981_v28 = vpop.f32.mrb[28].mxu1  ;;  %v5983_v5 = vpop.f32.mrb[29].mxu0  ;;  %4282 = vmatmul.mubr.bf16.gmra.mrb[40].mxu1 %v7713_v22 }
 0x1bf   :  { %7711 = vst [vmem:[#allocation79_spill] sm:$0xff] %v5981_v28  ;;  %7712 = vst [vmem:[#allocation80_spill] sm:$0xff] %v5983_v5  ;;  %v5988_v20 = vsub.f32 %v5979_v30, %v5981_v28  ;;  %v5990_v55 = vpop.f32.mrb[29].mxu1  ;;  %v5992_v52 = vpop.f32.mrb[30].mxu0  ;;  %4285 = vmatprep.mubr.bf16.mxu1 %v7717_v54 }
 0x1c0   :  { %7715 = vst [vmem:[#allocation81_spill] sm:$0xff] %v5990_v55  ;;  %7716 = vst [vmem:[#allocation82_spill] sm:$0xff] %v5992_v52  ;;  %v5997_v35 = vsub.f32 %v5983_v5, %v5990_v55  ;;  %v5999_v37 = vpop.f32.mrb[30].mxu1  ;;  %v6001_v24 = vpop.f32.mrb[31].mxu0 }
 0x1c1   :  { %7714 = vst [vmem:[#allocation31_spill] sm:$0xff] %v5988_v20  ;;  %7718 = vst [vmem:[#allocation32_spill] sm:$0xff] %v5999_v37  ;;  %v6005_v22 = vsub.f32 %v5992_v52, %v5999_v37  ;;  %v6007_v28 = vpop.f32.mrb[31].mxu1  ;;  %v7724_v37 = vld [vmem:[#allocation33_spill] sm:$0xff] }
 0x1c2   :  { %7720 = vst [vmem:[#allocation84_spill] sm:$0xff] %v6007_v28  ;;  %v6011_v30 = vsub.f32 %v6001_v24, %v6007_v28 }
 0x1c3   :  { %7719 = vst [vmem:[#allocation83_spill] sm:$0xff] %v6005_v22  ;;  %v6015_v54 = vpack.c.bf16 %v6005_v22, %v5988_v20 }
 0x1c4   :  { %7721 = vst [vmem:[#allocation85_spill] sm:$0xff] %v6011_v30  ;;  %v6019_v55 = vpack.c.bf16 %v6011_v30, %v5997_v35 }
 0x1c5   :  { %7722 = vst [vmem:[#allocation86_spill] sm:$0xff] %v6015_v54  ;;  %v4227_v5 = vpop.f32.mrb[32].mxu0 }
 0x1c6   :  { %7723 = vst [vmem:[#allocation87_spill] sm:$0xff] %v6019_v55  ;;  %v1044_v18 = vsub.f32 %v4227_v5, %v5711_v48  ;;  %v883_v16 = vpop.f32.mrb[33].mxu0  ;;  %4286 = vmatmul.mubr.bf16.gmra.mrb[44].mxu1 %v7724_v37 }
 0x1c7   :  { %v1042_v52 = vsub.f32 %v883_v16, %v5715_v8  ;;  %v4228_v14 = vpop.f32.mrb[34].mxu0  ;;  %4305 = vmatprep.mubr.bf16.mxu1 %v7725_v15 }
 0x1c8   :  { %v1076_v28 = vsub.f32 %v1044_v18, %v5713_v4  ;;  %v1045_v22 = vsub.f32 %v4228_v14, %v5723_v34  ;;  %v886_v54 = vpop.f32.mrb[35].mxu0 }
 0x1c9   :  { %v1074_v20 = vsub.f32 %v1042_v52, %v5721_v49  ;;  %v1043_v55 = vsub.f32 %v886_v54, %v5731_v62 }
 0x1ca   :  { %v1140_v30 = vadd.f32 %v1076_v28, %v5719_v2  ;;  %v1077_v48 = vsub.f32 %v1045_v22, %v5729_v51 }
 0x1cb   :  { %v1138_v37 = vadd.f32 %v1074_v20, %v5727_v50  ;;  %v1075_v8 = vsub.f32 %v1043_v55, %v5737_v3 }
 0x1cc   :  { %v1141_v16 = vadd.f32 %v1077_v48, %v5735_v63  ;;  %v1123_v15 = vpack.c.bf16 %v1077_v48, %v1076_v28 }
 0x1cd   :  { %v1139_v4 = vadd.f32 %v1075_v8, %v5741_v7  ;;  %v4231_v18 = vpop.f32.mrb[36].mxu0  ;;  %v1122_v34 = vpack.c.bf16 %v1075_v8, %v1074_v20 }
 0x1ce   :  { %v1048_v14 = vsub.f32 %v4231_v18, %v5745_v33  ;;  %v899_v49 = vpop.f32.mrb[37].mxu0  ;;  %v1171_v5 = vpack.c.bf16 %v1141_v16, %v1140_v30 }
 0x1cf   :  { %v1046_v62 = vsub.f32 %v899_v49, %v5751_v25  ;;  %v4232_v2 = vpop.f32.mrb[38].mxu0  ;;  %4289 = vmatprep.subr.bf16.mxu1 %v1122_v34  ;;  %v1170_v51 = vpack.c.bf16 %v1139_v4, %v1138_v37 }
 0x1d0   :  { %v1080_v50 = vsub.f32 %v1048_v14, %v5749_v36  ;;  %v1049_v3 = vsub.f32 %v4232_v2, %v5759_v17  ;;  %v902_v55 = vpop.f32.mrb[39].mxu0  ;;  %4290 = vmatpush3.bf16.msra.mxu1 %v1122_v34 }
 0x1d1   :  { %v1078_v63 = vsub.f32 %v1046_v62, %v5757_v10  ;;  %v1047_v7 = vsub.f32 %v902_v55, %v5767_v0  ;;  %4291 = vmatprep.subr.bf16.mxu1 %v1123_v15  ;;  %4321 = vmatprep.subr.bf16.mxu0 %v1170_v51 }
 0x1d2   :  { %v1144_v33 = vadd.f32 %v1080_v50, %v5755_v6  ;;  %v1081_v20 = vsub.f32 %v1049_v3, %v5765_v26  ;;  %4322 = vmatpush3.bf16.msra.mxu0 %v1170_v51 }
 0x1d3   :  { %v1142_v25 = vadd.f32 %v1078_v63, %v5763_v19  ;;  %v1079_v28 = vsub.f32 %v1047_v7, %v5773_v23  ;;  %4323 = vmatprep.subr.bf16.mxu0 %v1171_v5  ;;  %v7728_v7 = vld [vmem:[#allocation46_spill] sm:$0xff] }
 0x1d4   :  { %v1145_v36 = vadd.f32 %v1081_v20, %v5771_v1  ;;  %4292 = vmatpush3.bf16.msra.mxu1 %v1123_v15  ;;  %v1125_v17 = vpack.c.bf16 %v1081_v20, %v1080_v50  ;;  %v7729_v20 = vld [vmem:[#allocation45_spill] sm:$0xff] }
 0x1d5   :  { %v1143_v10 = vadd.f32 %v1079_v28, %v5777_v27  ;;  %v4235_v30 = vpop.f32.mrb[40].mxu0  ;;  %v1124_v0 = vpack.c.bf16 %v1079_v28, %v1078_v63 }
 0x1d6   :  { %v1052_v52 = vsub.f32 %v4235_v30, %v5781_v29  ;;  %v915_v22 = vpop.f32.mrb[41].mxu0  ;;  %4324 = vmatpush3.bf16.msra.mxu0 %v1171_v5  ;;  %v1173_v6 = vpack.c.bf16 %v1145_v36, %v1144_v33  ;;  %v7733_v30 = vld [vmem:[#allocation48_spill] sm:$0xff] }
 0x1d7   :  { %v1050_v26 = vsub.f32 %v915_v22, %v5787_v32  ;;  %v4236_v54 = vpop.f32.mrb[42].mxu0  ;;  %4293 = vmatprep.subr.bf16.mxu1 %v1124_v0  ;;  %v1172_v19 = vpack.c.bf16 %v1143_v10, %v1142_v25  ;;  %v7730_v25 = vld [vmem:[#allocation49_spill] sm:$0xff] }
 0x1d8   :  { %v1084_v23 = vsub.f32 %v1052_v52, %v5785_v31  ;;  %v1053_v1 = vsub.f32 %v4236_v54, %v5795_v41  ;;  %v918_v48 = vpop.f32.mrb[43].mxu0  ;;  %4294 = vmatpush3.bf16.msra.mxu1 %v1124_v0  ;;  %v7734_v52 = vld [vmem:[#allocation50_spill] sm:$0xff] }
 0x1d9   :  { %v1082_v27 = vsub.f32 %v1050_v26, %v5793_v40  ;;  %v1051_v37 = vsub.f32 %v918_v48, %v5803_v44  ;;  %4295 = vmatprep.subr.bf16.mxu1 %v1125_v17  ;;  %4325 = vmatprep.subr.bf16.mxu0 %v1172_v19  ;;  %v6085_v48 = vld [vmem:[#allocation7] sm:$0xff]  }
 0x1da   :  { %v1148_v29 = vadd.f32 %v1084_v23, %v5791_v38  ;;  %v1085_v8 = vsub.f32 %v1053_v1, %v5801_v43  ;;  %4326 = vmatpush3.bf16.msra.mxu0 %v1172_v19  ;;  %v7737_v19 = vld [vmem:[#allocation51_spill] sm:$0xff]  ;;  %7738 = vst [vmem:[#allocation26_spill] sm:$0xff] %v6085_v48 }
 0x1db   :  { %v1146_v32 = vadd.f32 %v1082_v27, %v5799_v42  ;;  %v1083_v16 = vsub.f32 %v1051_v37, %v5809_v46  ;;  %4327 = vmatprep.subr.bf16.mxu0 %v1173_v6  ;;  %v7740_v37 = vld [vmem:[#allocation54_spill] sm:$0xff] }
 0x1dc   :  { %v1149_v31 = vadd.f32 %v1085_v8, %v5807_v45  ;;  %4296 = vmatpush3.bf16.msra.mxu1 %v1125_v17  ;;  %v1127_v41 = vpack.c.bf16 %v1085_v8, %v1084_v23  ;;  %v7732_v17 = vld [vmem:[#allocation47_spill] sm:$0xff] }
 0x1dd   :  { %v1147_v40 = vadd.f32 %v1083_v16, %v5813_v47  ;;  %v4239_v15 = vpop.f32.mrb[44].mxu0  ;;  %v1126_v44 = vpack.c.bf16 %v1083_v16, %v1082_v27  ;;  %v7742_v16 = vld [vmem:[#allocation56_spill] sm:$0xff] }
 0x1de   :  { %v1056_v4 = vsub.f32 %v4239_v15, %v5817_v53  ;;  %v931_v18 = vpop.f32.mrb[45].mxu0  ;;  %4328 = vmatpush3.bf16.msra.mxu0 %v1173_v6  ;;  %v1175_v38 = vpack.c.bf16 %v1149_v31, %v1148_v29  ;;  %v7735_v6 = vld [vmem:[#allocation34_spill] sm:$0xff] }
 0x1df   :  { %v1054_v43 = vsub.f32 %v931_v18, %v5823_v57  ;;  %v4240_v34 = vpop.f32.mrb[46].mxu0  ;;  %4297 = vmatprep.subr.bf16.mxu1 %v1126_v44  ;;  %v1174_v42 = vpack.c.bf16 %v1147_v40, %v1146_v32  ;;  %v4880_v40 = vld [vmem:[#allocation8 + $0x8] sm:$0xff]   ;;  %v6094_v15 = vld [vmem:[#allocation8] sm:$0xff]  }
 0x1e0   :  { %v1088_v46 = vsub.f32 %v1056_v4, %v5821_v56  ;;  %v1057_v45 = vsub.f32 %v4240_v34, %v5831_v60  ;;  %v934_v14 = vpop.f32.mrb[47].mxu0  ;;  %4298 = vmatpush3.bf16.msra.mxu1 %v1126_v44  ;;  %7743 = vst [vmem:[#allocation46_spill] sm:$0xff] %v6094_v15  ;;  %v7745_v4 = vld [vmem:[#allocation55_spill] sm:$0xff] }
 0x1e1   :  { %v1086_v47 = vsub.f32 %v1054_v43, %v5829_v59  ;;  %v1055_v49 = vsub.f32 %v934_v14, %v5839_v12  ;;  %4299 = vmatprep.subr.bf16.mxu1 %v1127_v41  ;;  %4329 = vmatprep.subr.bf16.mxu0 %v1174_v42  ;;  %v7748_v14 = vld [vmem:[#allocation60_spill] sm:$0xff] }
 0x1e2   :  { %v1152_v53 = vadd.f32 %v1088_v46, %v5827_v58  ;;  %v1089_v5 = vsub.f32 %v1057_v45, %v5837_v11  ;;  %4330 = vmatpush3.bf16.msra.mxu0 %v1174_v42  ;;  %v7726_v11 = vld [vmem:[#allocation43_spill] sm:$0xff]  ;;  %v4882_v42 = vld [vmem:[#allocation8 + $0x10] sm:$0xff]  }
 0x1e3   :  { %v1150_v57 = vadd.f32 %v1086_v47, %v5835_v9  ;;  %v1087_v62 = vsub.f32 %v1055_v49, %v5845_v21  ;;  %4331 = vmatprep.subr.bf16.mxu0 %v1175_v38  ;;  %v7727_v21 = vld [vmem:[#allocation42_spill] sm:$0xff]  ;;  %v7749_v49 = vld [vmem:[#allocation35_spill] sm:$0xff] }
 0x1e4   :  { %v1153_v56 = vadd.f32 %v1089_v5, %v5843_v13  ;;  %4300 = vmatpush3.bf16.msra.mxu1 %v1127_v41  ;;  %v1129_v60 = vpack.c.bf16 %v1089_v5, %v1088_v46  ;;  %v7747_v46 = vld [vmem:[#allocation57_spill] sm:$0xff]  ;;  %v7751_v5 = vld [vmem:[#allocation27_spill] sm:$0xff] }
 0x1e5   :  { %v1151_v59 = vadd.f32 %v1087_v62, %v5849_v61  ;;  %v4243_v2 = vpop.f32.mrb[48].mxu0  ;;  %v1128_v12 = vpack.c.bf16 %v1087_v62, %v1086_v47  ;;  %v7752_v62 = vld [vmem:[#allocation59_spill] sm:$0xff] }
 0x1e6   :  { %v1060_v51 = vsub.f32 %v4243_v2, %v5853_v39  ;;  %v947_v50 = vpop.f32.mrb[49].mxu0  ;;  %4332 = vmatpush3.bf16.msra.mxu0 %v1175_v38  ;;  %v1177_v58 = vpack.c.bf16 %v1153_v56, %v1152_v53  ;;  %v7731_v39 = vld [vmem:[#allocation44_spill] sm:$0xff]  ;;  %v7746_v38 = vld [vmem:[#allocation58_spill] sm:$0xff]  ;;  %v6105_v53 = vld [vmem:[#allocation7 + $0x8] sm:$0xff]  }
 0x1e7   :  { %v1058_v3 = vsub.f32 %v947_v50, %v7726_v11  ;;  %v4244_v55 = vpop.f32.mrb[50].mxu0  ;;  %4301 = vmatprep.subr.bf16.mxu1 %v1128_v12  ;;  %v1176_v9 = vpack.c.bf16 %v1151_v59, %v1150_v57  ;;  %7750 = vst [vmem:[#allocation49_spill] sm:$0xff] %v6105_v53  ;;  %v7754_v59 = vld [vmem:[#allocation28_spill] sm:$0xff]  ;;  %v7756_v50 = vld [vmem:[#allocation61_spill] sm:$0xff] }
 0x1e8   :  { %v1092_v63 = vsub.f32 %v1060_v51, %v7727_v21  ;;  %v1061_v13 = vsub.f32 %v4244_v55, %v7728_v7  ;;  %v950_v33 = vpop.f32.mrb[51].mxu0  ;;  %4302 = vmatpush3.bf16.msra.mxu1 %v1128_v12  ;;  %v7755_v12 = vld [vmem:[#allocation62_spill] sm:$0xff]  ;;  %v6119_v21 = vld [vmem:[#allocation7 + $0x10] sm:$0xff]  }
 0x1e9   :  { %v1090_v61 = vsub.f32 %v1058_v3, %v7729_v20  ;;  %v1059_v28 = vsub.f32 %v950_v33, %v7730_v25  ;;  %4303 = vmatprep.subr.bf16.mxu1 %v1129_v60  ;;  %4333 = vmatprep.subr.bf16.mxu0 %v1176_v9  ;;  %v7758_v3 = vld [vmem:[#allocation63_spill] sm:$0xff]  ;;  %7759 = vst [vmem:[#allocation47_spill] sm:$0xff] %v6119_v21  ;;  %v7761_v7 = vld [vmem:[#allocation66_spill] sm:$0xff] }
 0x1ea   :  { %v1156_v36 = vadd.f32 %v1092_v63, %v7731_v39  ;;  %v1093_v10 = vsub.f32 %v1061_v13, %v7732_v17  ;;  %4334 = vmatpush3.bf16.msra.mxu0 %v1176_v9  ;;  %v4885_v39 = vld [vmem:[#allocation8 + $0x18] sm:$0xff]   ;;  %v7765_v17 = vld [vmem:[#allocation67_spill] sm:$0xff] }
 0x1eb   :  { %v1154_v0 = vadd.f32 %v1090_v61, %v7733_v30  ;;  %v1091_v22 = vsub.f32 %v1059_v28, %v7734_v52  ;;  %4335 = vmatprep.subr.bf16.mxu0 %v1177_v58  ;;  %v7766_v30 = vld [vmem:[#allocation70_spill] sm:$0xff] }
 0x1ec   :  { %v1157_v26 = vadd.f32 %v1093_v10, %v7735_v6  ;;  %4304 = vmatpush3.bf16.msra.mxu1 %v1129_v60  ;;  %v6082_v54 = vpack.c.bf16 %v1093_v10, %v1092_v63  ;;  %v7753_v60 = vld [vmem:[#allocation36_spill] sm:$0xff]  ;;  %v7767_v6 = vld [vmem:[#allocation69_spill] sm:$0xff] }
 0x1ed   :  { %v1155_v23 = vadd.f32 %v1091_v22, %v7737_v19  ;;  %v4247_v1 = vpop.f32.mrb[52].mxu0  ;;  %4353 = vmatprep.subr.bf16.mxu1 %v6085_v48  ;;  %v6088_v27 = vpack.c.bf16 %v1091_v22, %v1090_v61  ;;  %v7763_v61 = vld [vmem:[#allocation68_spill] sm:$0xff]  ;;  %v4886_v22 = vld [vmem:[#allocation8 + $0x20] sm:$0xff]  }
 0x1ee   :  { %7736 = vst [vmem:[#allocation33_spill] sm:$0xff] %v6082_v54  ;;  %v1064_v29 = vsub.f32 %v4247_v1, %v7740_v37  ;;  %v963_v8 = vpop.f32.mrb[53].mxu0  ;;  %4336 = vmatpush3.bf16.msra.mxu0 %v1177_v58  ;;  %v6091_v32 = vpack.c.bf16 %v1157_v26, %v1156_v36  ;;  %v7768_v19 = vld [vmem:[#allocation72_spill] sm:$0xff]  ;;  %v7769_v1 = vld [vmem:[#allocation37_spill] sm:$0xff] }
 0x1ef   :  { %7739 = vst [vmem:[#allocation43_spill] sm:$0xff] %v6088_v27  ;;  %v1062_v31 = vsub.f32 %v963_v8, %v7742_v16  ;;  %v4248_v41 = vpop.f32.mrb[54].mxu0  ;;  %4306 = vmatmul.mubr.bf16.vlgmr.msra.gmra.mrb[48].mxu1 %v4880_v40  ;;  %4385 = vmatprep.subr.bf16.mxu0 %v6094_v15  ;;  %v6097_v44 = vpack.c.bf16 %v1155_v23, %v1154_v0  ;;  %v6136_v37 = vld [vmem:[#allocation7 + $0x18] sm:$0xff]   ;;  %v7772_v16 = vld [vmem:[#allocation71_spill] sm:$0xff] }
 0x1f0   :  { %7741 = vst [vmem:[#allocation42_spill] sm:$0xff] %v6091_v32  ;;  %v1096_v18 = vsub.f32 %v1064_v29, %v7745_v4  ;;  %v1065_v43 = vsub.f32 %v4248_v41, %v7746_v38  ;;  %v966_v34 = vpop.f32.mrb[55].mxu0  ;;  %4309 = vmatprep.mubr.bf16.mxu1 %v4882_v42  ;;  %4354 = vmatpush3.bf16.msra.mxu1 %v6085_v48  ;;  %7770 = vst [vmem:[#allocation51_spill] sm:$0xff] %v6136_v37  ;;  %v7771_v29 = vld [vmem:[#allocation29_spill] sm:$0xff]  ;;  %v7773_v41 = vld [vmem:[#allocation38_spill] sm:$0xff] }
 0x1f1   :  { %7744 = vst [vmem:[#allocation45_spill] sm:$0xff] %v6097_v44  ;;  %v1094_v45 = vsub.f32 %v1062_v31, %v7747_v46  ;;  %v1063_v47 = vsub.f32 %v966_v34, %v7748_v14  ;;  %4338 = vmatmul.mubr.bf16.vlgmr.msra.gmra.mrb[64].mxu0 %v7749_v49  ;;  %4355 = vmatprep.subr.bf16.mxu1 %v6105_v53  ;;  %v6149_v49 = vld [vmem:[#allocation7 + $0x20] sm:$0xff]  }
 0x1f2   :  { %v1160_v57 = vadd.f32 %v1096_v18, %v7751_v5  ;;  %v1097_v56 = vsub.f32 %v1065_v43, %v7752_v62  ;;  %4341 = vmatprep.mubr.bf16.mxu0 %v7753_v60  ;;  %4386 = vmatpush3.bf16.msra.mxu0 %v6094_v15  ;;  %v7776_v43 = vld [vmem:[#allocation73_spill] sm:$0xff]  ;;  %7779 = vst [vmem:[#allocation56_spill] sm:$0xff] %v6149_v49  ;;  %v7783_v60 = vld [vmem:[#allocation80_spill] sm:$0xff] }
 0x1f3   :  { %v1158_v2 = vadd.f32 %v1094_v45, %v7754_v59  ;;  %v1095_v51 = vsub.f32 %v1063_v47, %v7755_v12  ;;  %4387 = vmatprep.subr.bf16.mxu0 %v4880_v40  ;;  %v4889_v12 = vld [vmem:[#allocation8 + $0x28] sm:$0xff]  }
 0x1f4   :  { %v1161_v58 = vadd.f32 %v1097_v56, %v7756_v50  ;;  %4356 = vmatpush3.bf16.msra.mxu1 %v6105_v53  ;;  %v6116_v11 = vpack.c.bf16 %v1097_v56, %v1096_v18  ;;  %v7775_v18 = vld [vmem:[#allocation74_spill] sm:$0xff]  ;;  %v7785_v50 = vld [vmem:[#allocation79_spill] sm:$0xff] }
 0x1f5   :  { %v1159_v55 = vadd.f32 %v1095_v51, %v7758_v3  ;;  %v4251_v9 = vpop.f32.mrb[56].mxu0  ;;  %4357 = vmatprep.subr.bf16.mxu1 %v6119_v21  ;;  %v6122_v63 = vpack.c.bf16 %v1095_v51, %v1094_v45  ;;  %v7778_v45 = vld [vmem:[#allocation75_spill] sm:$0xff]  ;;  %v7786_v3 = vld [vmem:[#allocation82_spill] sm:$0xff] }
 0x1f6   :  { %7757 = vst [vmem:[#allocation44_spill] sm:$0xff] %v6116_v11  ;;  %v1068_v13 = vsub.f32 %v4251_v9, %v7761_v7  ;;  %v979_v33 = vpop.f32.mrb[57].mxu0  ;;  %4388 = vmatpush3.bf16.msra.mxu0 %v4880_v40  ;;  %v6125_v20 = vpack.c.bf16 %v1161_v58, %v1160_v57  ;;  %v7774_v40 = vld [vmem:[#allocation30_spill] sm:$0xff]  ;;  %v4890_v7 = vld [vmem:[#allocation8 + $0x30] sm:$0xff]  }
 0x1f7   :  { %7760 = vst [vmem:[#allocation48_spill] sm:$0xff] %v6122_v63  ;;  %v1066_v25 = vsub.f32 %v979_v33, %v7763_v61  ;;  %v4252_v28 = vpop.f32.mrb[58].mxu0  ;;  %4310 = vmatmul.mubr.bf16.gmra.mrb[52].mxu1 %v4885_v39  ;;  %4389 = vmatprep.subr.bf16.mxu0 %v4882_v42  ;;  %v6128_v36 = vpack.c.bf16 %v1159_v55, %v1158_v2  ;;  %v213_v63 = vld [vmem:[#allocation13 + $0x30] sm:$0xff] }
 0x1f8   :  { %7762 = vst [vmem:[#allocation50_spill] sm:$0xff] %v6125_v20  ;;  %v1100_v10 = vsub.f32 %v1068_v13, %v7765_v17  ;;  %v1069_v0 = vsub.f32 %v4252_v28, %v7766_v30  ;;  %v982_v52 = vpop.f32.mrb[59].mxu0  ;;  %4313 = vmatprep.mubr.bf16.mxu1 %v4886_v22  ;;  %4358 = vmatpush3.bf16.msra.mxu1 %v6119_v21  ;;  %v7787_v13 = vld [vmem:[#allocation81_spill] sm:$0xff]  ;;  %v6166_v28 = vld [vmem:[#allocation7 + $0x28] sm:$0xff]  }
 0x1f9   :  { %7764 = vst [vmem:[#allocation34_spill] sm:$0xff] %v6128_v36  ;;  %v1098_v26 = vsub.f32 %v1066_v25, %v7767_v6  ;;  %v1067_v23 = vsub.f32 %v982_v52, %v7768_v19  ;;  %4342 = vmatmul.mubr.bf16.gmra.mrb[68].mxu0 %v7769_v1  ;;  %4359 = vmatprep.subr.bf16.mxu1 %v6136_v37  ;;  %v7788_v25 = vld [vmem:[#allocation39_spill] sm:$0xff]  ;;  %7789 = vst [vmem:[#allocation60_spill] sm:$0xff] %v6166_v28  ;;  %v7793_v6 = vld [vmem:[#allocation84_spill] sm:$0xff] }
 0x1fa   :  { %v1164_v8 = vadd.f32 %v1100_v10, %v7771_v29  ;;  %v1101_v31 = vsub.f32 %v1069_v0, %v7772_v16  ;;  %4345 = vmatprep.mubr.bf16.mxu0 %v7773_v41  ;;  %4390 = vmatpush3.bf16.msra.mxu0 %v4882_v42  ;;  %v7781_v42 = vld [vmem:[#allocation78_spill] sm:$0xff]  ;;  %v7792_v0 = vld [vmem:[#allocation40_spill] sm:$0xff]  ;;  %v7794_v19 = vld [vmem:[#allocation83_spill] sm:$0xff] }
 0x1fb   :  { %v1162_v4 = vadd.f32 %v1098_v26, %v7774_v40  ;;  %v1099_v38 = vsub.f32 %v1067_v23, %v7775_v18  ;;  %4391 = vmatprep.subr.bf16.mxu0 %v4885_v39  ;;  %v7796_v1 = vld [vmem:[#allocation85_spill] sm:$0xff] }
 0x1fc   :  { %v1165_v34 = vadd.f32 %v1101_v31, %v7776_v43  ;;  %4360 = vmatpush3.bf16.msra.mxu1 %v6136_v37  ;;  %v6146_v46 = vpack.c.bf16 %v1101_v31, %v1100_v10  ;;  %v7791_v10 = vld [vmem:[#allocation32_spill] sm:$0xff]  ;;  %v7801_v41 = vld [vmem:[#allocation41_spill] sm:$0xff] }
 0x1fd   :  { %v1163_v14 = vadd.f32 %v1099_v38, %v7778_v45  ;;  %v4255_v47 = vpop.f32.mrb[60].mxu0  ;;  %4361 = vmatprep.subr.bf16.mxu1 %v6149_v49  ;;  %v6152_v5 = vpack.c.bf16 %v1099_v38, %v1098_v26  ;;  %v6190_v40 = vld [vmem:[#allocation7 + $0x38] sm:$0xff]  }
 0x1fe   :  { %7777 = vst [vmem:[#allocation54_spill] sm:$0xff] %v6146_v46  ;;  %v1072_v57 = vsub.f32 %v4255_v47, %v7781_v42  ;;  %v995_v62 = vpop.f32.mrb[61].mxu0  ;;  %4392 = vmatpush3.bf16.msra.mxu0 %v4885_v39  ;;  %v6155_v56 = vpack.c.bf16 %v1165_v34, %v1164_v8  ;;  %v7790_v39 = vld [vmem:[#allocation31_spill] sm:$0xff]  ;;  %v6179_v8 = vld [vmem:[#allocation7 + $0x30] sm:$0xff]   ;;  %7802 = vst [vmem:[#allocation62_spill] sm:$0xff] %v6190_v40 }
 0x1ff   :  { %7780 = vst [vmem:[#allocation55_spill] sm:$0xff] %v6152_v5  ;;  %v1070_v59 = vsub.f32 %v995_v62, %v7783_v60  ;;  %v4256_v2 = vpop.f32.mrb[62].mxu0  ;;  %4314 = vmatmul.mubr.bf16.gmra.mrb[56].mxu1 %v4889_v12  ;;  %4393 = vmatprep.subr.bf16.mxu0 %v4886_v22  ;;  %v6158_v51 = vpack.c.bf16 %v1163_v14, %v1162_v4  ;;  %7797 = vst [vmem:[#allocation27_spill] sm:$0xff] %v6179_v8  ;;  %v6194_v4 = vld [vmem:[#allocation11] sm:$0xff]  }
 0x200   :  { %7782 = vst [vmem:[#allocation58_spill] sm:$0xff] %v6155_v56  ;;  %v1104_v58 = vsub.f32 %v1072_v57, %v7785_v50  ;;  %v1073_v55 = vsub.f32 %v4256_v2, %v7786_v3  ;;  %v998_v9 = vpop.f32.mrb[63].mxu0  ;;  %4317 = vmatprep.mubr.bf16.mxu1 %v4890_v7  ;;  %4362 = vmatpush3.bf16.msra.mxu1 %v6149_v49  ;;  %7803 = vst [vmem:[#allocation61_spill] sm:$0xff] %v6194_v4 }
 0x201   :  { %7784 = vst [vmem:[#allocation57_spill] sm:$0xff] %v6158_v51  ;;  %v1102_v33 = vsub.f32 %v1070_v59, %v7787_v13  ;;  %v1071_v61 = vsub.f32 %v998_v9, %v6001_v24  ;;  %4346 = vmatmul.mubr.bf16.gmra.mrb[72].mxu0 %v7788_v25  ;;  %4363 = vmatprep.subr.bf16.mxu1 %v6166_v28  ;;  %v225_v9 = vld [vmem:[#allocation14 + $0x10] sm:$0xff]  ;;  %v224_v51 = vld [vmem:[#allocation14 + $0x8] sm:$0xff] }
 0x202   :  { %v1168_v17 = vadd.f32 %v1104_v58, %v7790_v39  ;;  %v1105_v30 = vsub.f32 %v1073_v55, %v7791_v10  ;;  %4349 = vmatprep.mubr.bf16.mxu0 %v7792_v0  ;;  %4394 = vmatpush3.bf16.msra.mxu0 %v4886_v22  ;;  %v209_v55 = vld [vmem:[#allocation13 + $0x10] sm:$0xff]  ;;  %v226_v0 = vld [vmem:[#allocation14 + $0x18] sm:$0xff] }
 0x203   :  { %v1166_v52 = vadd.f32 %v1102_v33, %v5997_v35  ;;  %v1103_v26 = vsub.f32 %v1071_v61, %v7793_v6  ;;  %4395 = vmatprep.subr.bf16.mxu0 %v4889_v12  ;;  %v4893_v35 = vld [vmem:[#allocation8 + $0x38] sm:$0xff]   ;;  %v223_v61 = vld [vmem:[#allocation14] sm:$0xff] }
 0x204   :  { %v1169_v24 = vadd.f32 %v1105_v30, %v7794_v19  ;;  %4364 = vmatpush3.bf16.msra.mxu1 %v6166_v28  ;;  %v6176_v23 = vpack.c.bf16 %v1105_v30, %v1104_v58  ;;  %v210_v30 = vld [vmem:[#allocation13 + $0x18] sm:$0xff] }
 0x205   :  { %v1167_v29 = vadd.f32 %v1103_v26, %v7796_v1  ;;  %4365 = vmatprep.subr.bf16.mxu1 %v6179_v8  ;;  %v6182_v16 = vpack.c.bf16 %v1103_v26, %v1102_v33  ;;  %v207_v33 = vld [vmem:[#allocation13] sm:$0xff] }
 0x206   :  { %7795 = vst [vmem:[#allocation35_spill] sm:$0xff] %v6176_v23  ;;  %4396 = vmatpush3.bf16.msra.mxu0 %v4889_v12  ;;  %v6184_v22 = vpack.c.bf16 %v1169_v24, %v1168_v17 }
 0x207   :  { %7798 = vst [vmem:[#allocation59_spill] sm:$0xff] %v6182_v16  ;;  %4318 = vmatmul.mubr.bf16.gmra.mrb[60].mxu1 %v4893_v35  ;;  %4397 = vmatprep.subr.bf16.mxu0 %v4890_v7  ;;  %v6186_v31 = vpack.c.bf16 %v1167_v29, %v1166_v52  ;;  %v208_v29 = vld [vmem:[#allocation13 + $0x8] sm:$0xff] }
 0x208   :  { %7799 = vst [vmem:[#allocation36_spill] sm:$0xff] %v6184_v22  ;;  %4366 = vmatpush3.bf16.msra.mxu1 %v6179_v8 }
 0x209   :  { %7800 = vst [vmem:[#allocation28_spill] sm:$0xff] %v6186_v31  ;;  %4350 = vmatmul.mubr.bf16.gmra.mrb[76].mxu0 %v7801_v41  ;;  %4367 = vmatprep.subr.bf16.mxu1 %v6190_v40 }
 0x20a   :  { %4398 = vmatpush3.bf16.msra.mxu0 %v4890_v7 }
 0x20b   :  { %4399 = vmatprep.subr.bf16.mxu0 %v4893_v35 }
 0x20c   :  { %4368 = vmatpush3.bf16.msra.mxu1 %v6190_v40 }
 0x20d   :  { %4417 = vmatprep.subr.bf16.mxu1 %v6194_v4 }
 0x20e   :  { %4400 = vmatpush3.bf16.msra.mxu0 %v4893_v35 }
 0x281   :  { %v4275_v18 = vpop.f32.mrb[32].mxu1 }
 0x282   :  { %v1220_v38 = vpop.f32.mrb[33].mxu1 }
 0x283   :  { %v4276_v43 = vpop.f32.mrb[34].mxu1 }
 0x284   :  { %v1223_v34 = vpop.f32.mrb[35].mxu1 }
 0x289   :  { %v6197_v45 = vpop.f32.mrb[36].mxu1 }
 0x28a   :  { %v6199_v14 = vpop.f32.mrb[37].mxu1 }
 0x28b   :  { %v6201_v47 = vpop.f32.mrb[38].mxu1 }
 0x28c   :  { %v6203_v42 = vpop.f32.mrb[39].mxu1 }
 0x291   :  { %v6205_v57 = vpop.f32.mrb[40].mxu1 }
 0x292   :  { %v6207_v62 = vpop.f32.mrb[41].mxu1 }
 0x293   :  { %v6209_v60 = vpop.f32.mrb[42].mxu1 }
 0x294   :  { %v6211_v59 = vpop.f32.mrb[43].mxu1 }
 0x299   :  { %v6213_v2 = vpop.f32.mrb[44].mxu1 }
 0x29a   :  { %v6215_v12 = vpop.f32.mrb[45].mxu1 }
 0x29b   :  { %v6217_v50 = vpop.f32.mrb[46].mxu1 }
 0x29c   :  { %v6219_v58 = vpop.f32.mrb[47].mxu1 }
 0x2c2   :  { %v4307_v3 = vpop.f32.mrb[48].mxu1 }
 0x2c3   :  { %v1479_v7 = vsub.f32 %v4275_v18, %v4307_v3  ;;  %v1317_v13 = vpop.f32.mrb[49].mxu1 }
 0x2c4   :  { %v1477_v25 = vsub.f32 %v1220_v38, %v1317_v13  ;;  %v4339_v39 = vpop.f32.mrb[64].mxu0  ;;  %v4308_v17 = vpop.f32.mrb[50].mxu1 }
 0x2c5   :  { %v1495_v10 = vsub.f32 %v4339_v39, %v4275_v18  ;;  %v1480_v52 = vsub.f32 %v4276_v43, %v4308_v17  ;;  %v1414_v6 = vpop.f32.mrb[65].mxu0  ;;  %v1320_v26 = vpop.f32.mrb[51].mxu1  ;;  %v1527_v19 = vmul.f32 %v1479_v7, %v209_v55  ;;  %v1575_v24 = vmul.f32 %v1479_v7, %v225_v9 }
 0x2c6   :  { %v1493_v1 = vsub.f32 %v1414_v6, %v1220_v38  ;;  %v1478_v35 = vsub.f32 %v1223_v34, %v1320_v26  ;;  %v4340_v41 = vpop.f32.mrb[66].mxu0  ;;  %v6221_v22 = vmul.f32 %v1477_v25, %v207_v33  ;;  %v6223_v31 = vmul.f32 %v1477_v25, %v223_v61 }
 0x2c7   :  { %v1511_v56 = vsub.f32 %v1495_v10, %v4307_v3  ;;  %v1496_v20 = vsub.f32 %v4340_v41, %v4276_v43  ;;  %v1417_v36 = vpop.f32.mrb[67].mxu0  ;;  %v1528_v18 = vmul.f32 %v1480_v52, %v210_v30  ;;  %v1576_v39 = vmul.f32 %v1480_v52, %v226_v0  ;;  %v229_v52 = vld [vmem:[#allocation14 + $0x30] sm:$0xff]  ;;  %v230_v41 = vld [vmem:[#allocation14 + $0x38] sm:$0xff] }
 0x2c8   :  { %v1509_v32 = vsub.f32 %v1493_v1, %v1317_v13  ;;  %v1494_v44 = vsub.f32 %v1417_v36, %v1223_v34  ;;  %v1526_v46 = vmul.f32 %v1478_v35, %v208_v29  ;;  %v6225_v5 = vmul.f32 %v1478_v35, %v224_v51  ;;  %v211_v13 = vld [vmem:[#allocation13 + $0x20] sm:$0xff]  ;;  %v214_v35 = vld [vmem:[#allocation13 + $0x38] sm:$0xff] }
 0x2c9   :  { %v1543_v23 = vmul.f32 %v1511_v56, %v225_v9  ;;  %v1591_v16 = vmul.f32 %v1511_v56, %v209_v55  ;;  %v1512_v7 = vsub.f32 %v1496_v20, %v4308_v17  ;;  %v227_v36 = vld [vmem:[#allocation14 + $0x20] sm:$0xff] }
 0x2ca   :  { %v1541_v38 = vmul.f32 %v1509_v32, %v223_v61  ;;  %v1589_v6 = vmul.f32 %v1509_v32, %v207_v33  ;;  %v1510_v11 = vsub.f32 %v1494_v44, %v1320_v26  ;;  %v4311_v25 = vpop.f32.mrb[52].mxu1 }
 0x2cb   :  { %v6227_v54 = vsub.f32 %v1527_v19, %v1543_v23  ;;  %v6229_v3 = vadd.f32 %v1591_v16, %v1575_v24  ;;  %v1544_v43 = vmul.f32 %v1512_v7, %v226_v0  ;;  %v1592_v10 = vmul.f32 %v1512_v7, %v210_v30  ;;  %v1333_v34 = vpop.f32.mrb[53].mxu1 }
 0x2cc   :  { %v1542_v56 = vmul.f32 %v1510_v11, %v224_v51  ;;  %v1590_v55 = vmul.f32 %v1510_v11, %v208_v29  ;;  %v1483_v20 = vsub.f32 %v6197_v45, %v4311_v25  ;;  %v1481_v32 = vsub.f32 %v6199_v14, %v1333_v34  ;;  %v4343_v9 = vpop.f32.mrb[68].mxu0  ;;  %v4312_v44 = vpop.f32.mrb[54].mxu1 }
 0x2cd   :  { %v6235_v23 = vadd.f32 %v6229_v3, %v6227_v54  ;;  %v6237_v16 = vsub.f32 %v1528_v18, %v1544_v43  ;;  %v6239_v33 = vadd.f32 %v1592_v10, %v1576_v39  ;;  %v1499_v61 = vsub.f32 %v4343_v9, %v6197_v45  ;;  %v1430_v17 = vpop.f32.mrb[69].mxu0  ;;  %v1336_v30 = vpop.f32.mrb[55].mxu1  ;;  %v212_v18 = vld [vmem:[#allocation13 + $0x28] sm:$0xff] }
 0x2ce   :  { %v6242_v51 = vmul.f32 %v1483_v20, %v213_v63  ;;  %v6244_v11 = vmul.f32 %v1483_v20, %v229_v52  ;;  %v6246_v0 = vmul.f32 %v1481_v32, %v211_v13  ;;  %v6248_v26 = vmul.f32 %v1481_v32, %v227_v36  ;;  %v4344_v19 = vpop.f32.mrb[70].mxu0  ;;  %v228_v10 = vld [vmem:[#allocation14 + $0x28] sm:$0xff] }
 0x2cf   :  { %7804 = vst [vmem:[#allocation63_spill] sm:$0xff] %v6235_v23  ;;  %v1622_v24 = vpack.c.bf16 %v6237_v16, %v6227_v54  ;;  %v6256_v45 = vadd.f32 %v6239_v33, %v6237_v16  ;;  %v1515_v29 = vsub.f32 %v1499_v61, %v4311_v25  ;;  %v1433_v39 = vpop.f32.mrb[71].mxu0  ;;  %v1484_v7 = vsub.f32 %v6201_v47, %v4312_v44 }
 0x2d0   :  { %v1497_v43 = vsub.f32 %v1430_v17, %v6199_v14  ;;  %v1482_v20 = vsub.f32 %v6203_v42, %v1336_v30  ;;  %v1500_v54 = vsub.f32 %v4344_v19, %v6201_v47  ;;  %v1498_v25 = vsub.f32 %v1433_v39, %v6203_v42 }
 0x2d1   :  { %7805 = vst [vmem:[#allocation66_spill] sm:$0xff] %v6256_v45  ;;  %v6264_v9 = vmul.f32 %v1515_v29, %v229_v52  ;;  %v6266_v16 = vmul.f32 %v1515_v29, %v213_v63  ;;  %v6269_v61 = vmul.f32 %v1484_v7, %v214_v35  ;;  %v6271_v1 = vmul.f32 %v1484_v7, %v230_v41 }
 0x2d2   :  { %v1513_v27 = vsub.f32 %v1497_v43, %v1333_v34  ;;  %v6273_v14 = vmul.f32 %v1482_v20, %v212_v18  ;;  %v4315_v17 = vpop.f32.mrb[56].mxu1  ;;  %v6275_v40 = vmul.f32 %v1482_v20, %v228_v10  ;;  %v1516_v47 = vsub.f32 %v1500_v54, %v4312_v44  ;;  %v233_v54 = vld [vmem:[#allocation14 + $0x50] sm:$0xff] }
 0x2d3   :  { %v1514_v19 = vsub.f32 %v1498_v25, %v1336_v30  ;;  %v6278_v32 = vsub.f32 %v6221_v22, %v1541_v38  ;;  %v1349_v52 = vpop.f32.mrb[57].mxu1  ;;  %v6280_v8 = vsub.f32 %v1526_v46, %v1542_v56  ;;  %v6283_v42 = vadd.f32 %v1589_v6, %v6223_v31  ;;  %v217_v30 = vld [vmem:[#allocation13 + $0x50] sm:$0xff]  ;;  %v215_v22 = vld [vmem:[#allocation13 + $0x40] sm:$0xff]  ;;  %v234_v56 = vld [vmem:[#allocation14 + $0x58] sm:$0xff] }
 0x2d4   :  { %v1545_v63 = vmul.f32 %v1513_v27, %v227_v36  ;;  %v1593_v29 = vmul.f32 %v1513_v27, %v211_v13  ;;  %v4347_v39 = vpop.f32.mrb[72].mxu0  ;;  %v4316_v34 = vpop.f32.mrb[58].mxu1  ;;  %v6285_v7 = vmul.f32 %v1516_v47, %v230_v41  ;;  %v6287_v43 = vmul.f32 %v1516_v47, %v214_v35  ;;  %v231_v6 = vld [vmem:[#allocation14 + $0x40] sm:$0xff]  ;;  %v218_v36 = vld [vmem:[#allocation13 + $0x58] sm:$0xff]  ;;  %v216_v47 = vld [vmem:[#allocation13 + $0x48] sm:$0xff] }
 0x2d5   :  { %v1546_v20 = vmul.f32 %v1514_v19, %v228_v10  ;;  %v1594_v44 = vmul.f32 %v1514_v19, %v212_v18  ;;  %v1446_v38 = vpop.f32.mrb[73].mxu0  ;;  %v1352_v25 = vpop.f32.mrb[59].mxu1  ;;  %v1621_v27 = vpack.c.bf16 %v6280_v8, %v6278_v32  ;;  %v6292_v46 = vadd.f32 %v1590_v55, %v6225_v5  ;;  %v232_v19 = vld [vmem:[#allocation14 + $0x48] sm:$0xff] }
 0x2d6   :  { %v1487_v31 = vsub.f32 %v6205_v57, %v4315_v17  ;;  %v1485_v13 = vsub.f32 %v6207_v62, %v1349_v52  ;;  %v4348_v35 = vpop.f32.mrb[74].mxu0  ;;  %v1503_v41 = vsub.f32 %v4347_v39, %v6205_v57  ;;  %v1488_v18 = vsub.f32 %v6209_v60, %v4316_v34  ;;  %v6308_v57 = vld [vmem:[#allocation11 + $0x8] sm:$0xff]  }
 0x2d7   :  { %v1501_v10 = vsub.f32 %v1446_v38, %v6207_v62  ;;  %v1486_v28 = vsub.f32 %v6211_v59, %v1352_v25  ;;  %v1449_v5 = vpop.f32.mrb[75].mxu0  ;;  %4369 = vmatprep.mubr.bf16.mxu1 %v1621_v27  ;;  %v1629_v55 = vpack.c.bf16 %v6292_v46, %v6283_v42  ;;  %7806 = vst [vmem:[#allocation68_spill] sm:$0xff] %v6308_v57 }
 0x2d8   :  { %v6302_v49 = vmul.f32 %v1487_v31, %v217_v30  ;;  %v6304_v37 = vmul.f32 %v1487_v31, %v233_v54  ;;  %v6306_v21 = vmul.f32 %v1485_v13, %v215_v22  ;;  %4370 = vmatmul.mubr.bf16.vlgmr.msra.gmra.mrb[64].mxu1 %v1622_v24  ;;  %v6310_v39 = vmul.f32 %v1485_v13, %v231_v6 }
 0x2d9   :  { %v1519_v62 = vsub.f32 %v1503_v41, %v4315_v17  ;;  %v6312_v38 = vmul.f32 %v1488_v18, %v218_v36  ;;  %v6314_v53 = vmul.f32 %v1488_v18, %v234_v56  ;;  %4401 = vmatprep.mubr.bf16.mxu0 %v1629_v55  ;;  %4418 = vmatpush3.bf16.msra.mxu1 %v6194_v4  ;;  %v6330_v18 = vld [vmem:[#allocation11 + $0x10] sm:$0xff]  }
 0x2da   :  { %v1517_v27 = vsub.f32 %v1501_v10, %v1349_v52  ;;  %v6317_v15 = vmul.f32 %v1486_v28, %v216_v47  ;;  %v6319_v31 = vmul.f32 %v1486_v28, %v232_v19  ;;  %v4319_v23 = vpop.f32.mrb[60].mxu1  ;;  %v7807_v45 = vpack.c.bf16 %v6239_v33, %v6229_v3  ;;  %4419 = vmatprep.subr.bf16.mxu1 %v6308_v57 }
 0x2db   :  { %v6324_v24 = vmul.f32 %v1519_v62, %v233_v54  ;;  %v6326_v17 = vmul.f32 %v1519_v62, %v217_v30  ;;  %v1504_v13 = vsub.f32 %v4348_v35, %v6209_v60  ;;  %v1502_v41 = vsub.f32 %v1449_v5, %v6211_v59  ;;  %v1365_v52 = vpop.f32.mrb[61].mxu1  ;;  %v237_v35 = vld [vmem:[#allocation14 + $0x70] sm:$0xff] }
 0x2dc   :  { %4402 = vmatmul.mubr.bf16.vlgmr.msra.gmra.mrb[80].mxu0 %v7807_v45  ;;  %v6332_v10 = vmul.f32 %v1517_v27, %v231_v6  ;;  %v6334_v28 = vmul.f32 %v1517_v27, %v215_v22  ;;  %v6338_v3 = vsub.f32 %v6246_v0, %v1545_v63  ;;  %v6341_v33 = vsub.f32 %v6273_v14, %v1546_v20  ;;  %v4351_v45 = vpop.f32.mrb[76].mxu0  ;;  %v4320_v30 = vpop.f32.mrb[62].mxu1  ;;  %v221_v22 = vld [vmem:[#allocation13 + $0x70] sm:$0xff] }
 0x2dd   :  { %v1520_v60 = vsub.f32 %v1504_v13, %v4316_v34  ;;  %v1518_v54 = vsub.f32 %v1502_v41, %v1352_v25  ;;  %v6344_v59 = vadd.f32 %v1593_v29, %v6248_v26  ;;  %v6347_v6 = vadd.f32 %v1594_v44, %v6275_v40  ;;  %v1462_v5 = vpop.f32.mrb[77].mxu0  ;;  %v1368_v55 = vpop.f32.mrb[63].mxu1  ;;  %4420 = vmatpush3.bf16.msra.mxu1 %v6308_v57  ;;  %v222_v41 = vld [vmem:[#allocation13 + $0x78] sm:$0xff]  ;;  %v236_v57 = vld [vmem:[#allocation14 + $0x68] sm:$0xff] }
 0x2de   :  { %v1623_v0 = vpack.c.bf16 %v6341_v33, %v6338_v3  ;;  %v1491_v14 = vsub.f32 %v6213_v2, %v4319_v23  ;;  %v6355_v63 = vsub.f32 %v6242_v51, %v6264_v9  ;;  %v6359_v26 = vsub.f32 %v6269_v61, %v6285_v7  ;;  %v4352_v40 = vpop.f32.mrb[78].mxu0  ;;  %4421 = vmatprep.subr.bf16.mxu1 %v6330_v18  ;;  %v219_v61 = vld [vmem:[#allocation13 + $0x60] sm:$0xff] }
 0x2df   :  { %v1552_v29 = vmul.f32 %v1520_v60, %v234_v56  ;;  %v6361_v34 = vmul.f32 %v1520_v60, %v218_v36  ;;  %v1550_v20 = vmul.f32 %v1518_v54, %v232_v19  ;;  %v1598_v44 = vmul.f32 %v1518_v54, %v216_v47  ;;  %v1465_v25 = vpop.f32.mrb[79].mxu0  ;;  %v235_v7 = vld [vmem:[#allocation14 + $0x60] sm:$0xff]  ;;  %v6370_v56 = vld [vmem:[#allocation11 + $0x18] sm:$0xff]   ;;  %v220_v54 = vld [vmem:[#allocation13 + $0x68] sm:$0xff] }
 0x2e0   :  { %7808 = vst [vmem:[#allocation67_spill] sm:$0xff] %v6355_v63  ;;  %7809 = vst [vmem:[#allocation70_spill] sm:$0xff] %v6359_v26  ;;  %4373 = vmatprep.mubr.bf16.mxu1 %v1623_v0  ;;  %v1631_v62 = vpack.c.bf16 %v6347_v6, %v6344_v59  ;;  %v1539_v27 = vmul.f32 %v1491_v14, %v221_v22  ;;  %v6366_v51 = vmul.f32 %v1491_v14, %v237_v35  ;;  %v238_v60 = vld [vmem:[#allocation14 + $0x78] sm:$0xff] }
 0x2e1   :  { %v1624_v9 = vpack.c.bf16 %v6359_v26, %v6355_v63  ;;  %v6374_v36 = vadd.f32 %v6266_v16, %v6244_v11  ;;  %v6378_v47 = vadd.f32 %v6287_v43, %v6271_v1  ;;  %v1489_v19 = vsub.f32 %v6215_v12, %v1365_v52  ;;  %4422 = vmatpush3.bf16.msra.mxu1 %v6330_v18 }
 0x2e2   :  { %v1507_v13 = vsub.f32 %v4351_v45, %v6213_v2  ;;  %4405 = vmatprep.mubr.bf16.mxu0 %v1631_v62  ;;  %v1492_v0 = vsub.f32 %v6217_v50, %v4320_v30  ;;  %v1505_v14 = vsub.f32 %v1462_v5, %v6215_v12  ;;  %v1490_v11 = vsub.f32 %v6219_v58, %v1368_v55 }
 0x2e3   :  { %7810 = vst [vmem:[#allocation69_spill] sm:$0xff] %v6374_v36  ;;  %7811 = vst [vmem:[#allocation72_spill] sm:$0xff] %v6378_v47  ;;  %4374 = vmatmul.mubr.bf16.gmra.mrb[68].mxu1 %v1624_v9  ;;  %v1632_v1 = vpack.c.bf16 %v6378_v47, %v6374_v36  ;;  %v1537_v16 = vmul.f32 %v1489_v19, %v219_v61  ;;  %v1585_v43 = vmul.f32 %v1489_v19, %v235_v7  ;;  %v6389_v9 = vld [vmem:[#allocation11 + $0x20] sm:$0xff]  }
 0x2e4   :  { %v1523_v4 = vsub.f32 %v1507_v13, %v4319_v23  ;;  %v1540_v2 = vmul.f32 %v1492_v0, %v222_v41  ;;  %v1588_v45 = vmul.f32 %v1492_v0, %v238_v60  ;;  %v1521_v48 = vsub.f32 %v1505_v14, %v1365_v52  ;;  %4423 = vmatprep.subr.bf16.mxu1 %v6370_v56 }
 0x2e5   :  { %v1538_v62 = vmul.f32 %v1490_v11, %v220_v54  ;;  %4406 = vmatmul.mubr.bf16.gmra.mrb[84].mxu0 %v1632_v1  ;;  %v1586_v26 = vmul.f32 %v1490_v11, %v236_v57  ;;  %v1508_v63 = vsub.f32 %v4352_v40, %v6217_v50  ;;  %v1506_v23 = vsub.f32 %v1465_v25, %v6219_v58 }
 0x2e6   :  { %v1555_v12 = vmul.f32 %v1523_v4, %v237_v35  ;;  %v1603_v5 = vmul.f32 %v1523_v4, %v221_v22  ;;  %v1553_v47 = vmul.f32 %v1521_v48, %v235_v7  ;;  %v1601_v36 = vmul.f32 %v1521_v48, %v219_v61  ;;  %4424 = vmatpush3.bf16.msra.mxu1 %v6370_v56 }
 0x2e7   :  { %v1565_v19 = vsub.f32 %v6306_v21, %v6332_v10  ;;  %v1524_v13 = vsub.f32 %v1508_v63, %v4320_v30  ;;  %v1566_v52 = vsub.f32 %v6317_v15, %v1550_v20  ;;  %v1613_v0 = vadd.f32 %v6334_v28, %v6310_v39  ;;  %4425 = vmatprep.subr.bf16.mxu1 %v6389_v9  ;;  %v6408_v28 = vld [vmem:[#allocation11 + $0x28] sm:$0xff]  }
 0x2e8   :  { %v1614_v4 = vadd.f32 %v1598_v44, %v6319_v31  ;;  %v1522_v22 = vsub.f32 %v1506_v23, %v1368_v55  ;;  %v1567_v50 = vsub.f32 %v6302_v49, %v6324_v24  ;;  %v1568_v48 = vsub.f32 %v6312_v38, %v1552_v29  ;;  %7812 = vst [vmem:[#allocation37_spill] sm:$0xff] %v6408_v28  ;;  %v7821_v23 = vld [vmem:[#allocation63_spill] sm:$0xff] }
 0x2e9   :  { %v1615_v58 = vadd.f32 %v6326_v17, %v6304_v37  ;;  %v1556_v21 = vmul.f32 %v1524_v13, %v238_v60  ;;  %v1604_v10 = vmul.f32 %v1524_v13, %v222_v41  ;;  %v1625_v30 = vpack.c.bf16 %v1566_v52, %v1565_v19  ;;  %v7823_v13 = vld [vmem:[#allocation46_spill] sm:$0xff] }
 0x2ea   :  { %v1633_v15 = vpack.c.bf16 %v1614_v4, %v1613_v0  ;;  %v1554_v35 = vmul.f32 %v1522_v22, %v236_v57  ;;  %v1602_v63 = vmul.f32 %v1522_v22, %v220_v54  ;;  %v1626_v39 = vpack.c.bf16 %v1568_v48, %v1567_v50  ;;  %4426 = vmatpush3.bf16.msra.mxu1 %v6389_v9 }
 0x2eb   :  { %v1616_v31 = vadd.f32 %v6361_v34, %v6314_v53  ;;  %4377 = vmatprep.mubr.bf16.mxu1 %v1625_v30  ;;  %v1569_v49 = vsub.f32 %v1537_v16, %v1553_v47  ;;  %v1617_v38 = vadd.f32 %v1601_v36, %v1585_v43  ;;  %v1571_v24 = vsub.f32 %v1539_v27, %v1555_v12  ;;  %v6417_v27 = vld [vmem:[#allocation11 + $0x30] sm:$0xff]   ;;  %v7819_v12 = vld [vmem:[#allocation26_spill] sm:$0xff] }
 0x2ec   :  { %4409 = vmatprep.mubr.bf16.mxu0 %v1633_v15  ;;  %4378 = vmatmul.mubr.bf16.gmra.mrb[72].mxu1 %v1626_v39  ;;  %v1570_v17 = vsub.f32 %v1538_v62, %v1554_v35  ;;  %v1618_v55 = vadd.f32 %v1602_v63, %v1586_v26  ;;  %v1572_v40 = vsub.f32 %v1540_v2, %v1556_v21  ;;  %v7817_v36 = vld [vmem:[#allocation72_spill] sm:$0xff] }
 0x2ed   :  { %v1634_v37 = vpack.c.bf16 %v1616_v31, %v1615_v58  ;;  %v1619_v57 = vadd.f32 %v1603_v5, %v6366_v51  ;;  %v1620_v29 = vadd.f32 %v1604_v10, %v1588_v45  ;;  %v1637_v53 = vadd.f32 %v6283_v42, %v6278_v32  ;;  %4427 = vmatprep.subr.bf16.mxu1 %v6408_v28  ;;  %v7814_v32 = vld [vmem:[#allocation67_spill] sm:$0xff]  ;;  %v7820_v5 = vld [vmem:[#allocation66_spill] sm:$0xff] }
 0x2ee   :  { %v1638_v34 = vadd.f32 %v6292_v46, %v6280_v8  ;;  %v1627_v20 = vpack.c.bf16 %v1570_v17, %v1569_v49  ;;  %v1635_v44 = vpack.c.bf16 %v1618_v55, %v1617_v38  ;;  %v1628_v25 = vpack.c.bf16 %v1572_v40, %v1571_v24  ;;  %7813 = vst [vmem:[#allocation29_spill] sm:$0xff] %v6417_v27  ;;  %v7815_v8 = vld [vmem:[#allocation69_spill] sm:$0xff]  ;;  %v7816_v46 = vld [vmem:[#allocation70_spill] sm:$0xff] }
 0x2ef   :  { %4410 = vmatmul.mubr.bf16.gmra.mrb[88].mxu0 %v1634_v37  ;;  %v1636_v26 = vpack.c.bf16 %v1620_v29, %v1619_v57  ;;  %v1641_v51 = vadd.f32 %v6344_v59, %v6338_v3  ;;  %v1642_v7 = vadd.f32 %v6347_v6, %v6341_v33  ;;  %v1643_v42 = vadd.f32 %v7815_v8, %v7814_v32  ;;  %v6429_v3 = vld [vmem:[#allocation11 + $0x38] sm:$0xff]  }
 0x2f0   :  { %v1653_v61 = vpack.c.bf16 %v1638_v34, %v1637_v53  ;;  %4381 = vmatprep.mubr.bf16.mxu1 %v1627_v20  ;;  %4413 = vmatprep.mubr.bf16.mxu0 %v1635_v44  ;;  %v1644_v47 = vadd.f32 %v7817_v36, %v7816_v46  ;;  %v1645_v41 = vadd.f32 %v1613_v0, %v1565_v19 }
 0x2f1   :  { %4428 = vmatpush3.bf16.msra.mxu1 %v6408_v28  ;;  %v1655_v60 = vpack.c.bf16 %v1642_v7, %v1641_v51  ;;  %v1646_v54 = vadd.f32 %v1614_v4, %v1566_v52  ;;  %v1647_v14 = vadd.f32 %v1615_v58, %v1567_v50  ;;  %v1648_v11 = vadd.f32 %v1616_v31, %v1568_v48 }
 0x2f2   :  { %4429 = vmatprep.subr.bf16.mxu1 %v6417_v27  ;;  %7818 = vst [vmem:[#allocation71_spill] sm:$0xff] %v6429_v3  ;;  %v1656_v33 = vpack.c.bf16 %v1644_v47, %v1643_v42  ;;  %v1649_v59 = vadd.f32 %v1617_v38, %v1569_v49  ;;  %v1650_v6 = vadd.f32 %v1618_v55, %v1570_v17 }
 0x2f3   :  { %v1651_v1 = vadd.f32 %v1619_v57, %v1571_v24  ;;  %v1657_v16 = vpack.c.bf16 %v1646_v54, %v1645_v41  ;;  %v1658_v43 = vpack.c.bf16 %v1648_v11, %v1647_v14  ;;  %v1652_v2 = vadd.f32 %v1620_v29, %v1572_v40 }
 0x2f4   :  { %4382 = vmatmul.mubr.bf16.gmra.mrb[76].mxu1 %v1628_v25  ;;  %v1659_v45 = vpack.c.bf16 %v1650_v6, %v1649_v59  ;;  %v7822_v19 = vpack.c.bf16 %v7820_v5, %v7821_v23 }
 0x2f5   :  { %4430 = vmatpush3.bf16.msra.mxu1 %v6417_v27  ;;  %4433 = vmatprep.mubr.bf16.mxu1 %v1653_v61  ;;  %v1660_v62 = vpack.c.bf16 %v1652_v2, %v1651_v1 }
 0x2f6   :  { %4431 = vmatprep.subr.bf16.mxu1 %v6429_v3 }
 0x2f7   :  { %4414 = vmatmul.mubr.bf16.gmra.mrb[92].mxu0 %v1636_v26 }
 0x2f8   :  { %4465 = vmatprep.mubr.bf16.mxu0 %v7819_v12 }
 0x2f9   :  { %4432 = vmatpush3.bf16.msra.mxu1 %v6429_v3 }
 0x2fc   :  { %4434 = vmatmul.mubr.bf16.vlgmr.msra.gmra.mrb[80].mxu1 %v7822_v19 }
 0x2fd   :  { %4437 = vmatprep.mubr.bf16.mxu1 %v1655_v60 }
 0x304   :  { %4438 = vmatmul.mubr.bf16.gmra.mrb[84].mxu1 %v1656_v33 }
 0x305   :  { %4441 = vmatprep.mubr.bf16.mxu1 %v1657_v16 }
 0x30c   :  { %4442 = vmatmul.mubr.bf16.gmra.mrb[88].mxu1 %v1658_v43 }
 0x30d   :  { %4445 = vmatprep.mubr.bf16.mxu1 %v1659_v45 }
 0x314   :  { %4446 = vmatmul.mubr.bf16.gmra.mrb[92].mxu1 %v1660_v62 }
 0x315   :  { %4497 = vmatprep.mubr.bf16.mxu1 %v7823_v13 }
 0x3ab   :  { %v6439_v52 = vpop.f32.mrb[64].mxu1 }
 0x3ac   :  { %v6441_v0 = vpop.f32.mrb[65].mxu1 }
 0x3ad   :  { %v6445_v22 = vpop.f32.mrb[66].mxu1 }
 0x3ae   :  { %v6453_v58 = vpop.f32.mrb[67].mxu1 }
 0x3af   :  { %v6443_v4 = vpop.f32.mrb[80].mxu0 }
 0x3b0   :  { %v6449_v50 = vadd.f32 %v6443_v4, %v6439_v52  ;;  %v6451_v48 = vpop.f32.mrb[81].mxu0 }
 0x3b1   :  { %v6457_v21 = vadd.f32 %v6451_v48, %v6441_v0  ;;  %v6459_v10 = vpop.f32.mrb[82].mxu0 }
 0x3b2   :  { %v6463_v30 = vadd.f32 %v6459_v10, %v6445_v22  ;;  %v6465_v15 = vpop.f32.mrb[83].mxu0 }
 0x3b3   :  { %v6469_v35 = vadd.f32 %v6465_v15, %v6453_v58 }
 0x3b4   :  { %v2049_v63 = vpack.c.bf16 %v6463_v30, %v6449_v50 }
 0x3b5   :  { %v2048_v39 = vpack.c.bf16 %v6469_v35, %v6457_v21 }
 0x3b6   :  { %v6475_v31 = vpop.f32.mrb[68].mxu1 }
 0x3b7   :  { %4449 = vmatprep.subr.bf16.mxu0 %v2048_v39  ;;  %v6477_v49 = vpop.f32.mrb[69].mxu1 }
 0x3b8   :  { %4450 = vmatpush3.bf16.msra.mxu0 %v2048_v39  ;;  %v6479_v38 = vpop.f32.mrb[70].mxu1  ;;  %v6481_v24 = vpop.f32.mrb[84].mxu0 }
 0x3b9   :  { %4451 = vmatprep.subr.bf16.mxu0 %v2049_v63  ;;  %v6483_v37 = vpop.f32.mrb[71].mxu1  ;;  %v6487_v17 = vadd.f32 %v6481_v24, %v6475_v31  ;;  %v6489_v55 = vpop.f32.mrb[85].mxu0 }
 0x3ba   :  { %v6493_v40 = vadd.f32 %v6489_v55, %v6477_v49  ;;  %v6495_v57 = vpop.f32.mrb[86].mxu0 }
 0x3bb   :  { %v6499_v29 = vadd.f32 %v6495_v57, %v6479_v38  ;;  %v6501_v53 = vpop.f32.mrb[87].mxu0 }
 0x3bc   :  { %4452 = vmatpush3.bf16.msra.mxu0 %v2049_v63  ;;  %v6505_v34 = vadd.f32 %v6501_v53, %v6483_v37 }
 0x3bd   :  { %v2051_v20 = vpack.c.bf16 %v6499_v29, %v6487_v17 }
 0x3be   :  { %v2050_v44 = vpack.c.bf16 %v6505_v34, %v6493_v40 }
 0x3bf   :  { %v6511_v25 = vpop.f32.mrb[72].mxu1 }
 0x3c0   :  { %4453 = vmatprep.subr.bf16.mxu0 %v2050_v44  ;;  %v6513_v26 = vpop.f32.mrb[73].mxu1 }
 0x3c1   :  { %4454 = vmatpush3.bf16.msra.mxu0 %v2050_v44  ;;  %v6517_v51 = vpop.f32.mrb[74].mxu1 }
 0x3c2   :  { %v6515_v61 = vpop.f32.mrb[88].mxu0  ;;  %4455 = vmatprep.subr.bf16.mxu0 %v2051_v20  ;;  %v6525_v8 = vpop.f32.mrb[75].mxu1 }
 0x3c3   :  { %v6521_v7 = vadd.f32 %v6515_v61, %v6511_v25  ;;  %v6523_v32 = vpop.f32.mrb[89].mxu0 }
 0x3c4   :  { %v6529_v42 = vadd.f32 %v6523_v32, %v6513_v26  ;;  %v6531_v46 = vpop.f32.mrb[90].mxu0 }
 0x3c5   :  { %v6535_v36 = vadd.f32 %v6531_v46, %v6517_v51  ;;  %v6537_v47 = vpop.f32.mrb[91].mxu0  ;;  %4456 = vmatpush3.bf16.msra.mxu0 %v2051_v20 }
 0x3c6   :  { %v6541_v41 = vadd.f32 %v6537_v47, %v6525_v8 }
 0x3c7   :  { %v2053_v60 = vpack.c.bf16 %v6535_v36, %v6521_v7  ;;  %v6547_v14 = vpop.f32.mrb[76].mxu1 }
 0x3c8   :  { %v2052_v54 = vpack.c.bf16 %v6541_v41, %v6529_v42  ;;  %v6549_v11 = vpop.f32.mrb[77].mxu1 }
 0x3c9   :  { %v6553_v59 = vpop.f32.mrb[78].mxu1 }
 0x3ca   :  { %v6551_v33 = vpop.f32.mrb[92].mxu0  ;;  %4457 = vmatprep.subr.bf16.mxu0 %v2052_v54  ;;  %v6561_v16 = vpop.f32.mrb[79].mxu1 }
 0x3cb   :  { %v6557_v6 = vadd.f32 %v6551_v33, %v6547_v14  ;;  %v6559_v1 = vpop.f32.mrb[93].mxu0  ;;  %4458 = vmatpush3.bf16.msra.mxu0 %v2052_v54 }
 0x3cc   :  { %v6565_v43 = vadd.f32 %v6559_v1, %v6549_v11  ;;  %v6567_v2 = vpop.f32.mrb[94].mxu0  ;;  %4459 = vmatprep.subr.bf16.mxu0 %v2053_v60 }
 0x3cd   :  { %v6571_v45 = vadd.f32 %v6567_v2, %v6553_v59  ;;  %v6573_v62 = vpop.f32.mrb[95].mxu0 }
 0x3ce   :  { %v6577_v12 = vadd.f32 %v6573_v62, %v6561_v16 }
 0x3cf   :  { %v2055_v5 = vpack.c.bf16 %v6571_v45, %v6557_v6  ;;  %4460 = vmatpush3.bf16.msra.mxu0 %v2053_v60  ;;  %v4435_v19 = vpop.f32.mrb[80].mxu1 }
 0x3d0   :  { %v2054_v23 = vpack.c.bf16 %v6577_v12, %v6565_v43  ;;  %v2018_v13 = vsub.f32 %v4435_v19, %v6439_v52  ;;  %v1937_v63 = vpop.f32.mrb[81].mxu1 }
 0x3d1   :  { %v2016_v39 = vsub.f32 %v1937_v63, %v6441_v0  ;;  %v4436_v20 = vpop.f32.mrb[82].mxu1 }
 0x3d2   :  { %4461 = vmatprep.subr.bf16.mxu0 %v2054_v23  ;;  %v2034_v44 = vadd.f32 %v6443_v4, %v2018_v13  ;;  %v2019_v54 = vsub.f32 %v4436_v20, %v6445_v22  ;;  %v1940_v3 = vpop.f32.mrb[83].mxu1 }
 0x3d3   :  { %4462 = vmatpush3.bf16.msra.mxu0 %v2054_v23  ;;  %v2032_v27 = vadd.f32 %v2016_v39, %v6451_v48  ;;  %v2017_v60 = vsub.f32 %v1940_v3, %v6453_v58 }
 0x3d4   :  { %4463 = vmatprep.subr.bf16.mxu0 %v2055_v5  ;;  %v2066_v28 = vadd.f32 %v2034_v44, %v6449_v50  ;;  %v2035_v52 = vadd.f32 %v6459_v10, %v2019_v54 }
 0x3d5   :  { %v2064_v19 = vadd.f32 %v2032_v27, %v6457_v21  ;;  %v2033_v0 = vadd.f32 %v2017_v60, %v6465_v15  ;;  %v7824_v21 = vld [vmem:[#allocation49_spill] sm:$0xff] }
 0x3d6   :  { %v2067_v63 = vadd.f32 %v2035_v52, %v6463_v30  ;;  %v2057_v4 = vpack.c.bf16 %v2035_v52, %v2034_v44 }
 0x3d7   :  { %4464 = vmatpush3.bf16.msra.mxu0 %v2055_v5  ;;  %v2065_v22 = vadd.f32 %v2033_v0, %v6469_v35  ;;  %v4439_v23 = vpop.f32.mrb[84].mxu1  ;;  %v2056_v13 = vpack.c.bf16 %v2033_v0, %v2032_v27  ;;  %v7825_v35 = vld [vmem:[#allocation47_spill] sm:$0xff] }
 0x3d8   :  { %v2022_v48 = vsub.f32 %v4439_v23, %v6475_v31  ;;  %v1953_v39 = vpop.f32.mrb[85].mxu1  ;;  %v2081_v3 = vpack.c.bf16 %v2067_v63, %v2066_v28 }
 0x3d9   :  { %v2020_v50 = vsub.f32 %v1953_v39, %v6477_v49  ;;  %v4440_v58 = vpop.f32.mrb[86].mxu1  ;;  %4481 = vmatprep.subr.bf16.mxu1 %v2056_v13  ;;  %v2080_v10 = vpack.c.bf16 %v2065_v22, %v2064_v19 }
 0x3da   :  { %4466 = vmatmul.mubr.bf16.vlgmr.msra.gmra.mrb[96].mxu0 %v7824_v21  ;;  %v2038_v15 = vadd.f32 %v6481_v24, %v2022_v48  ;;  %v2023_v30 = vsub.f32 %v4440_v58, %v6479_v38  ;;  %v1956_v5 = vpop.f32.mrb[87].mxu1  ;;  %4482 = vmatpush3.bf16.msra.mxu1 %v2056_v13 }
 0x3db   :  { %4469 = vmatprep.mubr.bf16.mxu0 %v7825_v35  ;;  %v2036_v27 = vadd.f32 %v2020_v50, %v6489_v55  ;;  %v2021_v31 = vsub.f32 %v1956_v5, %v6483_v37  ;;  %4483 = vmatprep.subr.bf16.mxu1 %v2057_v4 }
 0x3dc   :  { %4513 = vmatprep.subr.bf16.mxu0 %v2080_v10  ;;  %v2070_v28 = vadd.f32 %v2038_v15, %v6487_v17  ;;  %v2039_v49 = vadd.f32 %v6495_v57, %v2023_v30 }
 0x3dd   :  { %4514 = vmatpush3.bf16.msra.mxu0 %v2080_v10  ;;  %v2068_v20 = vadd.f32 %v2036_v27, %v6493_v40  ;;  %v2037_v24 = vadd.f32 %v2021_v31, %v6501_v53  ;;  %v7826_v53 = vld [vmem:[#allocation51_spill] sm:$0xff]  ;;  %v7834_v31 = vld [vmem:[#allocation52_spill] sm:$0xff] }
 0x3de   :  { %4515 = vmatprep.subr.bf16.mxu0 %v2081_v3  ;;  %v2071_v38 = vadd.f32 %v2039_v49, %v6499_v29  ;;  %4484 = vmatpush3.bf16.msra.mxu1 %v2057_v4  ;;  %v2059_v44 = vpack.c.bf16 %v2039_v49, %v2038_v15  ;;  %v7836_v49 = vld [vmem:[#allocation33_spill] sm:$0xff] }
 0x3df   :  { %v2069_v55 = vadd.f32 %v2037_v24, %v6505_v34  ;;  %v4443_v54 = vpop.f32.mrb[88].mxu1  ;;  %v2058_v37 = vpack.c.bf16 %v2037_v24, %v2036_v27  ;;  %v7827_v34 = vld [vmem:[#allocation56_spill] sm:$0xff]  ;;  %v6656_v24 = vld [vmem:[#allocation8 + $0x18] sm:$0xff]  }
 0x3e0   :  { %v2026_v60 = vsub.f32 %v4443_v54, %v6511_v25  ;;  %v1969_v52 = vpop.f32.mrb[89].mxu1  ;;  %v2083_v17 = vpack.c.bf16 %v2071_v38, %v2070_v28  ;;  %v7835_v28 = vld [vmem:[#allocation68_spill] sm:$0xff]  ;;  %v7841_v54 = vld [vmem:[#allocation77_spill] sm:$0xff] }
 0x3e1   :  { %4516 = vmatpush3.bf16.msra.mxu0 %v2081_v3  ;;  %v2024_v57 = vsub.f32 %v1969_v52, %v6513_v26  ;;  %v4444_v19 = vpop.f32.mrb[90].mxu1  ;;  %4485 = vmatprep.subr.bf16.mxu1 %v2058_v37  ;;  %v2082_v40 = vpack.c.bf16 %v2069_v55, %v2068_v20  ;;  %v7837_v20 = vld [vmem:[#allocation65_spill] sm:$0xff]  ;;  %v7838_v38 = vld [vmem:[#allocation48_spill] sm:$0xff] }
 0x3e2   :  { %4470 = vmatmul.mubr.bf16.gmra.mrb[100].mxu0 %v7826_v53  ;;  %v2042_v29 = vadd.f32 %v6515_v61, %v2026_v60  ;;  %v2027_v0 = vsub.f32 %v4444_v19, %v6517_v51  ;;  %v1972_v63 = vpop.f32.mrb[91].mxu1  ;;  %4486 = vmatpush3.bf16.msra.mxu1 %v2058_v37  ;;  %v7840_v55 = vld [vmem:[#allocation44_spill] sm:$0xff]  ;;  %v6672_v37 = vld [vmem:[#allocation8 + $0x28] sm:$0xff]   ;;  %v7844_v52 = vld [vmem:[#allocation37_spill] sm:$0xff] }
 0x3e3   :  { %4473 = vmatprep.mubr.bf16.mxu0 %v7827_v34  ;;  %v2040_v25 = vadd.f32 %v2024_v57, %v6523_v32  ;;  %v2025_v4 = vsub.f32 %v1972_v63, %v6525_v8  ;;  %4487 = vmatprep.subr.bf16.mxu1 %v2059_v44  ;;  %v7842_v60 = vld [vmem:[#allocation55_spill] sm:$0xff]  ;;  %v7846_v57 = vld [vmem:[#allocation54_spill] sm:$0xff] }
 0x3e4   :  { %4517 = vmatprep.subr.bf16.mxu0 %v2082_v40  ;;  %v2074_v26 = vadd.f32 %v2042_v29, %v6521_v7  ;;  %v2043_v22 = vadd.f32 %v6531_v46, %v2027_v0  ;;  %v7847_v19 = vld [vmem:[#allocation87_spill] sm:$0xff]  ;;  %v7850_v0 = vld [vmem:[#allocation86_spill] sm:$0xff] }
 0x3e5   :  { %4518 = vmatpush3.bf16.msra.mxu0 %v2082_v40  ;;  %v2072_v23 = vadd.f32 %v2040_v25, %v6529_v42  ;;  %v2041_v61 = vadd.f32 %v2025_v4, %v6537_v47  ;;  %v7828_v47 = vld [vmem:[#allocation60_spill] sm:$0xff]  ;;  %v6688_v40 = vld [vmem:[#allocation8 + $0x38] sm:$0xff]   ;;  %v7848_v53 = vld [vmem:[#allocation59_spill] sm:$0xff] }
 0x3e6   :  { %4519 = vmatprep.subr.bf16.mxu0 %v2083_v17  ;;  %v2075_v51 = vadd.f32 %v2043_v22, %v6535_v36  ;;  %4488 = vmatpush3.bf16.msra.mxu1 %v2059_v44  ;;  %v2061_v13 = vpack.c.bf16 %v2043_v22, %v2042_v29  ;;  %v6661_v44 = vld [vmem:[#allocation8 + $0x20] sm:$0xff]   ;;  %v7851_v63 = vld [vmem:[#allocation71_spill] sm:$0xff]  ;;  %v7854_v4 = vld [vmem:[#allocation45_spill] sm:$0xff] }
 0x3e7   :  { %v2073_v32 = vadd.f32 %v2041_v61, %v6541_v41  ;;  %v4447_v48 = vpop.f32.mrb[92].mxu1  ;;  %v2060_v8 = vpack.c.bf16 %v2041_v61, %v2040_v25  ;;  %v7829_v41 = vld [vmem:[#allocation27_spill] sm:$0xff]  ;;  %v6693_v29 = vld [vmem:[#allocation7] sm:$0xff]   ;;  %v4905_v22 = vld [vmem:[#allocation7 + $0x10] sm:$0xff]  }
 0x3e8   :  { %v2030_v39 = vsub.f32 %v4447_v48, %v6547_v14  ;;  %v1985_v3 = vpop.f32.mrb[93].mxu1  ;;  %v2085_v7 = vpack.c.bf16 %v2075_v51, %v2074_v26  ;;  %7849 = vst [vmem:[#allocation38_spill] sm:$0xff] %v6693_v29  ;;  %v6699_v34 = vld [vmem:[#allocation8] sm:$0xff]   ;;  %v7853_v25 = vld [vmem:[#allocation35_spill] sm:$0xff]  ;;  %v4906_v51 = vld [vmem:[#allocation7 + $0x18] sm:$0xff]  }
 0x3e9   :  { %4520 = vmatpush3.bf16.msra.mxu0 %v2083_v17  ;;  %v2028_v46 = vsub.f32 %v1985_v3, %v6549_v11  ;;  %v4448_v50 = vpop.f32.mrb[94].mxu1  ;;  %4489 = vmatprep.subr.bf16.mxu1 %v2060_v8  ;;  %v2084_v42 = vpack.c.bf16 %v2073_v32, %v2072_v23  ;;  %v7845_v17 = vld [vmem:[#allocation29_spill] sm:$0xff]  ;;  %7852 = vst [vmem:[#allocation30_spill] sm:$0xff] %v6699_v34  ;;  %v4904_v26 = vld [vmem:[#allocation7 + $0x8] sm:$0xff]   ;;  %v7855_v23 = vld [vmem:[#allocation42_spill] sm:$0xff] }
 0x3ea   :  { %4474 = vmatmul.mubr.bf16.gmra.mrb[104].mxu0 %v7828_v47  ;;  %v2046_v36 = vadd.f32 %v6551_v33, %v2030_v39  ;;  %v2031_v58 = vsub.f32 %v4448_v50, %v6553_v59  ;;  %v1988_v10 = vpop.f32.mrb[95].mxu1  ;;  %4490 = vmatpush3.bf16.msra.mxu1 %v2060_v8  ;;  %v7856_v61 = vld [vmem:[#allocation34_spill] sm:$0xff]  ;;  %v7858_v48 = vld [vmem:[#allocation57_spill] sm:$0xff]  ;;  %v4908_v8 = vld [vmem:[#allocation7 + $0x28] sm:$0xff]  }
 0x3eb   :  { %4477 = vmatprep.mubr.bf16.mxu0 %v7829_v41  ;;  %v2044_v14 = vadd.f32 %v2028_v46, %v6559_v1  ;;  %v2029_v21 = vsub.f32 %v1988_v10, %v6561_v16  ;;  %4491 = vmatprep.subr.bf16.mxu1 %v2061_v13  ;;  %v7857_v32 = vld [vmem:[#allocation50_spill] sm:$0xff]  ;;  %v4909_v39 = vld [vmem:[#allocation7 + $0x30] sm:$0xff]   ;;  %v4910_v46 = vld [vmem:[#allocation7 + $0x38] sm:$0xff]  }
 0x3ec   :  { %4521 = vmatprep.subr.bf16.mxu0 %v2084_v42  ;;  %v2078_v11 = vadd.f32 %v2046_v36, %v6557_v6  ;;  %v2047_v15 = vadd.f32 %v6567_v2, %v2031_v58  ;;  %v7830_v6 = vld [vmem:[#allocation62_spill] sm:$0xff]  ;;  %v7831_v2 = vld [vmem:[#allocation61_spill] sm:$0xff]  ;;  %v4912_v47 = vld [vmem:[#allocation10 + $0x8] sm:$0xff]  }
 0x3ed   :  { %4522 = vmatpush3.bf16.msra.mxu0 %v2084_v42  ;;  %v2076_v30 = vadd.f32 %v2044_v14, %v6565_v43  ;;  %v2045_v33 = vadd.f32 %v2029_v21, %v6573_v62  ;;  %v7832_v43 = vld [vmem:[#allocation53_spill] sm:$0xff]  ;;  %v7833_v62 = vld [vmem:[#allocation43_spill] sm:$0xff]  ;;  %v7859_v3 = vld [vmem:[#allocation58_spill] sm:$0xff] }
 0x3ee   :  { %4523 = vmatprep.subr.bf16.mxu0 %v2085_v7  ;;  %v2079_v59 = vadd.f32 %v2047_v15, %v6571_v45  ;;  %4492 = vmatpush3.bf16.msra.mxu1 %v2061_v13  ;;  %v2063_v5 = vpack.c.bf16 %v2047_v15, %v2046_v36  ;;  %v6640_v45 = vld [vmem:[#allocation8 + $0x8] sm:$0xff]   ;;  %v4907_v13 = vld [vmem:[#allocation7 + $0x20] sm:$0xff]   ;;  %v7861_v42 = vld [vmem:[#allocation36_spill] sm:$0xff] }
 0x3ef   :  { %v2077_v1 = vadd.f32 %v2045_v33, %v6577_v12  ;;  %v2062_v35 = vpack.c.bf16 %v2045_v33, %v2044_v14  ;;  %v6645_v12 = vld [vmem:[#allocation8 + $0x10] sm:$0xff]   ;;  %v4911_v50 = vld [vmem:[#allocation10] sm:$0xff]   ;;  %v4915_v10 = vld [vmem:[#allocation10 + $0x18] sm:$0xff]  }
 0x3f0   :  { %v2087_v16 = vpack.c.bf16 %v2079_v59, %v2078_v11  ;;  %v6731_v36 = vld [vmem:[#allocation11] sm:$0xff]   ;;  %v4914_v58 = vld [vmem:[#allocation10 + $0x10] sm:$0xff]   ;;  %v4917_v14 = vld [vmem:[#allocation10 + $0x28] sm:$0xff]  }
 0x3f1   :  { %4524 = vmatpush3.bf16.msra.mxu0 %v2085_v7  ;;  %4493 = vmatprep.subr.bf16.mxu1 %v2062_v35  ;;  %v2086_v27 = vpack.c.bf16 %v2077_v1, %v2076_v30  ;;  %v7860_v7 = vld [vmem:[#allocation28_spill] sm:$0xff]  ;;  %v4916_v41 = vld [vmem:[#allocation10 + $0x20] sm:$0xff]   ;;  %v4919_v11 = vld [vmem:[#allocation10 + $0x38] sm:$0xff]  }
 0x3f2   :  { %4478 = vmatmul.mubr.bf16.gmra.mrb[108].mxu0 %v7830_v6  ;;  %4494 = vmatpush3.bf16.msra.mxu1 %v2062_v35  ;;  %v4918_v21 = vld [vmem:[#allocation10 + $0x30] sm:$0xff]  }
 0x3f3   :  { %4529 = vmatprep.mubr.bf16.mxu0 %v7831_v2  ;;  %4495 = vmatprep.subr.bf16.mxu1 %v2063_v5 }
 0x3f4   :  { %4525 = vmatprep.subr.bf16.mxu0 %v2086_v27 }
 0x3f5   :  { %4526 = vmatpush3.bf16.msra.mxu0 %v2086_v27 }
 0x3f6   :  { %4527 = vmatprep.subr.bf16.mxu0 %v2087_v16  ;;  %4496 = vmatpush3.bf16.msra.mxu1 %v2063_v5 }
 0x3f7   :  { %4545 = vmatprep.subr.bf16.mxu1 %v7832_v43 }
 0x3f9   :  { %4528 = vmatpush3.bf16.msra.mxu0 %v2087_v16  ;;  %4498 = vmatmul.mubr.bf16.vlgmr.msra.gmra.mrb[96].mxu1 %v6640_v45 }
 0x3fa   :  { %4577 = vmatprep.subr.bf16.mxu0 %v7833_v62  ;;  %4546 = vmatpush3.bf16.msra.mxu1 %v7832_v43 }
 0x3fb   :  { %4501 = vmatprep.mubr.bf16.mxu1 %v6645_v12  ;;  %4547 = vmatprep.subr.bf16.mxu1 %v7834_v31 }
 0x3fc   :  { %4530 = vmatmul.mubr.bf16.vlgmr.msra.gmra.mrb[112].mxu0 %v7835_v28 }
 0x3fd   :  { %4578 = vmatpush3.bf16.msra.mxu0 %v7833_v62  ;;  %4533 = vmatprep.mubr.bf16.mxu0 %v6330_v18  ;;  %v7839_v18 = vld [vmem:[#allocation64_spill] sm:$0xff] }
 0x3fe   :  { %4579 = vmatprep.subr.bf16.mxu0 %v7836_v49  ;;  %4548 = vmatpush3.bf16.msra.mxu1 %v7834_v31 }
 0x3ff   :  { %4549 = vmatprep.subr.bf16.mxu1 %v7837_v20 }
 0x401   :  { %4580 = vmatpush3.bf16.msra.mxu0 %v7836_v49  ;;  %4502 = vmatmul.mubr.bf16.gmra.mrb[100].mxu1 %v6656_v24 }
 0x402   :  { %4581 = vmatprep.subr.bf16.mxu0 %v7838_v38  ;;  %4550 = vmatpush3.bf16.msra.mxu1 %v7837_v20 }
 0x403   :  { %4505 = vmatprep.mubr.bf16.mxu1 %v6661_v44  ;;  %4551 = vmatprep.subr.bf16.mxu1 %v7839_v18 }
 0x404   :  { %4534 = vmatmul.mubr.bf16.gmra.mrb[116].mxu0 %v6370_v56  ;;  %v6677_v56 = vld [vmem:[#allocation8 + $0x30] sm:$0xff]  }
 0x405   :  { %4582 = vmatpush3.bf16.msra.mxu0 %v7838_v38  ;;  %4537 = vmatprep.mubr.bf16.mxu0 %v6389_v9  ;;  %v7843_v9 = vld [vmem:[#allocation76_spill] sm:$0xff] }
 0x406   :  { %4583 = vmatprep.subr.bf16.mxu0 %v7840_v55  ;;  %4552 = vmatpush3.bf16.msra.mxu1 %v7839_v18 }
 0x407   :  { %4553 = vmatprep.subr.bf16.mxu1 %v7841_v54 }
 0x409   :  { %4584 = vmatpush3.bf16.msra.mxu0 %v7840_v55  ;;  %4506 = vmatmul.mubr.bf16.gmra.mrb[104].mxu1 %v6672_v37 }
 0x40a   :  { %4585 = vmatprep.subr.bf16.mxu0 %v7842_v60  ;;  %4554 = vmatpush3.bf16.msra.mxu1 %v7841_v54 }
 0x40b   :  { %4509 = vmatprep.mubr.bf16.mxu1 %v6677_v56  ;;  %4555 = vmatprep.subr.bf16.mxu1 %v7843_v9 }
 0x40c   :  { %4538 = vmatmul.mubr.bf16.gmra.mrb[120].mxu0 %v7844_v52 }
 0x40d   :  { %4586 = vmatpush3.bf16.msra.mxu0 %v7842_v60  ;;  %4541 = vmatprep.mubr.bf16.mxu0 %v7845_v17 }
 0x40e   :  { %4587 = vmatprep.subr.bf16.mxu0 %v7846_v57  ;;  %4556 = vmatpush3.bf16.msra.mxu1 %v7843_v9 }
 0x40f   :  { %4557 = vmatprep.subr.bf16.mxu1 %v7847_v19 }
 0x411   :  { %4588 = vmatpush3.bf16.msra.mxu0 %v7846_v57  ;;  %4510 = vmatmul.mubr.bf16.gmra.mrb[108].mxu1 %v6688_v40 }
 0x412   :  { %4589 = vmatprep.subr.bf16.mxu0 %v7848_v53  ;;  %4558 = vmatpush3.bf16.msra.mxu1 %v7847_v19 }
 0x413   :  { %4561 = vmatprep.mubr.bf16.mxu1 %v6693_v29  ;;  %4559 = vmatprep.subr.bf16.mxu1 %v7850_v0 }
 0x414   :  { %4542 = vmatmul.mubr.bf16.gmra.mrb[124].mxu0 %v7851_v63 }
 0x415   :  { %4590 = vmatpush3.bf16.msra.mxu0 %v7848_v53  ;;  %4593 = vmatprep.mubr.bf16.mxu0 %v6699_v34 }
 0x416   :  { %4591 = vmatprep.subr.bf16.mxu0 %v7853_v25  ;;  %4560 = vmatpush3.bf16.msra.mxu1 %v7850_v0 }
 0x417   :  { %4609 = vmatprep.subr.bf16.mxu1 %v7854_v4 }
 0x419   :  { %4592 = vmatpush3.bf16.msra.mxu0 %v7853_v25  ;;  %4562 = vmatmul.mubr.bf16.vlgmr.msra.gmra.mrb[112].mxu1 %v4904_v26 }
 0x41a   :  { %4641 = vmatprep.subr.bf16.mxu0 %v6693_v29  ;;  %4610 = vmatpush3.bf16.msra.mxu1 %v7854_v4 }
 0x41b   :  { %4565 = vmatprep.mubr.bf16.mxu1 %v4905_v22  ;;  %4611 = vmatprep.subr.bf16.mxu1 %v7855_v23 }
 0x41c   :  { %4594 = vmatmul.mubr.bf16.vlgmr.msra.gmra.mrb[128].mxu0 %v6640_v45 }
 0x41d   :  { %4597 = vmatprep.mubr.bf16.mxu0 %v6645_v12  ;;  %4642 = vmatpush3.bf16.msra.mxu0 %v6693_v29  ;;  %v6926_v29 = vld [vmem:[#allocation14 + $0x30] sm:$0xff] }
 0x41e   :  { %4643 = vmatprep.subr.bf16.mxu0 %v4904_v26  ;;  %4612 = vmatpush3.bf16.msra.mxu1 %v7855_v23 }
 0x41f   :  { %4613 = vmatprep.subr.bf16.mxu1 %v7856_v61 }
 0x421   :  { %4644 = vmatpush3.bf16.msra.mxu0 %v4904_v26  ;;  %4566 = vmatmul.mubr.bf16.gmra.mrb[116].mxu1 %v4906_v51 }
 0x422   :  { %4645 = vmatprep.subr.bf16.mxu0 %v4905_v22  ;;  %4614 = vmatpush3.bf16.msra.mxu1 %v7856_v61 }
 0x423   :  { %4569 = vmatprep.mubr.bf16.mxu1 %v4907_v13  ;;  %4615 = vmatprep.subr.bf16.mxu1 %v7857_v32 }
 0x424   :  { %4598 = vmatmul.mubr.bf16.gmra.mrb[132].mxu0 %v6656_v24 }
 0x425   :  { %4601 = vmatprep.mubr.bf16.mxu0 %v6661_v44  ;;  %4646 = vmatpush3.bf16.msra.mxu0 %v4905_v22 }
 0x426   :  { %4647 = vmatprep.subr.bf16.mxu0 %v4906_v51  ;;  %4616 = vmatpush3.bf16.msra.mxu1 %v7857_v32 }
 0x427   :  { %4617 = vmatprep.subr.bf16.mxu1 %v7858_v48 }
 0x429   :  { %4648 = vmatpush3.bf16.msra.mxu0 %v4906_v51  ;;  %4570 = vmatmul.mubr.bf16.gmra.mrb[120].mxu1 %v4908_v8 }
 0x42a   :  { %4649 = vmatprep.subr.bf16.mxu0 %v4907_v13  ;;  %4618 = vmatpush3.bf16.msra.mxu1 %v7858_v48 }
 0x42b   :  { %4573 = vmatprep.mubr.bf16.mxu1 %v4909_v39  ;;  %4619 = vmatprep.subr.bf16.mxu1 %v7859_v3 }
 0x42c   :  { %4602 = vmatmul.mubr.bf16.gmra.mrb[136].mxu0 %v6672_v37 }
 0x42d   :  { %4605 = vmatprep.mubr.bf16.mxu0 %v6677_v56  ;;  %4650 = vmatpush3.bf16.msra.mxu0 %v4907_v13 }
 0x42e   :  { %4651 = vmatprep.subr.bf16.mxu0 %v4908_v8  ;;  %4620 = vmatpush3.bf16.msra.mxu1 %v7859_v3 }
 0x42f   :  { %4621 = vmatprep.subr.bf16.mxu1 %v7860_v7 }
 0x431   :  { %4652 = vmatpush3.bf16.msra.mxu0 %v4908_v8  ;;  %4574 = vmatmul.mubr.bf16.gmra.mrb[124].mxu1 %v4910_v46 }
 0x432   :  { %4653 = vmatprep.subr.bf16.mxu0 %v4909_v39  ;;  %4622 = vmatpush3.bf16.msra.mxu1 %v7860_v7 }
 0x433   :  { %4625 = vmatprep.mubr.bf16.mxu1 %v4911_v50  ;;  %4623 = vmatprep.subr.bf16.mxu1 %v7861_v42 }
 0x434   :  { %4606 = vmatmul.mubr.bf16.gmra.mrb[140].mxu0 %v6688_v40 }
 0x435   :  { %4654 = vmatpush3.bf16.msra.mxu0 %v4909_v39 }
 0x436   :  { %4655 = vmatprep.subr.bf16.mxu0 %v4910_v46  ;;  %4624 = vmatpush3.bf16.msra.mxu1 %v7861_v42 }
 0x437   :  { %4673 = vmatprep.subr.bf16.mxu1 %v6699_v34 }
 0x439   :  { %4656 = vmatpush3.bf16.msra.mxu0 %v4910_v46  ;;  %4626 = vmatmul.mubr.bf16.vlgmr.msra.gmra.mrb[128].mxu1 %v4912_v47 }
 0x43a   :  { %4705 = vmatprep.subr.bf16.mxu0 %v6731_v36  ;;  %4629 = vmatprep.mubr.bf16.mxu1 %v4914_v58 }
 0x43b   :  { %4674 = vmatpush3.bf16.msra.mxu1 %v6699_v34 }
 0x43c   :  { %4675 = vmatprep.subr.bf16.mxu1 %v6640_v45 }
 0x43f   :  { %4676 = vmatpush3.bf16.msra.mxu1 %v6640_v45 }
 0x440   :  { %4677 = vmatprep.subr.bf16.mxu1 %v6645_v12 }
 0x441   :  { %4630 = vmatmul.mubr.bf16.gmra.mrb[132].mxu1 %v4915_v10 }
 0x442   :  { %4633 = vmatprep.mubr.bf16.mxu1 %v4916_v41 }
 0x443   :  { %4678 = vmatpush3.bf16.msra.mxu1 %v6645_v12 }
 0x444   :  { %4679 = vmatprep.subr.bf16.mxu1 %v6656_v24 }
 0x447   :  { %4680 = vmatpush3.bf16.msra.mxu1 %v6656_v24 }
 0x448   :  { %4681 = vmatprep.subr.bf16.mxu1 %v6661_v44 }
 0x449   :  { %4634 = vmatmul.mubr.bf16.gmra.mrb[136].mxu1 %v4917_v14 }
 0x44a   :  { %4637 = vmatprep.mubr.bf16.mxu1 %v4918_v21 }
 0x44b   :  { %4682 = vmatpush3.bf16.msra.mxu1 %v6661_v44 }
 0x44c   :  { %4683 = vmatprep.subr.bf16.mxu1 %v6672_v37 }
 0x44f   :  { %4684 = vmatpush3.bf16.msra.mxu1 %v6672_v37 }
 0x450   :  { %4685 = vmatprep.subr.bf16.mxu1 %v6677_v56 }
 0x451   :  { %4638 = vmatmul.mubr.bf16.gmra.mrb[140].mxu1 %v4919_v11 }
 0x453   :  { %4686 = vmatpush3.bf16.msra.mxu1 %v6677_v56 }
 0x454   :  { %4687 = vmatprep.subr.bf16.mxu1 %v6688_v40 }
 0x457   :  { %4688 = vmatpush3.bf16.msra.mxu1 %v6688_v40 }
 0x4ad   :  { %v4467_v15 = vpop.f32.mrb[96].mxu0 }
 0x4ae   :  { %v2122_v30 = vpop.f32.mrb[97].mxu0 }
 0x4af   :  { %v4468_v33 = vpop.f32.mrb[98].mxu0 }
 0x4b0   :  { %v2125_v59 = vpop.f32.mrb[99].mxu0 }
 0x4b5   :  { %v4471_v5 = vpop.f32.mrb[100].mxu0 }
 0x4b6   :  { %v2138_v1 = vpop.f32.mrb[101].mxu0 }
 0x4b7   :  { %v4472_v35 = vpop.f32.mrb[102].mxu0 }
 0x4b8   :  { %v6749_v16 = vpop.f32.mrb[103].mxu0 }
 0x4bd   :  { %v6751_v27 = vpop.f32.mrb[104].mxu0 }
 0x4be   :  { %v6753_v6 = vpop.f32.mrb[105].mxu0 }
 0x4bf   :  { %v6755_v2 = vpop.f32.mrb[106].mxu0 }
 0x4c0   :  { %v6757_v43 = vpop.f32.mrb[107].mxu0 }
 0x4c5   :  { %v6759_v45 = vpop.f32.mrb[108].mxu0 }
 0x4c6   :  { %v6761_v62 = vpop.f32.mrb[109].mxu0 }
 0x4c7   :  { %v6763_v12 = vpop.f32.mrb[110].mxu0 }
 0x4c8   :  { %v6765_v31 = vpop.f32.mrb[111].mxu0 }
 0x4cc   :  { %v4499_v28 = vpop.f32.mrb[96].mxu1 }
 0x4cd   :  { %v2381_v49 = vadd.f32 %v4499_v28, %v4467_v15  ;;  %v2219_v20 = vpop.f32.mrb[97].mxu1 }
 0x4ce   :  { %v2379_v38 = vadd.f32 %v2219_v20, %v2122_v30  ;;  %v4500_v44 = vpop.f32.mrb[98].mxu1 }
 0x4cf   :  { %v4531_v24 = vpop.f32.mrb[112].mxu0  ;;  %2429 = vst [vmem:[#allocation16 + $0x10] sm:$0xff] %v2381_v49  ;;  %v2382_v54 = vadd.f32 %v4500_v44, %v4468_v33  ;;  %v2222_v37 = vpop.f32.mrb[99].mxu1 }
 0x4d0   :  { %v2397_v18 = vsub.f32 %v4531_v24, %v4467_v15  ;;  %v2316_v55 = vpop.f32.mrb[113].mxu0  ;;  %2427 = vst [vmem:[#allocation16] sm:$0xff] %v2379_v38  ;;  %v2380_v9 = vadd.f32 %v2222_v37, %v2125_v59 }
 0x4d1   :  { %v2395_v60 = vsub.f32 %v2316_v55, %v2122_v30  ;;  %v4532_v56 = vpop.f32.mrb[114].mxu0  ;;  %2430 = vst [vmem:[#allocation16 + $0x18] sm:$0xff] %v2382_v54 }
 0x4d2   :  { %v2413_v52 = vadd.f32 %v4499_v28, %v2397_v18  ;;  %v2398_v17 = vsub.f32 %v4532_v56, %v4468_v33  ;;  %v2319_v57 = vpop.f32.mrb[115].mxu0  ;;  %2428 = vst [vmem:[#allocation16 + $0x8] sm:$0xff] %v2380_v9 }
 0x4d3   :  { %v2411_v19 = vadd.f32 %v2395_v60, %v2219_v20  ;;  %v2396_v40 = vsub.f32 %v2319_v57, %v2125_v59 }
 0x4d4   :  { %2445 = vst [vmem:[#allocation17 + $0x10] sm:$0xff] %v2413_v52  ;;  %v2414_v53 = vadd.f32 %v4500_v44, %v2398_v17  ;;  %v4503_v63 = vpop.f32.mrb[100].mxu1 }
 0x4d5   :  { %2443 = vst [vmem:[#allocation17] sm:$0xff] %v2411_v19  ;;  %v2412_v0 = vadd.f32 %v2396_v40, %v2222_v37  ;;  %v2385_v25 = vadd.f32 %v4503_v63, %v4471_v5  ;;  %v2235_v4 = vpop.f32.mrb[101].mxu1 }
 0x4d6   :  { %2446 = vst [vmem:[#allocation17 + $0x18] sm:$0xff] %v2414_v53  ;;  %v2383_v22 = vadd.f32 %v2235_v4, %v2138_v1  ;;  %v4504_v23 = vpop.f32.mrb[102].mxu1 }
 0x4d7   :  { %2444 = vst [vmem:[#allocation17 + $0x8] sm:$0xff] %v2412_v0  ;;  %v4535_v26 = vpop.f32.mrb[116].mxu0  ;;  %2433 = vst [vmem:[#allocation16 + $0x30] sm:$0xff] %v2385_v25  ;;  %v2386_v13 = vadd.f32 %v4504_v23, %v4472_v35  ;;  %v2238_v32 = vpop.f32.mrb[103].mxu1 }
 0x4d8   :  { %v2401_v61 = vsub.f32 %v4535_v26, %v4471_v5  ;;  %v2332_v51 = vpop.f32.mrb[117].mxu0  ;;  %2431 = vst [vmem:[#allocation16 + $0x20] sm:$0xff] %v2383_v22  ;;  %v2384_v39 = vadd.f32 %v2238_v32, %v6749_v16 }
 0x4d9   :  { %v2399_v48 = vsub.f32 %v2332_v51, %v2138_v1  ;;  %v4536_v8 = vpop.f32.mrb[118].mxu0  ;;  %2434 = vst [vmem:[#allocation16 + $0x38] sm:$0xff] %v2386_v13 }
 0x4da   :  { %v2417_v3 = vadd.f32 %v4503_v63, %v2401_v61  ;;  %v2402_v7 = vsub.f32 %v4536_v8, %v4472_v35  ;;  %v2335_v46 = vpop.f32.mrb[119].mxu0  ;;  %2432 = vst [vmem:[#allocation16 + $0x28] sm:$0xff] %v2384_v39 }
 0x4db   :  { %v2415_v50 = vadd.f32 %v2399_v48, %v2235_v4  ;;  %v2400_v42 = vsub.f32 %v2335_v46, %v6749_v16 }
 0x4dc   :  { %2449 = vst [vmem:[#allocation17 + $0x30] sm:$0xff] %v2417_v3  ;;  %v2418_v47 = vadd.f32 %v4504_v23, %v2402_v7  ;;  %v4507_v10 = vpop.f32.mrb[104].mxu1 }
 0x4dd   :  { %2447 = vst [vmem:[#allocation17 + $0x20] sm:$0xff] %v2415_v50  ;;  %v2416_v58 = vadd.f32 %v2400_v42, %v2238_v32  ;;  %v2389_v41 = vadd.f32 %v4507_v10, %v6751_v27  ;;  %v2251_v14 = vpop.f32.mrb[105].mxu1 }
 0x4de   :  { %2450 = vst [vmem:[#allocation17 + $0x38] sm:$0xff] %v2418_v47  ;;  %v2387_v21 = vadd.f32 %v2251_v14, %v6753_v6  ;;  %v4508_v11 = vpop.f32.mrb[106].mxu1 }
 0x4df   :  { %2448 = vst [vmem:[#allocation17 + $0x28] sm:$0xff] %v2416_v58  ;;  %v4539_v15 = vpop.f32.mrb[120].mxu0  ;;  %2437 = vst [vmem:[#allocation16 + $0x50] sm:$0xff] %v2389_v41  ;;  %v2390_v30 = vadd.f32 %v4508_v11, %v6755_v2  ;;  %v2254_v33 = vpop.f32.mrb[107].mxu1 }
 0x4e0   :  { %v2405_v59 = vsub.f32 %v4539_v15, %v6751_v27  ;;  %v2348_v5 = vpop.f32.mrb[121].mxu0  ;;  %2435 = vst [vmem:[#allocation16 + $0x40] sm:$0xff] %v2387_v21  ;;  %v2388_v1 = vadd.f32 %v2254_v33, %v6757_v43 }
 0x4e1   :  { %v2403_v35 = vsub.f32 %v2348_v5, %v6753_v6  ;;  %v4540_v16 = vpop.f32.mrb[122].mxu0  ;;  %2438 = vst [vmem:[#allocation16 + $0x58] sm:$0xff] %v2390_v30 }
 0x4e2   :  { %v2421_v28 = vadd.f32 %v4507_v10, %v2405_v59  ;;  %v2406_v49 = vsub.f32 %v4540_v16, %v6755_v2  ;;  %v2351_v20 = vpop.f32.mrb[123].mxu0  ;;  %2436 = vst [vmem:[#allocation16 + $0x48] sm:$0xff] %v2388_v1 }
 0x4e3   :  { %v2419_v24 = vadd.f32 %v2403_v35, %v2251_v14  ;;  %v2404_v38 = vsub.f32 %v2351_v20, %v6757_v43 }
 0x4e4   :  { %2453 = vst [vmem:[#allocation17 + $0x50] sm:$0xff] %v2421_v28  ;;  %v2422_v44 = vadd.f32 %v4508_v11, %v2406_v49  ;;  %v4511_v18 = vpop.f32.mrb[108].mxu1 }
 0x4e5   :  { %2451 = vst [vmem:[#allocation17 + $0x40] sm:$0xff] %v2419_v24  ;;  %v2420_v27 = vadd.f32 %v2404_v38, %v2254_v33  ;;  %v2393_v55 = vadd.f32 %v4511_v18, %v6759_v45  ;;  %v2267_v54 = vpop.f32.mrb[109].mxu1 }
 0x4e6   :  { %2454 = vst [vmem:[#allocation17 + $0x58] sm:$0xff] %v2422_v44  ;;  %v2391_v6 = vadd.f32 %v2267_v54, %v6761_v62  ;;  %v4512_v37 = vpop.f32.mrb[110].mxu1 }
 0x4e7   :  { %2452 = vst [vmem:[#allocation17 + $0x48] sm:$0xff] %v2420_v27  ;;  %v4543_v60 = vpop.f32.mrb[124].mxu0  ;;  %2441 = vst [vmem:[#allocation16 + $0x70] sm:$0xff] %v2393_v55  ;;  %v2394_v2 = vadd.f32 %v4512_v37, %v6763_v12  ;;  %v2270_v56 = vpop.f32.mrb[111].mxu1  ;;  %v6872_v55 = vld [vmem:[#allocation14 + $0x10] sm:$0xff] }
 0x4e8   :  { %v2409_v43 = vsub.f32 %v4543_v60, %v6759_v45  ;;  %v2364_v9 = vpop.f32.mrb[125].mxu0  ;;  %2439 = vst [vmem:[#allocation16 + $0x60] sm:$0xff] %v2391_v6  ;;  %v2392_v52 = vadd.f32 %v2270_v56, %v6765_v31  ;;  %v6877_v6 = vld [vmem:[#allocation13] sm:$0xff] }
 0x4e9   :  { %v2407_v17 = vsub.f32 %v2364_v9, %v6761_v62  ;;  %v4544_v57 = vpop.f32.mrb[126].mxu0  ;;  %2442 = vst [vmem:[#allocation16 + $0x78] sm:$0xff] %v2394_v2 }
 0x4ea   :  { %v2425_v19 = vadd.f32 %v4511_v18, %v2409_v43  ;;  %v2410_v40 = vsub.f32 %v4544_v57, %v6763_v12  ;;  %v2367_v53 = vpop.f32.mrb[127].mxu0  ;;  %2440 = vst [vmem:[#allocation16 + $0x68] sm:$0xff] %v2392_v52  ;;  %v6867_v18 = vld [vmem:[#allocation13 + $0x10] sm:$0xff]  ;;  %v6888_v43 = vld [vmem:[#allocation14] sm:$0xff]  ;;  %v6893_v52 = vld [vmem:[#allocation13 + $0x18] sm:$0xff] }
 0x4eb   :  { %v2423_v0 = vadd.f32 %v2407_v17, %v2267_v54  ;;  %v2408_v63 = vsub.f32 %v2367_v53, %v6765_v31  ;;  %v6898_v57 = vld [vmem:[#allocation14 + $0x18] sm:$0xff] }
 0x4ec   :  { %2457 = vst [vmem:[#allocation17 + $0x70] sm:$0xff] %v2425_v19  ;;  %v2426_v25 = vadd.f32 %v4512_v37, %v2410_v40  ;;  %v6785_v4 = vpop.f32.mrb[112].mxu1 }
 0x4ed   :  { %2455 = vst [vmem:[#allocation17 + $0x60] sm:$0xff] %v2423_v0  ;;  %v2424_v45 = vadd.f32 %v2408_v63, %v2270_v56  ;;  %v6787_v26 = vpop.f32.mrb[113].mxu1  ;;  %v6907_v0 = vld [vmem:[#allocation13 + $0x8] sm:$0xff] }
 0x4ee   :  { %2458 = vst [vmem:[#allocation17 + $0x78] sm:$0xff] %v2426_v25  ;;  %v6789_v62 = vpop.f32.mrb[114].mxu1  ;;  %v6912_v25 = vld [vmem:[#allocation14 + $0x8] sm:$0xff] }
 0x4ef   :  { %2456 = vst [vmem:[#allocation17 + $0x68] sm:$0xff] %v2424_v45  ;;  %v6791_v22 = vpop.f32.mrb[128].mxu0  ;;  %v6793_v12 = vpop.f32.mrb[115].mxu1 }
 0x4f0   :  { %v2752_v23 = vsub.f32 %v6785_v4, %v6791_v22  ;;  %v6797_v31 = vpop.f32.mrb[129].mxu0 }
 0x4f1   :  { %v2750_v61 = vsub.f32 %v6787_v26, %v6797_v31  ;;  %v6801_v51 = vpop.f32.mrb[130].mxu0 }
 0x4f2   :  { %v2753_v13 = vsub.f32 %v6789_v62, %v6801_v51  ;;  %v6805_v32 = vpop.f32.mrb[131].mxu0  ;;  %v6870_v27 = vmul.f32 %v6867_v18, %v2752_v23  ;;  %v6875_v54 = vmul.f32 %v6872_v55, %v2752_v23  ;;  %v6917_v23 = vld [vmem:[#allocation13 + $0x30] sm:$0xff] }
 0x4f3   :  { %v2751_v48 = vsub.f32 %v6793_v12, %v6805_v32  ;;  %v6880_v37 = vmul.f32 %v6877_v6, %v2750_v61  ;;  %v6891_v9 = vmul.f32 %v6888_v43, %v2750_v61 }
 0x4f4   :  { %v6809_v8 = vpop.f32.mrb[116].mxu1  ;;  %v6896_v17 = vmul.f32 %v6893_v52, %v2753_v13  ;;  %v6901_v19 = vmul.f32 %v6898_v57, %v2753_v13 }
 0x4f5   :  { %v6811_v39 = vpop.f32.mrb[117].mxu1  ;;  %v6910_v63 = vmul.f32 %v6907_v0, %v2751_v48  ;;  %v6915_v45 = vmul.f32 %v6912_v25, %v2751_v48 }
 0x4f6   :  { %v6813_v3 = vpop.f32.mrb[118].mxu1 }
 0x4f7   :  { %v6815_v7 = vpop.f32.mrb[132].mxu0  ;;  %v6817_v46 = vpop.f32.mrb[119].mxu1 }
 0x4f8   :  { %v2756_v50 = vsub.f32 %v6809_v8, %v6815_v7  ;;  %v6821_v42 = vpop.f32.mrb[133].mxu0 }
 0x4f9   :  { %v2754_v47 = vsub.f32 %v6811_v39, %v6821_v42  ;;  %v6825_v58 = vpop.f32.mrb[134].mxu0 }
 0x4fa   :  { %v2757_v10 = vsub.f32 %v6813_v3, %v6825_v58  ;;  %v6829_v41 = vpop.f32.mrb[135].mxu0  ;;  %v6920_v61 = vmul.f32 %v6917_v23, %v2756_v50 }
 0x4fb   :  { %v2755_v14 = vsub.f32 %v6817_v46, %v6829_v41 }
 0x4fc   :  { %v6833_v21 = vpop.f32.mrb[120].mxu1 }
 0x4fd   :  { %v6835_v11 = vpop.f32.mrb[121].mxu1 }
 0x4fe   :  { %7862 = vst [vmem:[#allocation74_spill] sm:$0xff] %v6835_v11  ;;  %v6837_v15 = vpop.f32.mrb[122].mxu1 }
 0x4ff   :  { %7863 = vst [vmem:[#allocation73_spill] sm:$0xff] %v6837_v15  ;;  %v6839_v30 = vpop.f32.mrb[136].mxu0  ;;  %v6841_v33 = vpop.f32.mrb[123].mxu1 }
 0x500   :  { %7864 = vst [vmem:[#allocation75_spill] sm:$0xff] %v6839_v30  ;;  %7865 = vst [vmem:[#allocation78_spill] sm:$0xff] %v6841_v33  ;;  %v2760_v59 = vsub.f32 %v6833_v21, %v6839_v30  ;;  %v6845_v5 = vpop.f32.mrb[137].mxu0 }
 0x501   :  { %7866 = vst [vmem:[#allocation80_spill] sm:$0xff] %v6845_v5  ;;  %v2758_v1 = vsub.f32 %v6835_v11, %v6845_v5  ;;  %v6849_v35 = vpop.f32.mrb[138].mxu0  ;;  %v6978_v11 = vld [vmem:[#allocation14 + $0x40] sm:$0xff] }
 0x502   :  { %7867 = vst [vmem:[#allocation79_spill] sm:$0xff] %v6849_v35  ;;  %v2761_v16 = vsub.f32 %v6837_v15, %v6849_v35  ;;  %v6853_v28 = vpop.f32.mrb[139].mxu0 }
 0x503   :  { %7868 = vst [vmem:[#allocation82_spill] sm:$0xff] %v6853_v28  ;;  %v6857_v49 = vsub.f32 %v6841_v33, %v6853_v28  ;;  %v6953_v33 = vld [vmem:[#allocation13 + $0x28] sm:$0xff] }
 0x504   :  { %v6859_v20 = vpop.f32.mrb[124].mxu1  ;;  %v6956_v5 = vmul.f32 %v6953_v33, %v2755_v14 }
 0x505   :  { %7869 = vst [vmem:[#allocation81_spill] sm:$0xff] %v6859_v20  ;;  %v6861_v24 = vpop.f32.mrb[125].mxu1 }
 0x506   :  { %7870 = vst [vmem:[#allocation39_spill] sm:$0xff] %v6861_v24  ;;  %v6863_v38 = vpop.f32.mrb[126].mxu1  ;;  %7880 = vst [vmem:[#allocation70_spill] sm:$0xff] %v6956_v5 }
 0x507   :  { %7871 = vst [vmem:[#allocation31_spill] sm:$0xff] %v6863_v38  ;;  %v6865_v44 = vpop.f32.mrb[140].mxu0  ;;  %v6882_v60 = vpop.f32.mrb[127].mxu1 }
 0x508   :  { %7872 = vst [vmem:[#allocation32_spill] sm:$0xff] %v6865_v44  ;;  %7873 = vst [vmem:[#allocation40_spill] sm:$0xff] %v6882_v60  ;;  %v2764_v2 = vsub.f32 %v6859_v20, %v6865_v44  ;;  %v6886_v56 = vpop.f32.mrb[141].mxu0  ;;  %v6931_v44 = vld [vmem:[#allocation13 + $0x20] sm:$0xff] }
 0x509   :  { %7874 = vst [vmem:[#allocation84_spill] sm:$0xff] %v6886_v56  ;;  %v2762_v40 = vsub.f32 %v6861_v24, %v6886_v56  ;;  %v6905_v53 = vpop.f32.mrb[142].mxu0  ;;  %v6929_v56 = vmul.f32 %v6926_v29, %v2756_v50  ;;  %v6934_v48 = vmul.f32 %v6931_v44, %v2754_v47  ;;  %v6936_v24 = vld [vmem:[#allocation14 + $0x20] sm:$0xff]  ;;  %v6948_v50 = vld [vmem:[#allocation14 + $0x38] sm:$0xff] }
 0x50a   :  { %7875 = vst [vmem:[#allocation83_spill] sm:$0xff] %v6905_v53  ;;  %v2765_v13 = vsub.f32 %v6863_v38, %v6905_v53  ;;  %v6924_v34 = vpop.f32.mrb[143].mxu0  ;;  %v6939_v20 = vmul.f32 %v6936_v24, %v2754_v47  ;;  %v6943_v38 = vld [vmem:[#allocation13 + $0x38] sm:$0xff]  ;;  %v6951_v35 = vmul.f32 %v6948_v50, %v2757_v10  ;;  %v6958_v47 = vld [vmem:[#allocation14 + $0x28] sm:$0xff] }
 0x50b   :  { %7876 = vst [vmem:[#allocation85_spill] sm:$0xff] %v6924_v34  ;;  %v2763_v53 = vsub.f32 %v6882_v60, %v6924_v34  ;;  %v6946_v28 = vmul.f32 %v6943_v38, %v2757_v10  ;;  %v6961_v15 = vmul.f32 %v6958_v47, %v2755_v14  ;;  %v6963_v60 = vld [vmem:[#allocation13 + $0x50] sm:$0xff]  ;;  %v6981_v14 = vmul.f32 %v6978_v11, %v2758_v1 }
 0x50c   :  { %7877 = vst [vmem:[#allocation41_spill] sm:$0xff] %v6939_v20  ;;  %7879 = vst [vmem:[#allocation69_spill] sm:$0xff] %v6951_v35  ;;  %v4627_v34 = vpop.f32.mrb[128].mxu1  ;;  %v6966_v30 = vmul.f32 %v6963_v60, %v2760_v59  ;;  %v6973_v35 = vld [vmem:[#allocation13 + $0x40] sm:$0xff] }
 0x50d   :  { %7878 = vst [vmem:[#allocation67_spill] sm:$0xff] %v6946_v28  ;;  %7881 = vst [vmem:[#allocation72_spill] sm:$0xff] %v6961_v15  ;;  %v6968_v28 = vld [vmem:[#allocation14 + $0x50] sm:$0xff]  ;;  %v6976_v5 = vmul.f32 %v6973_v35, %v2758_v1  ;;  %v2768_v15 = vsub.f32 %v4627_v34, %v6785_v4  ;;  %v2687_v20 = vpop.f32.mrb[129].mxu1  ;;  %v7001_v4 = vld [vmem:[#allocation14 + $0x48] sm:$0xff] }
 0x50e   :  { %7882 = vst [vmem:[#allocation26_spill] sm:$0xff] %v6963_v60  ;;  %7883 = vst [vmem:[#allocation66_spill] sm:$0xff] %v6966_v30  ;;  %v6971_v10 = vmul.f32 %v6968_v28, %v2760_v59  ;;  %v6984_v60 = vld [vmem:[#allocation13 + $0x58] sm:$0xff]  ;;  %v2766_v1 = vsub.f32 %v2687_v20, %v6787_v26  ;;  %v4628_v34 = vpop.f32.mrb[130].mxu1 }
 0x50f   :  { %7885 = vst [vmem:[#allocation46_spill] sm:$0xff] %v6973_v35  ;;  %7886 = vst [vmem:[#allocation49_spill] sm:$0xff] %v6976_v5  ;;  %v6987_v30 = vmul.f32 %v6984_v60, %v2761_v16  ;;  %v6989_v59 = vld [vmem:[#allocation14 + $0x58] sm:$0xff]  ;;  %v6994_v35 = vld [vmem:[#allocation13 + $0x48] sm:$0xff]  ;;  %v2769_v26 = vsub.f32 %v4628_v34, %v6789_v62  ;;  %v2690_v20 = vpop.f32.mrb[131].mxu1 }
 0x510   :  { %7884 = vst [vmem:[#allocation63_spill] sm:$0xff] %v6971_v10  ;;  %7887 = vst [vmem:[#allocation47_spill] sm:$0xff] %v6981_v14  ;;  %v6992_v10 = vmul.f32 %v6989_v59, %v2761_v16  ;;  %v6998_v5 = vmul.f32 %v6994_v35, %v6857_v49  ;;  %v7005_v14 = vmul.f32 %v7001_v4, %v6857_v49  ;;  %v7036_v62 = vld [vmem:[#allocation14 + $0x78] sm:$0xff] }
 0x511   :  { %7888 = vst [vmem:[#allocation51_spill] sm:$0xff] %v6984_v60  ;;  %7889 = vst [vmem:[#allocation56_spill] sm:$0xff] %v6987_v30  ;;  %v7007_v30 = vld [vmem:[#allocation13 + $0x70] sm:$0xff] }
 0x512   :  { %7890 = vst [vmem:[#allocation60_spill] sm:$0xff] %v6992_v10  ;;  %7891 = vst [vmem:[#allocation27_spill] sm:$0xff] %v6994_v35  ;;  %v7010_v16 = vmul.f32 %v7007_v30, %v2764_v2  ;;  %v7012_v10 = vld [vmem:[#allocation14 + $0x70] sm:$0xff]  ;;  %v7019_v35 = vld [vmem:[#allocation13 + $0x60] sm:$0xff] }
 0x513   :  { %7892 = vst [vmem:[#allocation62_spill] sm:$0xff] %v6998_v5  ;;  %7893 = vst [vmem:[#allocation61_spill] sm:$0xff] %v7005_v14  ;;  %v7015_v60 = vmul.f32 %v7012_v10, %v2764_v2  ;;  %v2784_v5 = vsub.f32 %v2768_v15, %v6791_v22  ;;  %v7022_v49 = vmul.f32 %v7019_v35, %v2762_v40  ;;  %v7024_v14 = vld [vmem:[#allocation14 + $0x60] sm:$0xff] }
 0x514   :  { %7894 = vst [vmem:[#allocation53_spill] sm:$0xff] %v7007_v30  ;;  %7895 = vst [vmem:[#allocation43_spill] sm:$0xff] %v7010_v16  ;;  %v7027_v30 = vmul.f32 %v7024_v14, %v2762_v40  ;;  %v2782_v16 = vsub.f32 %v2766_v1, %v6797_v31  ;;  %v2767_v2 = vsub.f32 %v2690_v20, %v6793_v12 }
 0x515   :  { %7896 = vst [vmem:[#allocation52_spill] sm:$0xff] %v7015_v60  ;;  %7897 = vst [vmem:[#allocation68_spill] sm:$0xff] %v7022_v49  ;;  %v7031_v60 = vld [vmem:[#allocation13 + $0x78] sm:$0xff]  ;;  %v7039_v15 = vmul.f32 %v7036_v62, %v2765_v13  ;;  %v2816_v34 = vmul.f32 %v6872_v55, %v2784_v5  ;;  %v2864_v49 = vmul.f32 %v6867_v18, %v2784_v5 }
 0x516   :  { %7898 = vst [vmem:[#allocation33_spill] sm:$0xff] %v7027_v30  ;;  %v7034_v22 = vmul.f32 %v7031_v60, %v2765_v13  ;;  %v2785_v40 = vsub.f32 %v2769_v26, %v6801_v51  ;;  %v7044_v30 = vld [vmem:[#allocation13 + $0x68] sm:$0xff]  ;;  %v2814_v31 = vmul.f32 %v6888_v43, %v2782_v16  ;;  %v2862_v1 = vmul.f32 %v6877_v6, %v2782_v16  ;;  %v4631_v6 = vpop.f32.mrb[132].mxu1 }
 0x517   :  { %v7047_v12 = vmul.f32 %v7044_v30, %v2763_v53  ;;  %v2783_v20 = vsub.f32 %v2767_v2, %v6805_v32  ;;  %v2832_v5 = vsub.f32 %v6870_v27, %v2816_v34  ;;  %v2880_v51 = vadd.f32 %v2864_v49, %v6875_v54 }
 0x518   :  { %7899 = vst [vmem:[#allocation65_spill] sm:$0xff] %v7034_v22  ;;  %v7052_v22 = vld [vmem:[#allocation14 + $0x68] sm:$0xff]  ;;  %v2817_v18 = vmul.f32 %v6898_v57, %v2785_v40  ;;  %v2865_v55 = vmul.f32 %v6893_v52, %v2785_v40  ;;  %v2830_v32 = vsub.f32 %v6880_v37, %v2814_v31  ;;  %v2878_v16 = vadd.f32 %v2862_v1, %v6891_v9  ;;  %v2703_v57 = vpop.f32.mrb[133].mxu1 }
 0x519   :  { %v7055_v13 = vmul.f32 %v7052_v22, %v2763_v53  ;;  %v2815_v26 = vmul.f32 %v6912_v25, %v2783_v20  ;;  %v2863_v43 = vmul.f32 %v6907_v0, %v2783_v20  ;;  %v7065_v2 = vadd.f32 %v2880_v51, %v2832_v5  ;;  %v4632_v49 = vpop.f32.mrb[134].mxu1 }
 0x51a   :  { %v2833_v53 = vsub.f32 %v6896_v17, %v2817_v18  ;;  %v2881_v27 = vadd.f32 %v2865_v55, %v6901_v19  ;;  %v2772_v54 = vsub.f32 %v4631_v6, %v6809_v8  ;;  %v2770_v52 = vsub.f32 %v2703_v57, %v6811_v39  ;;  %v2706_v31 = vpop.f32.mrb[135].mxu1  ;;  %v7901_v6 = vld [vmem:[#allocation74_spill] sm:$0xff]  ;;  %v7906_v57 = vld [vmem:[#allocation73_spill] sm:$0xff] }
 0x51b   :  { %v2831_v25 = vsub.f32 %v6910_v63, %v2815_v26  ;;  %v2879_v0 = vadd.f32 %v2863_v43, %v6915_v45  ;;  %v7073_v34 = vadd.f32 %v2878_v16, %v2830_v32  ;;  %v2773_v8 = vsub.f32 %v4632_v49, %v6813_v3  ;;  %v7900_v26 = vld [vmem:[#allocation41_spill] sm:$0xff] }
 0x51c   :  { %v2895_v37 = vpack.c.bf16 %v2833_v53, %v2832_v5  ;;  %v2903_v9 = vpack.c.bf16 %v2881_v27, %v2880_v51  ;;  %v7075_v40 = vadd.f32 %v2881_v27, %v2833_v53  ;;  %v2788_v17 = vsub.f32 %v2772_v54, %v6815_v7  ;;  %v7904_v53 = vld [vmem:[#allocation67_spill] sm:$0xff] }
 0x51d   :  { %v2786_v19 = vsub.f32 %v2770_v52, %v6821_v42  ;;  %v2771_v39 = vsub.f32 %v2706_v31, %v6817_v46  ;;  %v2894_v1 = vpack.c.bf16 %v2831_v25, %v2830_v32  ;;  %v2902_v5 = vpack.c.bf16 %v2879_v0, %v2878_v16  ;;  %v7905_v27 = vld [vmem:[#allocation75_spill] sm:$0xff]  ;;  %v7909_v31 = vld [vmem:[#allocation78_spill] sm:$0xff] }
 0x51e   :  { %v2927_v63 = vpack.c.bf16 %v7075_v40, %v7065_v2  ;;  %v2820_v45 = vmul.f32 %v6926_v29, %v2788_v17  ;;  %v2868_v20 = vmul.f32 %v6917_v23, %v2788_v17  ;;  %v2789_v18 = vsub.f32 %v2773_v8, %v6825_v58 }
 0x51f   :  { %v2818_v51 = vmul.f32 %v6936_v24, %v2786_v19  ;;  %v2866_v7 = vmul.f32 %v6931_v44, %v2786_v19  ;;  %v2787_v42 = vsub.f32 %v2771_v39, %v6829_v41  ;;  %4657 = vmatprep.mubr.bf16.mxu0 %v2894_v1  ;;  %4689 = vmatprep.mubr.bf16.mxu1 %v2902_v5  ;;  %v4635_v41 = vpop.f32.mrb[136].mxu1  ;;  %v7911_v5 = vld [vmem:[#allocation79_spill] sm:$0xff] }
 0x520   :  { %4658 = vmatmul.mubr.bf16.vlgmr.msra.gmra.mrb[144].mxu0 %v2895_v37  ;;  %v7090_v3 = vsub.f32 %v6920_v61, %v2820_v45  ;;  %v7093_v46 = vadd.f32 %v2868_v20, %v6929_v56  ;;  %v7095_v29 = vadd.f32 %v2879_v0, %v2831_v25  ;;  %v2821_v23 = vmul.f32 %v6948_v50, %v2789_v18  ;;  %v2719_v61 = vpop.f32.mrb[137].mxu1  ;;  %v7907_v25 = vld [vmem:[#allocation69_spill] sm:$0xff]  ;;  %v7910_v45 = vld [vmem:[#allocation26_spill] sm:$0xff] }
 0x521   :  { %v2869_v24 = vmul.f32 %v6943_v38, %v2789_v18  ;;  %v2819_v44 = vmul.f32 %v6958_v47, %v2787_v42  ;;  %v2867_v58 = vmul.f32 %v6953_v33, %v2787_v42  ;;  %4690 = vmatmul.mubr.bf16.vlgmr.msra.gmra.mrb[144].mxu1 %v2903_v9  ;;  %v2776_v55 = vsub.f32 %v4635_v41, %v6833_v21  ;;  %v4636_v32 = vpop.f32.mrb[138].mxu1  ;;  %v7108_v47 = vld [vmem:[#allocation11 + $0x8] sm:$0xff]   ;;  %v7902_v33 = vld [vmem:[#allocation70_spill] sm:$0xff]  ;;  %v7903_v21 = vld [vmem:[#allocation72_spill] sm:$0xff] }
 0x522   :  { %4706 = vmatpush3.bf16.msra.mxu0 %v6731_v36  ;;  %v2834_v56 = vsub.f32 %v6934_v48, %v2818_v51  ;;  %v2882_v43 = vadd.f32 %v2866_v7, %v7900_v26  ;;  %v2926_v50 = vpack.c.bf16 %v7095_v29, %v7073_v34  ;;  %v2774_v38 = vsub.f32 %v2719_v61, %v7901_v6  ;;  %v2722_v49 = vpop.f32.mrb[139].mxu1  ;;  %v7908_v9 = vld [vmem:[#allocation80_spill] sm:$0xff]  ;;  %v7912_v42 = vld [vmem:[#allocation46_spill] sm:$0xff]  ;;  %v7916_v6 = vld [vmem:[#allocation49_spill] sm:$0xff] }
 0x523   :  { %4707 = vmatprep.subr.bf16.mxu0 %v7108_v47  ;;  %v7112_v16 = vsub.f32 %v7902_v33, %v2819_v44  ;;  %v7115_v36 = vadd.f32 %v2867_v58, %v7903_v21  ;;  %v7118_v48 = vsub.f32 %v7904_v53, %v2821_v23  ;;  %v2792_v54 = vsub.f32 %v2776_v55, %v7905_v27  ;;  %v7144_v61 = vld [vmem:[#allocation11 + $0x10] sm:$0xff]   ;;  %v7919_v27 = vld [vmem:[#allocation66_spill] sm:$0xff] }
 0x524   :  { %v2777_v52 = vsub.f32 %v4636_v32, %v7906_v57  ;;  %v7123_v0 = vadd.f32 %v2869_v24, %v7907_v25  ;;  %v7125_v37 = vadd.f32 %v2882_v43, %v2834_v56  ;;  %v2790_v17 = vsub.f32 %v2774_v38, %v7908_v9  ;;  %v7913_v24 = vld [vmem:[#allocation82_spill] sm:$0xff]  ;;  %v7917_v32 = vld [vmem:[#allocation47_spill] sm:$0xff]  ;;  %v7920_v57 = vld [vmem:[#allocation56_spill] sm:$0xff] }
 0x525   :  { %v2775_v19 = vsub.f32 %v2722_v49, %v7909_v31  ;;  %v2896_v8 = vpack.c.bf16 %v7112_v16, %v2834_v56  ;;  %v2904_v39 = vpack.c.bf16 %v7115_v36, %v2882_v43  ;;  %v2824_v1 = vmul.f32 %v6968_v28, %v2792_v54  ;;  %v7914_v28 = vld [vmem:[#allocation51_spill] sm:$0xff]  ;;  %v4639_v43 = vpop.f32.mrb[140].mxu1  ;;  %v7156_v9 = vld [vmem:[#allocation11 + $0x18] sm:$0xff]   ;;  %v7943_v34 = vld [vmem:[#allocation30_spill] sm:$0xff] }
 0x526   :  { %v2872_v20 = vmul.f32 %v7910_v45, %v2792_v54  ;;  %v2793_v51 = vsub.f32 %v2777_v52, %v7911_v5  ;;  %4708 = vmatpush3.bf16.msra.mxu0 %v7108_v47  ;;  %v2897_v7 = vpack.c.bf16 %v7118_v48, %v7090_v3  ;;  %v2822_v18 = vmul.f32 %v6978_v11, %v2790_v17  ;;  %v7915_v56 = vld [vmem:[#allocation27_spill] sm:$0xff]  ;;  %v2735_v53 = vpop.f32.mrb[141].mxu1  ;;  %v7925_v5 = vld [vmem:[#allocation32_spill] sm:$0xff] }
 0x527   :  { %v2870_v23 = vmul.f32 %v7912_v42, %v2790_v17  ;;  %v2791_v44 = vsub.f32 %v2775_v19, %v7913_v24  ;;  %4661 = vmatprep.mubr.bf16.mxu0 %v2896_v8  ;;  %4693 = vmatprep.mubr.bf16.mxu1 %v2904_v39  ;;  %v2905_v55 = vpack.c.bf16 %v7123_v0, %v7093_v46  ;;  %v7921_v49 = vld [vmem:[#allocation39_spill] sm:$0xff]  ;;  %v7922_v17 = vld [vmem:[#allocation62_spill] sm:$0xff]  ;;  %v7923_v19 = vld [vmem:[#allocation61_spill] sm:$0xff] }
 0x528   :  { %v2825_v58 = vmul.f32 %v6989_v59, %v2793_v51  ;;  %v2873_v41 = vmul.f32 %v7914_v28, %v2793_v51  ;;  %4662 = vmatmul.mubr.bf16.gmra.mrb[148].mxu0 %v2897_v7  ;;  %4709 = vmatprep.subr.bf16.mxu0 %v7144_v61  ;;  %v2838_v38 = vsub.f32 %v7916_v6, %v2822_v18  ;;  %v7918_v59 = vld [vmem:[#allocation81_spill] sm:$0xff]  ;;  %v7924_v39 = vld [vmem:[#allocation63_spill] sm:$0xff]  ;;  %v7929_v28 = vld [vmem:[#allocation40_spill] sm:$0xff] }
 0x529   :  { %v2823_v11 = vmul.f32 %v7001_v4, %v2791_v44  ;;  %v2871_v26 = vmul.f32 %v7915_v56, %v2791_v44  ;;  %v2886_v33 = vadd.f32 %v2870_v23, %v7917_v32  ;;  %4694 = vmatmul.mubr.bf16.gmra.mrb[148].mxu1 %v2905_v55  ;;  %v2780_v21 = vsub.f32 %v4639_v43, %v7918_v59  ;;  %v4640_v4 = vpop.f32.mrb[142].mxu1  ;;  %v7926_v7 = vld [vmem:[#allocation31_spill] sm:$0xff]  ;;  %v7927_v23 = vld [vmem:[#allocation60_spill] sm:$0xff]  ;;  %v7930_v6 = vld [vmem:[#allocation53_spill] sm:$0xff] }
 0x52a   :  { %4710 = vmatpush3.bf16.msra.mxu0 %v7144_v61  ;;  %v2840_v54 = vsub.f32 %v7919_v27, %v2824_v1  ;;  %v2841_v52 = vsub.f32 %v7920_v57, %v2825_v58  ;;  %v2778_v25 = vsub.f32 %v2735_v53, %v7921_v49  ;;  %v2888_v45 = vadd.f32 %v2872_v20, %v7924_v39  ;;  %v2738_v1 = vpop.f32.mrb[143].mxu1  ;;  %v7928_v44 = vld [vmem:[#allocation84_spill] sm:$0xff]  ;;  %v7931_v32 = vld [vmem:[#allocation83_spill] sm:$0xff]  ;;  %v7936_v39 = vld [vmem:[#allocation33_spill] sm:$0xff] }
 0x52b   :  { %4711 = vmatprep.subr.bf16.mxu0 %v7156_v9  ;;  %v2839_v31 = vsub.f32 %v7922_v17, %v2823_v11  ;;  %v2887_v8 = vadd.f32 %v2871_v26, %v7923_v19  ;;  %v2796_v51 = vsub.f32 %v2780_v21, %v7925_v5  ;;  %v2781_v18 = vsub.f32 %v4640_v4, %v7926_v7 }
 0x52c   :  { %v2899_v42 = vpack.c.bf16 %v2841_v52, %v2840_v54  ;;  %v2889_v24 = vadd.f32 %v2873_v41, %v7927_v23  ;;  %v2794_v58 = vsub.f32 %v2778_v25, %v7928_v44  ;;  %v2779_v55 = vsub.f32 %v2738_v1, %v7929_v28  ;;  %v7932_v41 = vld [vmem:[#allocation85_spill] sm:$0xff]  ;;  %v7934_v25 = vld [vmem:[#allocation43_spill] sm:$0xff] }
 0x52d   :  { %v2898_v56 = vpack.c.bf16 %v2839_v31, %v2838_v38  ;;  %v2906_v43 = vpack.c.bf16 %v2887_v8, %v2886_v33  ;;  %v2828_v11 = vmul.f32 %v7012_v10, %v2796_v51  ;;  %v2876_v26 = vmul.f32 %v7930_v6, %v2796_v51  ;;  %v7176_v10 = vld [vmem:[#allocation11 + $0x20] sm:$0xff]   ;;  %v7938_v51 = vld [vmem:[#allocation52_spill] sm:$0xff]  ;;  %v7188_v1 = vld [vmem:[#allocation11 + $0x28] sm:$0xff]  }
 0x52e   :  { %v2797_v20 = vsub.f32 %v2781_v18, %v7931_v32  ;;  %4712 = vmatpush3.bf16.msra.mxu0 %v7156_v9  ;;  %v2907_v59 = vpack.c.bf16 %v2889_v24, %v2888_v45  ;;  %v2826_v21 = vmul.f32 %v7024_v14, %v2794_v58  ;;  %v2874_v53 = vmul.f32 %v7019_v35, %v2794_v58  ;;  %v7935_v35 = vld [vmem:[#allocation68_spill] sm:$0xff] }
 0x52f   :  { %v2795_v27 = vsub.f32 %v2779_v55, %v7932_v41  ;;  %4665 = vmatprep.mubr.bf16.mxu0 %v2898_v56  ;;  %4697 = vmatprep.mubr.bf16.mxu1 %v2906_v43  ;;  %7933 = vst [vmem:[#allocation48_spill] sm:$0xff] %v7176_v10  ;;  %v2844_v4 = vsub.f32 %v7934_v25, %v2828_v11  ;;  %7939 = vst [vmem:[#allocation64_spill] sm:$0xff] %v7188_v1 }
 0x530   :  { %v2829_v57 = vmul.f32 %v7036_v62, %v2797_v20  ;;  %v2877_v49 = vmul.f32 %v7031_v60, %v2797_v20  ;;  %4666 = vmatmul.mubr.bf16.gmra.mrb[152].mxu0 %v2899_v42  ;;  %4713 = vmatprep.subr.bf16.mxu0 %v7176_v10  ;;  %v2842_v19 = vsub.f32 %v7935_v35, %v2826_v21  ;;  %v7937_v62 = vld [vmem:[#allocation65_spill] sm:$0xff] }
 0x531   :  { %v2827_v17 = vmul.f32 %v7052_v22, %v2795_v27  ;;  %v2875_v14 = vmul.f32 %v7044_v30, %v2795_v27  ;;  %v2890_v5 = vadd.f32 %v2874_v53, %v7936_v39  ;;  %4698 = vmatmul.mubr.bf16.gmra.mrb[152].mxu1 %v2907_v59  ;;  %v2892_v7 = vadd.f32 %v2876_v26, %v7938_v51  ;;  %v7201_v26 = vld [vmem:[#allocation11 + $0x30] sm:$0xff]  }
 0x532   :  { %4714 = vmatpush3.bf16.msra.mxu0 %v7176_v10  ;;  %v2845_v60 = vsub.f32 %v7937_v62, %v2829_v57  ;;  %v2893_v18 = vadd.f32 %v2877_v49, %v7039_v15  ;;  %v2915_v42 = vadd.f32 %v7115_v36, %v7112_v16  ;;  %v2916_v23 = vadd.f32 %v7093_v46, %v7090_v3 }
 0x533   :  { %4715 = vmatprep.subr.bf16.mxu0 %v7188_v1  ;;  %v2843_v22 = vsub.f32 %v7047_v12, %v2827_v17  ;;  %v2891_v30 = vadd.f32 %v2875_v14, %v7055_v13  ;;  %v2917_v28 = vadd.f32 %v7123_v0, %v7118_v48  ;;  %v2918_v15 = vadd.f32 %v2886_v33, %v2838_v38  ;;  %v7208_v33 = vld [vmem:[#allocation11 + $0x38] sm:$0xff]  }
 0x534   :  { %v2901_v44 = vpack.c.bf16 %v2845_v60, %v2844_v4  ;;  %v2909_v58 = vpack.c.bf16 %v2893_v18, %v2892_v7  ;;  %v2928_v43 = vpack.c.bf16 %v2915_v42, %v7125_v37  ;;  %v2919_v11 = vadd.f32 %v2887_v8, %v2839_v31  ;;  %7940 = vst [vmem:[#allocation44_spill] sm:$0xff] %v7201_v26 }
 0x535   :  { %v2900_v55 = vpack.c.bf16 %v2843_v22, %v2842_v19  ;;  %v2908_v56 = vpack.c.bf16 %v2891_v30, %v2890_v5  ;;  %v2929_v12 = vpack.c.bf16 %v2917_v28, %v2916_v23  ;;  %v2920_v13 = vadd.f32 %v2888_v45, %v2840_v54  ;;  %7941 = vst [vmem:[#allocation77_spill] sm:$0xff] %v7208_v33  ;;  %v7942_v54 = vld [vmem:[#allocation38_spill] sm:$0xff] }
 0x536   :  { %4716 = vmatpush3.bf16.msra.mxu0 %v7188_v1  ;;  %v2921_v6 = vadd.f32 %v2889_v24, %v2841_v52  ;;  %v2922_v16 = vadd.f32 %v2890_v5, %v2842_v19  ;;  %v2930_v3 = vpack.c.bf16 %v2919_v11, %v2918_v15  ;;  %v2923_v46 = vadd.f32 %v2891_v30, %v2843_v22 }
 0x537   :  { %4669 = vmatprep.mubr.bf16.mxu0 %v2900_v55  ;;  %4701 = vmatprep.mubr.bf16.mxu1 %v2908_v56  ;;  %v2924_v36 = vadd.f32 %v2892_v7, %v2844_v4  ;;  %v2925_v0 = vadd.f32 %v2893_v18, %v2845_v60 }
 0x538   :  { %4670 = vmatmul.mubr.bf16.gmra.mrb[156].mxu0 %v2901_v44  ;;  %4717 = vmatprep.subr.bf16.mxu0 %v7201_v26  ;;  %v2931_v48 = vpack.c.bf16 %v2921_v6, %v2920_v13  ;;  %v2932_v37 = vpack.c.bf16 %v2923_v46, %v2922_v16 }
 0x539   :  { %4721 = vmatprep.mubr.bf16.mxu0 %v2926_v50  ;;  %4702 = vmatmul.mubr.bf16.gmra.mrb[156].mxu1 %v2909_v58  ;;  %v2933_v38 = vpack.c.bf16 %v2925_v0, %v2924_v36 }
 0x53a   :  { %4718 = vmatpush3.bf16.msra.mxu0 %v7201_v26  ;;  %4753 = vmatprep.mubr.bf16.mxu1 %v7942_v54 }
 0x53b   :  { %4719 = vmatprep.subr.bf16.mxu0 %v7208_v33 }
 0x53e   :  { %4720 = vmatpush3.bf16.msra.mxu0 %v7208_v33 }
 0x541   :  { %4722 = vmatmul.mubr.bf16.vlgmr.msra.gmra.mrb[160].mxu0 %v2927_v63 }
 0x542   :  { %4725 = vmatprep.mubr.bf16.mxu0 %v2928_v43 }
 0x549   :  { %4726 = vmatmul.mubr.bf16.gmra.mrb[164].mxu0 %v2929_v12 }
 0x54a   :  { %4729 = vmatprep.mubr.bf16.mxu0 %v2930_v3 }
 0x551   :  { %4730 = vmatmul.mubr.bf16.gmra.mrb[168].mxu0 %v2931_v48 }
 0x552   :  { %4733 = vmatprep.mubr.bf16.mxu0 %v2932_v37 }
 0x559   :  { %4734 = vmatmul.mubr.bf16.gmra.mrb[172].mxu0 %v2933_v38 }
 0x55a   :  { %4785 = vmatprep.mubr.bf16.mxu0 %v7943_v34 }
 0x5f3   :  { %v7217_v29 = vpop.f32.mrb[144].mxu0 }
 0x5f4   :  { %v7219_v50 = vpop.f32.mrb[144].mxu1  ;;  %v7221_v52 = vpop.f32.mrb[145].mxu0 }
 0x5f5   :  { %v7225_v31 = vadd.f32 %v7219_v50, %v7217_v29  ;;  %v7227_v2 = vpop.f32.mrb[145].mxu1  ;;  %v7229_v40 = vpop.f32.mrb[146].mxu0 }
 0x5f6   :  { %v7233_v63 = vadd.f32 %v7227_v2, %v7221_v52  ;;  %v7235_v8 = vpop.f32.mrb[146].mxu1  ;;  %v7237_v45 = vpop.f32.mrb[147].mxu0 }
 0x5f7   :  { %v7241_v24 = vadd.f32 %v7235_v8, %v7229_v40  ;;  %v7243_v32 = vpop.f32.mrb[147].mxu1 }
 0x5f8   :  { %v7247_v20 = vadd.f32 %v7243_v32, %v7237_v45 }
 0x5f9   :  { %v3274_v59 = vpack.c.bf16 %v7241_v24, %v7225_v31 }
 0x5fa   :  { %v3273_v21 = vpack.c.bf16 %v7247_v20, %v7233_v63 }
 0x5fb   :  { %v7253_v53 = vpop.f32.mrb[148].mxu0 }
 0x5fc   :  { %4737 = vmatprep.subr.bf16.mxu1 %v3273_v21  ;;  %v7255_v41 = vpop.f32.mrb[149].mxu0  ;;  %v7257_v27 = vpop.f32.mrb[148].mxu1 }
 0x5fd   :  { %4738 = vmatpush3.bf16.msra.mxu1 %v3273_v21  ;;  %v7259_v57 = vpop.f32.mrb[150].mxu0  ;;  %v7263_v49 = vadd.f32 %v7257_v27, %v7253_v53  ;;  %v7265_v25 = vpop.f32.mrb[149].mxu1 }
 0x5fe   :  { %4739 = vmatprep.subr.bf16.mxu1 %v3274_v59  ;;  %v7267_v4 = vpop.f32.mrb[151].mxu0  ;;  %v7271_v17 = vadd.f32 %v7265_v25, %v7255_v41  ;;  %v7273_v14 = vpop.f32.mrb[150].mxu1 }
 0x5ff   :  { %v7277_v35 = vadd.f32 %v7273_v14, %v7259_v57  ;;  %v7279_v19 = vpop.f32.mrb[151].mxu1 }
 0x600   :  { %v7283_v39 = vadd.f32 %v7279_v19, %v7267_v4 }
 0x601   :  { %4740 = vmatpush3.bf16.msra.mxu1 %v3274_v59  ;;  %v3276_v5 = vpack.c.bf16 %v7277_v35, %v7263_v49 }
 0x602   :  { %v3275_v62 = vpack.c.bf16 %v7283_v39, %v7271_v17 }
 0x603   :  { %v7289_v60 = vpop.f32.mrb[152].mxu0 }
 0x604   :  { %v7291_v51 = vpop.f32.mrb[153].mxu0  ;;  %v7293_v7 = vpop.f32.mrb[152].mxu1  ;;  %4741 = vmatprep.subr.bf16.mxu1 %v3275_v62 }
 0x605   :  { %v7295_v18 = vpop.f32.mrb[154].mxu0  ;;  %v7299_v22 = vadd.f32 %v7293_v7, %v7289_v60  ;;  %v7301_v30 = vpop.f32.mrb[153].mxu1  ;;  %4742 = vmatpush3.bf16.msra.mxu1 %v3275_v62 }
 0x606   :  { %v7303_v42 = vpop.f32.mrb[155].mxu0  ;;  %v7307_v23 = vadd.f32 %v7301_v30, %v7291_v51  ;;  %v7309_v44 = vpop.f32.mrb[154].mxu1  ;;  %4743 = vmatprep.subr.bf16.mxu1 %v3276_v5 }
 0x607   :  { %v7313_v58 = vadd.f32 %v7309_v44, %v7295_v18  ;;  %v7315_v28 = vpop.f32.mrb[155].mxu1 }
 0x608   :  { %v7319_v15 = vadd.f32 %v7315_v28, %v7303_v42 }
 0x609   :  { %v3278_v55 = vpack.c.bf16 %v7313_v58, %v7299_v22  ;;  %4744 = vmatpush3.bf16.msra.mxu1 %v3276_v5 }
 0x60a   :  { %v3277_v56 = vpack.c.bf16 %v7319_v15, %v7307_v23 }
 0x60b   :  { %v7325_v43 = vpop.f32.mrb[156].mxu0 }
 0x60c   :  { %v7327_v11 = vpop.f32.mrb[157].mxu0  ;;  %v7329_v12 = vpop.f32.mrb[156].mxu1  ;;  %4745 = vmatprep.subr.bf16.mxu1 %v3277_v56 }
 0x60d   :  { %v7331_v13 = vpop.f32.mrb[158].mxu0  ;;  %v7335_v6 = vadd.f32 %v7329_v12, %v7325_v43  ;;  %v7337_v16 = vpop.f32.mrb[157].mxu1  ;;  %4746 = vmatpush3.bf16.msra.mxu1 %v3277_v56 }
 0x60e   :  { %v7339_v3 = vpop.f32.mrb[159].mxu0  ;;  %v7343_v46 = vadd.f32 %v7337_v16, %v7327_v11  ;;  %v7345_v36 = vpop.f32.mrb[158].mxu1  ;;  %4747 = vmatprep.subr.bf16.mxu1 %v3278_v55 }
 0x60f   :  { %v7349_v48 = vadd.f32 %v7345_v36, %v7331_v13  ;;  %v7351_v0 = vpop.f32.mrb[159].mxu1 }
 0x610   :  { %v7355_v37 = vadd.f32 %v7351_v0, %v7339_v3 }
 0x611   :  { %v3280_v38 = vpack.c.bf16 %v7349_v48, %v7335_v6  ;;  %4748 = vmatpush3.bf16.msra.mxu1 %v3278_v55 }
 0x612   :  { %v3279_v54 = vpack.c.bf16 %v7355_v37, %v7343_v46 }
 0x614   :  { %v4723_v34 = vpop.f32.mrb[160].mxu0  ;;  %4749 = vmatprep.subr.bf16.mxu1 %v3279_v54 }
 0x615   :  { %v3243_v59 = vsub.f32 %v4723_v34, %v7217_v29  ;;  %v3162_v21 = vpop.f32.mrb[161].mxu0  ;;  %4750 = vmatpush3.bf16.msra.mxu1 %v3279_v54 }
 0x616   :  { %v3241_v5 = vsub.f32 %v3162_v21, %v7221_v52  ;;  %v4724_v62 = vpop.f32.mrb[162].mxu0  ;;  %4751 = vmatprep.subr.bf16.mxu1 %v3280_v38 }
 0x617   :  { %v3259_v56 = vadd.f32 %v7219_v50, %v3243_v59  ;;  %v3244_v33 = vsub.f32 %v4724_v62, %v7229_v40  ;;  %v3165_v26 = vpop.f32.mrb[163].mxu0 }
 0x618   :  { %v3257_v55 = vadd.f32 %v3241_v5, %v7227_v2  ;;  %v3242_v1 = vsub.f32 %v3165_v26, %v7237_v45  ;;  %v4959_v26 = vld [vmem:[#allocation7 + $0x8] sm:$0xff]  }
 0x619   :  { %v3291_v10 = vadd.f32 %v3259_v56, %v7225_v31  ;;  %v3260_v29 = vadd.f32 %v7235_v8, %v3244_v33  ;;  %4752 = vmatpush3.bf16.msra.mxu1 %v3280_v38 }
 0x61a   :  { %v3289_v34 = vadd.f32 %v3257_v55, %v7233_v63  ;;  %v3258_v52 = vadd.f32 %v3242_v1, %v7243_v32  ;;  %v4960_v1 = vld [vmem:[#allocation7 + $0x10] sm:$0xff]  }
 0x61b   :  { %v3292_v54 = vadd.f32 %v3260_v29, %v7241_v24  ;;  %v3282_v50 = vpack.c.bf16 %v3260_v29, %v3259_v56 }
 0x61c   :  { %v3290_v40 = vadd.f32 %v3258_v52, %v7247_v20  ;;  %v4727_v59 = vpop.f32.mrb[164].mxu0  ;;  %v3281_v21 = vpack.c.bf16 %v3258_v52, %v3257_v55  ;;  %4754 = vmatmul.mubr.bf16.vlgmr.msra.gmra.mrb[160].mxu1 %v4959_v26 }
 0x61d   :  { %v3247_v2 = vsub.f32 %v4727_v59, %v7253_v53  ;;  %v3178_v5 = vpop.f32.mrb[165].mxu0  ;;  %v3306_v31 = vpack.c.bf16 %v3292_v54, %v3291_v10  ;;  %4757 = vmatprep.mubr.bf16.mxu1 %v4960_v1 }
 0x61e   :  { %v3245_v33 = vsub.f32 %v3178_v5, %v7255_v41  ;;  %v4728_v8 = vpop.f32.mrb[166].mxu0  ;;  %4769 = vmatprep.subr.bf16.mxu0 %v3281_v21  ;;  %v3305_v63 = vpack.c.bf16 %v3290_v40, %v3289_v34 }
 0x61f   :  { %v3263_v45 = vadd.f32 %v7257_v27, %v3247_v2  ;;  %v3248_v24 = vsub.f32 %v4728_v8, %v7259_v57  ;;  %v3181_v32 = vpop.f32.mrb[167].mxu0  ;;  %4770 = vmatpush3.bf16.msra.mxu0 %v3281_v21 }
 0x620   :  { %v3261_v20 = vadd.f32 %v3245_v33, %v7265_v25  ;;  %v3246_v53 = vsub.f32 %v3181_v32, %v7267_v4  ;;  %4771 = vmatprep.subr.bf16.mxu0 %v3282_v50  ;;  %4801 = vmatprep.subr.bf16.mxu1 %v3305_v63 }
 0x621   :  { %v3295_v10 = vadd.f32 %v3263_v45, %v7263_v49  ;;  %v3264_v41 = vadd.f32 %v7273_v14, %v3248_v24  ;;  %4802 = vmatpush3.bf16.msra.mxu1 %v3305_v63 }
 0x622   :  { %v3293_v38 = vadd.f32 %v3261_v20, %v7271_v17  ;;  %v3262_v62 = vadd.f32 %v3246_v53, %v7279_v19  ;;  %4803 = vmatprep.subr.bf16.mxu1 %v3306_v31  ;;  %v4961_v17 = vld [vmem:[#allocation7 + $0x18] sm:$0xff]   ;;  %v7944_v53 = vld [vmem:[#allocation48_spill] sm:$0xff] }
 0x623   :  { %v3296_v27 = vadd.f32 %v3264_v41, %v7277_v35  ;;  %4772 = vmatpush3.bf16.msra.mxu0 %v3282_v50  ;;  %v3284_v57 = vpack.c.bf16 %v3264_v41, %v3263_v45  ;;  %v4972_v41 = vld [vmem:[#allocation8 + $0x30] sm:$0xff]  }
 0x624   :  { %v3294_v25 = vadd.f32 %v3262_v62, %v7283_v39  ;;  %v4731_v56 = vpop.f32.mrb[168].mxu0  ;;  %v3283_v4 = vpack.c.bf16 %v3262_v62, %v3261_v20  ;;  %4758 = vmatmul.mubr.bf16.gmra.mrb[164].mxu1 %v4961_v17  ;;  %v4962_v39 = vld [vmem:[#allocation7 + $0x20] sm:$0xff]   ;;  %v4965_v20 = vld [vmem:[#allocation7 + $0x38] sm:$0xff]   ;;  %v7946_v62 = vld [vmem:[#allocation44_spill] sm:$0xff] }
 0x625   :  { %v3251_v55 = vsub.f32 %v4731_v56, %v7289_v60  ;;  %v3194_v29 = vpop.f32.mrb[169].mxu0  ;;  %4804 = vmatpush3.bf16.msra.mxu1 %v3306_v31  ;;  %v3308_v49 = vpack.c.bf16 %v3296_v27, %v3295_v10  ;;  %4761 = vmatprep.mubr.bf16.mxu1 %v4962_v39  ;;  %v4971_v10 = vld [vmem:[#allocation8 + $0x28] sm:$0xff]   ;;  %v4973_v27 = vld [vmem:[#allocation8 + $0x38] sm:$0xff]  }
 0x626   :  { %v3249_v14 = vsub.f32 %v3194_v29, %v7291_v51  ;;  %v4732_v34 = vpop.f32.mrb[170].mxu0  ;;  %4773 = vmatprep.subr.bf16.mxu0 %v3283_v4  ;;  %v3307_v19 = vpack.c.bf16 %v3294_v25, %v3293_v38  ;;  %v7945_v38 = vld [vmem:[#allocation64_spill] sm:$0xff] }
 0x627   :  { %v3267_v35 = vadd.f32 %v7293_v7, %v3251_v55  ;;  %v3252_v52 = vsub.f32 %v4732_v34, %v7295_v18  ;;  %v3197_v54 = vpop.f32.mrb[171].mxu0  ;;  %4774 = vmatpush3.bf16.msra.mxu0 %v3283_v4 }
 0x628   :  { %v3265_v60 = vadd.f32 %v3249_v14, %v7301_v30  ;;  %v3250_v50 = vsub.f32 %v3197_v54, %v7303_v42  ;;  %4775 = vmatprep.subr.bf16.mxu0 %v3284_v57  ;;  %4805 = vmatprep.subr.bf16.mxu1 %v3307_v19 }
 0x629   :  { %v3299_v51 = vadd.f32 %v3267_v35, %v7299_v22  ;;  %v3268_v40 = vadd.f32 %v7309_v44, %v3252_v52  ;;  %4806 = vmatpush3.bf16.msra.mxu1 %v3307_v19 }
 0x62a   :  { %v3297_v59 = vadd.f32 %v3265_v60, %v7307_v23  ;;  %v3266_v7 = vadd.f32 %v3250_v50, %v7315_v28  ;;  %4807 = vmatprep.subr.bf16.mxu1 %v3308_v49  ;;  %v4963_v23 = vld [vmem:[#allocation7 + $0x28] sm:$0xff]  }
 0x62b   :  { %v3300_v18 = vadd.f32 %v3268_v40, %v7313_v58  ;;  %4776 = vmatpush3.bf16.msra.mxu0 %v3284_v57  ;;  %v3286_v21 = vpack.c.bf16 %v3268_v40, %v3267_v35 }
 0x62c   :  { %v3298_v30 = vadd.f32 %v3266_v7, %v7319_v15  ;;  %v4735_v2 = vpop.f32.mrb[172].mxu0  ;;  %v3285_v42 = vpack.c.bf16 %v3266_v7, %v3265_v60  ;;  %4762 = vmatmul.mubr.bf16.gmra.mrb[168].mxu1 %v4963_v23  ;;  %v4964_v15 = vld [vmem:[#allocation7 + $0x30] sm:$0xff]  }
 0x62d   :  { %v3255_v5 = vsub.f32 %v4735_v2, %v7325_v43  ;;  %v3210_v26 = vpop.f32.mrb[173].mxu0  ;;  %4808 = vmatpush3.bf16.msra.mxu1 %v3308_v49  ;;  %v3310_v22 = vpack.c.bf16 %v3300_v18, %v3299_v51  ;;  %4765 = vmatprep.mubr.bf16.mxu1 %v4964_v15 }
 0x62e   :  { %v3253_v44 = vsub.f32 %v3210_v26, %v7327_v11  ;;  %v4736_v31 = vpop.f32.mrb[174].mxu0  ;;  %4777 = vmatprep.subr.bf16.mxu0 %v3285_v42  ;;  %v3309_v28 = vpack.c.bf16 %v3298_v30, %v3297_v59 }
 0x62f   :  { %v3271_v58 = vadd.f32 %v7329_v12, %v3255_v5  ;;  %v3256_v33 = vsub.f32 %v4736_v31, %v7331_v13  ;;  %v3213_v8 = vpop.f32.mrb[175].mxu0  ;;  %4778 = vmatpush3.bf16.msra.mxu0 %v3285_v42 }
 0x630   :  { %v3269_v43 = vadd.f32 %v3253_v44, %v7337_v16  ;;  %v3254_v63 = vsub.f32 %v3213_v8, %v7339_v3  ;;  %4779 = vmatprep.subr.bf16.mxu0 %v3286_v21  ;;  %4809 = vmatprep.subr.bf16.mxu1 %v3309_v28 }
 0x631   :  { %v3303_v11 = vadd.f32 %v3271_v58, %v7335_v6  ;;  %v3272_v1 = vadd.f32 %v7345_v36, %v3256_v33  ;;  %4810 = vmatpush3.bf16.msra.mxu1 %v3309_v28  ;;  %v4966_v36 = vld [vmem:[#allocation11] sm:$0xff]  }
 0x632   :  { %v3301_v45 = vadd.f32 %v3269_v43, %v7343_v46  ;;  %v3270_v12 = vadd.f32 %v3254_v63, %v7351_v0  ;;  %4811 = vmatprep.subr.bf16.mxu1 %v3310_v22  ;;  %v4967_v46 = vld [vmem:[#allocation8 + $0x8] sm:$0xff]   ;;  %v4969_v0 = vld [vmem:[#allocation8 + $0x18] sm:$0xff]  }
 0x633   :  { %v3304_v13 = vadd.f32 %v3272_v1, %v7349_v48  ;;  %4780 = vmatpush3.bf16.msra.mxu0 %v3286_v21  ;;  %v3288_v24 = vpack.c.bf16 %v3272_v1, %v3271_v58  ;;  %v4968_v48 = vld [vmem:[#allocation8 + $0x10] sm:$0xff]  }
 0x634   :  { %v3302_v16 = vadd.f32 %v3270_v12, %v7355_v37  ;;  %v3287_v32 = vpack.c.bf16 %v3270_v12, %v3269_v43  ;;  %4766 = vmatmul.mubr.bf16.gmra.mrb[172].mxu1 %v4965_v20  ;;  %v4970_v37 = vld [vmem:[#allocation8 + $0x20] sm:$0xff]  }
 0x635   :  { %4812 = vmatpush3.bf16.msra.mxu1 %v3310_v22  ;;  %v3312_v3 = vpack.c.bf16 %v3304_v13, %v3303_v11  ;;  %4817 = vmatprep.mubr.bf16.mxu1 %v4966_v36 }
 0x636   :  { %4781 = vmatprep.subr.bf16.mxu0 %v3287_v32  ;;  %v3311_v6 = vpack.c.bf16 %v3302_v16, %v3301_v45 }
 0x637   :  { %4782 = vmatpush3.bf16.msra.mxu0 %v3287_v32 }
 0x638   :  { %4783 = vmatprep.subr.bf16.mxu0 %v3288_v24  ;;  %4813 = vmatprep.subr.bf16.mxu1 %v3311_v6 }
 0x639   :  { %4814 = vmatpush3.bf16.msra.mxu1 %v3311_v6 }
 0x63a   :  { %4815 = vmatprep.subr.bf16.mxu1 %v3312_v3 }
 0x63b   :  { %4784 = vmatpush3.bf16.msra.mxu0 %v3288_v24 }
 0x63d   :  { %4816 = vmatpush3.bf16.msra.mxu1 %v3312_v3 }
 0x63e   :  { %4786 = vmatmul.mubr.bf16.vlgmr.msra.gmra.mrb[176].mxu0 %v4967_v46 }
 0x63f   :  { %4789 = vmatprep.mubr.bf16.mxu0 %v4968_v48 }
 0x640   :  { %4818 = vmatmul.mubr.bf16.vlgmr.msra.gmra.mrb[176].mxu1 %v7108_v47  ;;  %v7947_v47 = vld [vmem:[#allocation77_spill] sm:$0xff] }
 0x641   :  { %4821 = vmatprep.mubr.bf16.mxu1 %v7144_v61 }
 0x646   :  { %4790 = vmatmul.mubr.bf16.gmra.mrb[180].mxu0 %v4969_v0 }
 0x647   :  { %4793 = vmatprep.mubr.bf16.mxu0 %v4970_v37 }
 0x648   :  { %4822 = vmatmul.mubr.bf16.gmra.mrb[180].mxu1 %v7156_v9 }
 0x649   :  { %4825 = vmatprep.mubr.bf16.mxu1 %v7944_v53 }
 0x64e   :  { %4794 = vmatmul.mubr.bf16.gmra.mrb[184].mxu0 %v4971_v10 }
 0x64f   :  { %4797 = vmatprep.mubr.bf16.mxu0 %v4972_v41 }
 0x650   :  { %4826 = vmatmul.mubr.bf16.gmra.mrb[184].mxu1 %v7945_v38 }
 0x651   :  { %4829 = vmatprep.mubr.bf16.mxu1 %v7946_v62 }
 0x656   :  { %4798 = vmatmul.mubr.bf16.gmra.mrb[188].mxu0 %v4973_v27 }
 0x658   :  { %4830 = vmatmul.mubr.bf16.gmra.mrb[188].mxu1 %v7947_v47 }
 0x6ef   :  { %v4755_v61 = vpop.f32.mrb[160].mxu1 }
 0x6f0   :  { %v3347_v57 = vpop.f32.mrb[161].mxu1 }
 0x6f1   :  { %v4756_v25 = vpop.f32.mrb[162].mxu1 }
 0x6f2   :  { %v3350_v56 = vpop.f32.mrb[163].mxu1 }
 0x6f7   :  { %v4759_v4 = vpop.f32.mrb[164].mxu1 }
 0x6f8   :  { %v3363_v9 = vpop.f32.mrb[165].mxu1 }
 0x6f9   :  { %v4760_v55 = vpop.f32.mrb[166].mxu1 }
 0x6fa   :  { %v7416_v29 = vpop.f32.mrb[167].mxu1 }
 0x6ff   :  { %v7418_v49 = vpop.f32.mrb[168].mxu1 }
 0x700   :  { %v7420_v14 = vpop.f32.mrb[169].mxu1 }
 0x701   :  { %v7422_v34 = vpop.f32.mrb[170].mxu1 }
 0x702   :  { %v7424_v17 = vpop.f32.mrb[171].mxu1 }
 0x707   :  { %v7426_v19 = vpop.f32.mrb[172].mxu1 }
 0x708   :  { %v7428_v35 = vpop.f32.mrb[173].mxu1 }
 0x709   :  { %v7430_v52 = vpop.f32.mrb[174].mxu1 }
 0x70a   :  { %v7432_v54 = vpop.f32.mrb[175].mxu1 }
 0x711   :  { %v4787_v39 = vpop.f32.mrb[176].mxu0 }
 0x712   :  { %v3606_v60 = vadd.f32 %v4787_v39, %v4755_v61  ;;  %v3444_v50 = vpop.f32.mrb[177].mxu0 }
 0x713   :  { %v3604_v51 = vadd.f32 %v3444_v50, %v3347_v57  ;;  %v4788_v40 = vpop.f32.mrb[178].mxu0  ;;  %v4819_v59 = vpop.f32.mrb[176].mxu1 }
 0x714   :  { %3654 = vst [vmem:[#allocation16 + $0x90] sm:$0xff] %v3606_v60  ;;  %v3607_v7 = vadd.f32 %v4788_v40, %v4756_v25  ;;  %v3622_v18 = vsub.f32 %v4819_v59, %v4755_v61  ;;  %v3447_v21 = vpop.f32.mrb[179].mxu0  ;;  %v3541_v30 = vpop.f32.mrb[177].mxu1 }
 0x715   :  { %3652 = vst [vmem:[#allocation16 + $0x80] sm:$0xff] %v3604_v51  ;;  %v3605_v2 = vadd.f32 %v3447_v21, %v3350_v56  ;;  %v3620_v42 = vsub.f32 %v3541_v30, %v3347_v57  ;;  %v4820_v5 = vpop.f32.mrb[178].mxu1 }
 0x716   :  { %3655 = vst [vmem:[#allocation16 + $0x98] sm:$0xff] %v3607_v7  ;;  %v3638_v26 = vadd.f32 %v4787_v39, %v3622_v18  ;;  %v3623_v22 = vsub.f32 %v4820_v5, %v4756_v25  ;;  %v3544_v44 = vpop.f32.mrb[179].mxu1 }
 0x717   :  { %3653 = vst [vmem:[#allocation16 + $0x88] sm:$0xff] %v3605_v2  ;;  %v3636_v31 = vadd.f32 %v3620_v42, %v3444_v50  ;;  %v3621_v23 = vsub.f32 %v3544_v44, %v3350_v56 }
 0x718   :  { %3670 = vst [vmem:[#allocation17 + $0x90] sm:$0xff] %v3638_v26  ;;  %v3639_v28 = vadd.f32 %v4788_v40, %v3623_v22 }
 0x719   :  { %3668 = vst [vmem:[#allocation17 + $0x80] sm:$0xff] %v3636_v31  ;;  %v3637_v58 = vadd.f32 %v3621_v23, %v3447_v21  ;;  %v4791_v33 = vpop.f32.mrb[180].mxu0 }
 0x71a   :  { %3671 = vst [vmem:[#allocation17 + $0x98] sm:$0xff] %v3639_v28  ;;  %v3610_v8 = vadd.f32 %v4791_v33, %v4759_v4  ;;  %v3460_v15 = vpop.f32.mrb[181].mxu0 }
 0x71b   :  { %3669 = vst [vmem:[#allocation17 + $0x88] sm:$0xff] %v3637_v58  ;;  %v3608_v43 = vadd.f32 %v3460_v15, %v3363_v9  ;;  %v4792_v63 = vpop.f32.mrb[182].mxu0  ;;  %v4823_v11 = vpop.f32.mrb[180].mxu1 }
 0x71c   :  { %3658 = vst [vmem:[#allocation16 + $0xb0] sm:$0xff] %v3610_v8  ;;  %v3611_v1 = vadd.f32 %v4792_v63, %v4760_v55  ;;  %v3626_v45 = vsub.f32 %v4823_v11, %v4759_v4  ;;  %v3463_v12 = vpop.f32.mrb[183].mxu0  ;;  %v3557_v13 = vpop.f32.mrb[181].mxu1 }
 0x71d   :  { %3656 = vst [vmem:[#allocation16 + $0xa0] sm:$0xff] %v3608_v43  ;;  %v3609_v24 = vadd.f32 %v3463_v12, %v7416_v29  ;;  %v3624_v16 = vsub.f32 %v3557_v13, %v3363_v9  ;;  %v4824_v32 = vpop.f32.mrb[182].mxu1 }
 0x71e   :  { %3659 = vst [vmem:[#allocation16 + $0xb8] sm:$0xff] %v3611_v1  ;;  %v3642_v3 = vadd.f32 %v4791_v33, %v3626_v45  ;;  %v3627_v20 = vsub.f32 %v4824_v32, %v4760_v55  ;;  %v3560_v6 = vpop.f32.mrb[183].mxu1 }
 0x71f   :  { %3657 = vst [vmem:[#allocation16 + $0xa8] sm:$0xff] %v3609_v24  ;;  %v3640_v36 = vadd.f32 %v3624_v16, %v3460_v15  ;;  %v3625_v46 = vsub.f32 %v3560_v6, %v7416_v29 }
 0x720   :  { %3674 = vst [vmem:[#allocation17 + $0xb0] sm:$0xff] %v3642_v3  ;;  %v3643_v48 = vadd.f32 %v4792_v63, %v3627_v20 }
 0x721   :  { %3672 = vst [vmem:[#allocation17 + $0xa0] sm:$0xff] %v3640_v36  ;;  %v3641_v0 = vadd.f32 %v3625_v46, %v3463_v12  ;;  %v4795_v37 = vpop.f32.mrb[184].mxu0 }
 0x722   :  { %3675 = vst [vmem:[#allocation17 + $0xb8] sm:$0xff] %v3643_v48  ;;  %v3614_v53 = vadd.f32 %v4795_v37, %v7418_v49  ;;  %v3476_v10 = vpop.f32.mrb[185].mxu0 }
 0x723   :  { %3673 = vst [vmem:[#allocation17 + $0xa8] sm:$0xff] %v3641_v0  ;;  %v3612_v41 = vadd.f32 %v3476_v10, %v7420_v14  ;;  %v4796_v38 = vpop.f32.mrb[186].mxu0  ;;  %v4827_v62 = vpop.f32.mrb[184].mxu1 }
 0x724   :  { %3662 = vst [vmem:[#allocation16 + $0xd0] sm:$0xff] %v3614_v53  ;;  %v3615_v27 = vadd.f32 %v4796_v38, %v7422_v34  ;;  %v3630_v47 = vsub.f32 %v4827_v62, %v7418_v49  ;;  %v3479_v61 = vpop.f32.mrb[187].mxu0  ;;  %v3573_v57 = vpop.f32.mrb[185].mxu1 }
 0x725   :  { %3660 = vst [vmem:[#allocation16 + $0xc0] sm:$0xff] %v3612_v41  ;;  %v3613_v25 = vadd.f32 %v3479_v61, %v7424_v17  ;;  %v3628_v56 = vsub.f32 %v3573_v57, %v7420_v14  ;;  %v4828_v4 = vpop.f32.mrb[186].mxu1 }
 0x726   :  { %3663 = vst [vmem:[#allocation16 + $0xd8] sm:$0xff] %v3615_v27  ;;  %v3646_v9 = vadd.f32 %v4795_v37, %v3630_v47  ;;  %v3631_v55 = vsub.f32 %v4828_v4, %v7422_v34  ;;  %v3576_v29 = vpop.f32.mrb[187].mxu1 }
 0x727   :  { %3661 = vst [vmem:[#allocation16 + $0xc8] sm:$0xff] %v3613_v25  ;;  %v3644_v39 = vadd.f32 %v3628_v56, %v3476_v10  ;;  %v3629_v60 = vsub.f32 %v3576_v29, %v7424_v17 }
 0x728   :  { %3678 = vst [vmem:[#allocation17 + $0xd0] sm:$0xff] %v3646_v9  ;;  %v3647_v50 = vadd.f32 %v4796_v38, %v3631_v55 }
 0x729   :  { %3676 = vst [vmem:[#allocation17 + $0xc0] sm:$0xff] %v3644_v39  ;;  %v3645_v49 = vadd.f32 %v3629_v60, %v3479_v61  ;;  %v4799_v51 = vpop.f32.mrb[188].mxu0 }
 0x72a   :  { %3679 = vst [vmem:[#allocation17 + $0xd8] sm:$0xff] %v3647_v50  ;;  %v3618_v40 = vadd.f32 %v4799_v51, %v7426_v19  ;;  %v3492_v59 = vpop.f32.mrb[189].mxu0 }
 0x72b   :  { %3677 = vst [vmem:[#allocation17 + $0xc8] sm:$0xff] %v3645_v49  ;;  %v3616_v14 = vadd.f32 %v3492_v59, %v7428_v35  ;;  %v4800_v34 = vpop.f32.mrb[190].mxu0  ;;  %v4831_v7 = vpop.f32.mrb[188].mxu1 }
 0x72c   :  { %3666 = vst [vmem:[#allocation16 + $0xf0] sm:$0xff] %v3618_v40  ;;  %v3619_v18 = vadd.f32 %v4800_v34, %v7430_v52  ;;  %v3634_v17 = vsub.f32 %v4831_v7, %v7426_v19  ;;  %v3495_v21 = vpop.f32.mrb[191].mxu0  ;;  %v3589_v30 = vpop.f32.mrb[189].mxu1 }
 0x72d   :  { %3664 = vst [vmem:[#allocation16 + $0xe0] sm:$0xff] %v3616_v14  ;;  %v3617_v2 = vadd.f32 %v3495_v21, %v7432_v54  ;;  %v3632_v42 = vsub.f32 %v3589_v30, %v7428_v35  ;;  %v4832_v5 = vpop.f32.mrb[190].mxu1 }
 0x72e   :  { %3667 = vst [vmem:[#allocation16 + $0xf8] sm:$0xff] %v3619_v18  ;;  %v3650_v26 = vadd.f32 %v4799_v51, %v3634_v17  ;;  %v3635_v22 = vsub.f32 %v4832_v5, %v7430_v52  ;;  %v3592_v44 = vpop.f32.mrb[191].mxu1 }
 0x72f   :  { %3665 = vst [vmem:[#allocation16 + $0xe8] sm:$0xff] %v3617_v2  ;;  %v3648_v31 = vadd.f32 %v3632_v42, %v3492_v59  ;;  %v3633_v19 = vsub.f32 %v3592_v44, %v7432_v54 }
 0x730   :  { %3682 = vst [vmem:[#allocation17 + $0xf0] sm:$0xff] %v3650_v26  ;;  %v3651_v23 = vadd.f32 %v4800_v34, %v3635_v22 }
 0x731   :  { %5161 = shalt.err (!%p5158_p12)
}
 0x732   :  { %s5162_s3 = scalar_lea.hbm %s7490_s8, 4096 }
 0x733   :  { %p5163_p13 = scmp.ne.s32.totalorder %s7490_s8, %s5162_s3  ;;  %p5166_p0 = scmp.lt.u32.totalorder %s5162_s3, %s7490_s8 }
 0x735   :  { %p5168_p1 = pnand %p5166_p0, %p5163_p13 }
 0x737   :  { %5171 = shalt.err (!%p5168_p1)
}
 0x738   :  { %3695 = dma.vmem_to_hbm [thread:$0]  %s3690_s23, 4096, %s7490_s8, [#allocation4], %s5209_s19, %s5209_s19, %s5210_s20   ;;  %3680 = vst [vmem:[#allocation17 + $0xe0] sm:$0xff] %v3648_v31  ;;  %v3649_v35 = vadd.f32 %v3633_v19, %v3495_v21  ;;  %3683 = vst [vmem:[#allocation17 + $0xf8] sm:$0xff] %v3651_v23 }
 0x739   :  { %s5172_s10 = scalar_lea.vmem %s3702_s12, 4096  ;;  %p5177_p3 = scmp.lt.s32.totalorder %s3702_s12, %s3702_s12 }
 0x73a   :  { %3681 = vst [vmem:[#allocation17 + $0xe8] sm:$0xff] %v3649_v35  ;;  %p5173_p2 = scmp.ne.s32.totalorder %s3702_s12, %s5172_s10  ;;  %p5178_p4 = scmp.lt.s32.totalorder %s5172_s10, %s5172_s10 }
 0x73c   :  { %p5179_p5 = por %p5178_p4, %p5177_p3 }
 0x73e   :  { %p5180_p6 = pnand %p5179_p5, %p5173_p2 }
 0x740   :  { %5183 = shalt.err (!%p5180_p6)
}
 0x741   :  { %s5184_s1 = scalar_lea.hbm %s7491_s9, 4096 }
 0x742   :  { %p5185_p7 = scmp.ne.s32.totalorder %s7491_s9, %s5184_s1  ;;  %p5188_p8 = scmp.lt.u32.totalorder %s5184_s1, %s7491_s9 }
 0x744   :  { %p5190_p9 = pnand %p5188_p8, %p5185_p7 }
 0x746   :  { %5193 = shalt.err (!%p5190_p9)
}
 0x747   :  { %3707 = dma.vmem_to_hbm [thread:$0]  %s3702_s12, 4096, %s7491_s9, [#allocation18], %s5209_s19, %s5209_s19, %s5210_s20  }
 0x748   :  { %5204 = dma.done.wait [#allocation4], 4096  }
 0x749   :  { %5205 = vsyncadd [#allocation4], 4294963200 }
 0x74a   :  { %5206 = dma.done.wait [#allocation18], 4096  }
 0x74b   :  { %5207 = vsyncadd [#allocation18], 4294963200 }
 0x74c   :  { %3714 = vsyncpa [#allocation3], 1 }
 0x74d   :  { %3715 = vsyncpa [#allocation6], 1 }
 0x74e   :  { %3716 = vsyncpa [#allocation9], 1 }
 0x74f   :  { %3717 = vsyncpa [#allocation12], 1 }
 0x750   :  { %3718 = vsyncpa [#allocation15], 1 }
 0x751   :  { %3719 = vsyncpa [#allocation4], 1 }
 0x752   :  { %3720 = vsyncpa [#allocation18], 1 }

</bundles_post_ra>
